<compile_context>
chip_gen: v6e
topology: v6e:2x2x1
jax: 0.10.0
libtpu: 0.0.40
codegen_flags: <defaults>
</compile_context>

<pallas_src>
import math
import functools
import numpy as np

import jax
import jax.numpy as jnp
from jax import lax
from jax.experimental import pallas as pl
from jax.experimental.pallas import tpu as pltpu


# ----------------------------------------------------------------------------
# small helpers
# ----------------------------------------------------------------------------

def _mm_nt(a, b):
    """a @ b.T without an explicit transpose (contract over the last dim of both)."""
    return lax.dot_general(a, b, (((1,), (1,)), ((), ())),
                           preferred_element_type=jnp.float32)


# ----------------------------------------------------------------------------
# Static parameter-packing plan (shared by build_params and the kernel)
# ----------------------------------------------------------------------------

def _param_layout(cfg):
    """Ordered (row_offset, rows, cols) entries inside ONE lane-dense f32 slab, in
    exactly the order the kernel consumes them.  Returns (layout, total_rows, width)."""
    n, h = cfg["dim"]
    emb_dim = cfg["emb"]
    K = emb_dim[-1]
    d = cfg["max_ac"] * cfg["state_dim"]
    T = cfg["T_in"]

    shapes = []

    def add(r, c):
        shapes.append((r, c))

    def add_linear(din, dout, bias):
        add(din, dout)          # W
        add(2 * din, dout)      # vstack([W^2 + Sw, Sw])  (variance RHS, two halves)
        if bias:
            add(1, dout)        # b
            add(1, dout)        # sigma_b

    dims = [d] + list(emb_dim)
    for i in range(len(emb_dim)):
        add_linear(dims[i], dims[i + 1], True)          # embedding stack
    add(T, K)                                           # positional encoding
    for i in range(n - 1):
        if i != 0:
            add(4, K)                                   # norm1[i-1]
        add_linear(K, 3 * K, False)                     # fused q/k/v
        add(4, K)                                       # norm2[i]
        add_linear(K, K, True)                          # fc[i]
    add(4, K)                                           # norm1[n-2]
    add_linear(K, 2 * K, False)                         # FinalHeadVDP fused k/v

    width = max(128, ((max(c for _, c in shapes) + 127) // 128) * 128)
    layout = []
    off = 0
    for r, c in shapes:
        layout.append((off, r, c))
        off += ((r + 7) // 8) * 8                       # 8-row aligned entries
    total_rows = ((off + 7) // 8) * 8
    return tuple(layout), total_rows, width


# ----------------------------------------------------------------------------
# Fused encoder kernel
# ----------------------------------------------------------------------------

def _make_encoder_kernel(cfg, layout, batch, seq):
    n, h = cfg["dim"]
    emb_dim = cfg["emb"]
    q = len(emb_dim)
    K = emb_dim[-1]
    dk = K // h
    inv_rd = 1.0 / math.sqrt(K)
    inv_rd2 = inv_rd * inv_rd
    Mr = batch * seq
    f32 = jnp.float32

    def kernel(x_ref, p_ref, out_ref):
        cursor = [0]

        def nxt():
            e = layout[cursor[0]]
            cursor[0] += 1
            return e

        def load():
            off, r, c = nxt()
            return p_ref[off:off + r, :c]

        def linear_vdp(x, vx, has_bias):
            # LinearVDP: y = x W + b
            #            var_y = var_x (W^2 + Sw) + x^2 Sw + sb    (two dots, no concat)
            w = load()
            off, r, c = nxt()
            din = r // 2
            wa = p_ref[off:off + din, :c]          # W^2 + Sw
            wb = p_ref[off + din:off + r, :c]      # Sw
            y = jnp.dot(x, w, preferred_element_type=f32)
            vy = (jnp.dot(vx, wa, preferred_element_type=f32)
                  + jnp.dot(x * x, wb, preferred_element_type=f32))
            if has_bias:
                y = y + load()
                vy = vy + load()
            return y, vy

        def layernorm_vdp(x, vx):
            # LayerNormVDP: exact mean path; diagonal first-order variance propagation.
            ln = load()                            # (4,K): gamma, sigma_g, beta, sigma_b
            g, sg, bb, sb = ln[0:1, :], ln[1:2, :], ln[2:3, :], ln[3:4, :]
            mu = jnp.mean(x, axis=-1, keepdims=True)
            var = jnp.mean((x - mu) ** 2, axis=-1, keepdims=True)
            inv = lax.rsqrt(var + 1e-5)
            xh = (x - mu) * inv
            y = xh * g + bb
            vy = vx * (inv * inv) * (g * g + sg) + xh * xh * sg + sb
            return y, vy

        def relu_vdp(x, vx):
            jac = (x > 0).astype(x.dtype)
            return x * jac, vx * jac

        # Static same-batch block mask (built once, no integer division).  EncoderVDP
        # calls AttentionHeadVDP with masking=False -> no causal mask; this mask only
        # fuses the independent batch elements into single (Mr, Mr) score matmuls.
        ri = lax.broadcasted_iota(jnp.int32, (Mr, Mr), 0)
        ci = lax.broadcasted_iota(jnp.int32, (Mr, Mr), 1)
        same_batch = jnp.zeros((Mr, Mr), dtype=jnp.bool_)
        for b in range(batch):
            lo, hi = b * seq, (b + 1) * seq
            same_batch = same_batch | ((ri >= lo) & (ri < hi) & (ci >= lo) & (ci < hi))

        def attention_vdp(x, vx):
            # AttentionHeadVDP (no causal mask) with the 'identity' residual fused in.
            qkv, vqkv = linear_vdp(x, vx, has_bias=False)    # fused q/k/v: (Mr, 3K)
            qm = qkv[:, 0 * K:1 * K] * inv_rd                # fold 1/sqrt(K) into q
            km = qkv[:, 1 * K:2 * K]
            vm = qkv[:, 2 * K:3 * K]
            qv = vqkv[:, 0 * K:1 * K] * inv_rd2              # fold 1/K into var_q
            kv = vqkv[:, 1 * K:2 * K]
            vv = vqkv[:, 2 * K:3 * K]
            q2 = qm * qm
            k2pvk = kv + km * km        # var_k + k^2  (hoisted out of the head loop)
            v2pvv = vv + vm * vm        # var_v + v^2
            heads_m, heads_v = [], []
            for hd in range(h):
                c = slice(hd * dk, (hd + 1) * dk)
                qh, kh, vh = qm[:, c], km[:, c], vm[:, c]
                qvh, kvh, vvh = qv[:, c], kv[:, c], vv[:, c]
                q2h, k2h, v2h = q2[:, c], k2pvk[:, c], v2pvv[:, c]
                # quadratic_vdp(q, var_q, k^T, var_k^T): two dots, no lane concat
                s = jnp.where(same_batch, _mm_nt(qh, kh), -1e30)
                vs = _mm_nt(qvh, k2h) + _mm_nt(q2h, kvh)
                # softmax_vdp: exact softmax mean; diagonal Jacobian variance.
                mx = jnp.max(s, axis=-1, keepdims=True)
                e = jnp.exp(s - mx)                       # cross-batch entries -> 0.0
                p = e / jnp.sum(e, axis=-1, keepdims=True)
                vp = (p * (1.0 - p)) ** 2 * vs
                # quadratic_vdp(p, var_p, v, var_v): two dots, no lane concat
                o = jnp.dot(p, vh, preferred_element_type=f32)
                vo = (jnp.dot(vp, v2h, preferred_element_type=f32)
                      + jnp.dot(p * p, vvh, preferred_element_type=f32))
                heads_m.append(o)
                heads_v.append(vo)
            a = jnp.concatenate(heads_m, axis=-1)            # (Mr, K)
            va = jnp.concatenate(heads_v, axis=-1)
            # residual_vdp 'identity': means add, variances add.
            # TODO(synk): only residual mode 'identity' is implemented.
            return x + a, vx + va

        x = x_ref[...].astype(f32)
        vx = jnp.zeros_like(x)

        # --- embedding stack ---
        for _ in range(q - 1):
            x, vx = linear_vdp(x, vx, True)
            x, vx = relu_vdp(x, vx)
        x, vx = linear_vdp(x, vx, True)
        pos = load()                                         # (T, K)
        x = x + jnp.concatenate([pos] * batch, axis=0)       # broadcast over batches

        # --- encoder blocks ---
        for i in range(n - 1):
            if i != 0:
                x, vx = layernorm_vdp(x, vx)                 # norm1[i-1]
            x, vx = attention_vdp(x, vx)                     # multi[i]
            x, vx = layernorm_vdp(x, vx)                     # norm2[i]
            x0, vx0 = x, vx
            y, vy = linear_vdp(x, vx, True)                  # fc[i]
            y, vy = relu_vdp(y, vy)
            x, vx = x0 + y, vx0 + vy                         # residual_vdp 'identity'

        # --- final LayerNorm + FinalHeadVDP (fused k/v projection, no bias) ---
        x, vx = layernorm_vdp(x, vx)                         # norm1[n-2]
        kvm, kvv = linear_vdp(x, vx, False)                  # (Mr, 2K) = [k | v] each
        # ONE lane-dense (Mr, 4K) slab -> single unmasked full-width store / DMA.
        out_ref[...] = jnp.concatenate([kvm, kvv], axis=-1)

        assert cursor[0] == len(layout), "kernel consumed wrong number of param entries"

    return kernel


# ----------------------------------------------------------------------------
# Wrapper
# ----------------------------------------------------------------------------

def encoder_vdp_forward(params, x, cfg):
    """Fused EncoderVDP forward.  Returns (k, var_k, v, var_v), each (B, h, T, dk)."""
    n, h = cfg["dim"]
    K = cfg["emb"][-1]
    dk = K // h
    B, T, d_in = x.shape
    assert T == cfg["T_in"]
    M = B * T

    layout, total_rows, width = _param_layout(cfg)
    slab = params["slab"]
    assert slab.shape == (total_rows, width)

    x2 = x.reshape(M, d_in).astype(jnp.float32)
    kernel = _make_encoder_kernel(cfg, layout, B, T)

    # rough advisory cost estimate (mean + variance dots, attention, transcendentals)
    dims = [d_in] + list(cfg["emb"])
    lin = sum(dims[i] * dims[i + 1] for i in range(len(cfg["emb"])))
    lin += (n - 1) * (3 * K * K + K * K) + 2 * K * K
    flops = 6 * M * lin + (n - 1) * h * 12 * M * M * dk
    transcend = (n - 1) * h * M * M + 2 * (2 * (n - 1) + 1) * M
    bytes_acc = 4 * (M * d_in + total_rows * width + M * 4 * K)

    out = pl.pallas_call(
        kernel,
        grid=(1,),   # single step over all B*T rows (params loaded once, never revisited)
        in_specs=[pl.BlockSpec((M, d_in), lambda i: (0, 0)),
                  pl.BlockSpec((total_rows, width), lambda i: (0, 0))],
        out_specs=pl.BlockSpec((M, 4 * K), lambda i: (0, 0)),
        out_shape=jax.ShapeDtypeStruct((M, 4 * K), jnp.float32),
        compiler_params=pltpu.CompilerParams(
            dimension_semantics=("arbitrary",),
            vmem_limit_bytes=32 * 1024 * 1024),
        cost_estimate=pl.CostEstimate(flops=int(flops),
                                      transcendentals=int(transcend),
                                      bytes_accessed=int(bytes_acc)),
    )(x2, slab)

    def split_heads(a):   # (M, K) -> (B, h, T, dk): torch .reshape(B,T,h,dk).transpose(1,2)
        return a.reshape(B, T, h, dk).transpose(0, 2, 1, 3)

    kvm, kvv = out[:, :2 * K], out[:, 2 * K:]
    return (split_heads(kvm[:, :K]), split_heads(kvv[:, :K]),
            split_heads(kvm[:, K:]), split_heads(kvv[:, K:]))


# ----------------------------------------------------------------------------
# Pure-JAX reference (same VDP math) for validation
# ----------------------------------------------------------------------------

def encoder_vdp_reference(params, x, cfg):
    n, h = cfg["dim"]
    emb_dim = cfg["emb"]
    q = len(emb_dim)
    K = emb_dim[-1]
    dk = K // h
    rd = math.sqrt(K)
    B, T, _ = x.shape

    it = iter(params["raw"])

    def linear(x, vx, has_bias):
        w, wv = next(it), next(it)          # wv = vstack([W^2 + Sw, Sw])
        y = x @ w
        vy = jnp.concatenate([vx, x * x], axis=-1) @ wv
        if has_bias:
            y = y + next(it)
            vy = vy + next(it)
        return y, vy

    def layernorm(x, vx):
        ln = next(it)
        g, sg, bb, sb = ln[0], ln[1], ln[2], ln[3]
        mu = jnp.mean(x, axis=-1, keepdims=True)
        var = jnp.mean((x - mu) ** 2, axis=-1, keepdims=True)
        inv = lax.rsqrt(var + 1e-5)
        xh = (x - mu) * inv
        return xh * g + bb, vx * inv * inv * (g * g + sg) + xh * xh * sg + sb

    def relu(x, vx):
        jac = (x > 0).astype(x.dtype)
        return x * jac, vx * jac

    def split(a):
        return a.reshape(B, T, h, dk).transpose(0, 2, 1, 3)

    def attention(x, vx):
        qkv, vqkv = linear(x, vx, False)
        Q, Kh, V = split(qkv[..., :K]), split(qkv[..., K:2 * K]), split(qkv[..., 2 * K:])
        VQ, VK, VV = split(vqkv[..., :K]), split(vqkv[..., K:2 * K]), split(vqkv[..., 2 * K:])
        s = jnp.einsum("bhqd,bhkd->bhqk", Q, Kh) / rd
        vs = (jnp.einsum("bhqd,bhkd->bhqk", VQ, VK)
              + jnp.einsum("bhqd,bhkd->bhqk", Q * Q, VK)
              + jnp.einsum("bhqd,bhkd->bhqk", VQ, Kh * Kh)) / rd ** 2
        p = jax.nn.softmax(s, axis=-1)
        vp = (p * (1.0 - p)) ** 2 * vs
        o = jnp.einsum("bhqk,bhkd->bhqd", p, V)
        vo = (jnp.einsum("bhqk,bhkd->bhqd", vp, VV)
              + jnp.einsum("bhqk,bhkd->bhqd", p * p, VV)
              + jnp.einsum("bhqk,bhkd->bhqd", vp, V * V))
        merge = lambda a: a.transpose(0, 2, 1, 3).reshape(B, T, K)
        return x + merge(o), vx + merge(vo)

    x = x.astype(jnp.float32)
    vx = jnp.zeros_like(x)
    for _ in range(q - 1):
        x, vx = linear(x, vx, True)
        x, vx = relu(x, vx)
    x, vx = linear(x, vx, True)
    x = x + next(it)[None]                  # positional encoding

    for i in range(n - 1):
        if i != 0:
            x, vx = layernorm(x, vx)
        x, vx = attention(x, vx)
        x, vx = layernorm(x, vx)
        x0, vx0 = x, vx
        y, vy = linear(x, vx, True)
        y, vy = relu(y, vy)
        x, vx = x0 + y, vx0 + vy

    x, vx = layernorm(x, vx)
    kvm, kvv = linear(x, vx, False)
    return (split(kvm[..., :K]), split(kvv[..., :K]),
            split(kvm[..., K:]), split(kvv[..., K:]))


# ----------------------------------------------------------------------------
# Deterministic parameter construction (packed / fused at build time)
# ----------------------------------------------------------------------------

def positional_encoding(k, t):
    # TODO(synk): exact get_positional_encoding helper not provided; standard sinusoidal used.
    pos = np.arange(t)[:, None].astype(np.float32)
    i = np.arange(k)[None, :].astype(np.float32)
    angle = pos / np.power(10000.0, (2.0 * np.floor(i / 2.0)) / k)
    pe = np.where((np.arange(k)[None, :] % 2) == 0, np.sin(angle), np.cos(angle))
    return jnp.asarray(pe, jnp.float32)


def build_params(key, cfg):
    n, h = cfg["dim"]
    emb_dim = cfg["emb"]
    K = emb_dim[-1]
    d = cfg["max_ac"] * cfg["state_dim"]
    vi = cfg["var_init"]
    T = cfg["T_in"]

    keys = iter(jax.random.split(key, 4 * len(emb_dim) + 8 * n + 8))
    raw = []

    def lin(din, dout, bias, fused=1):
        # `fused` > 1: that many independent bias-free LinearVDP(din, dout//fused) layers
        # fused along the output dim (q/k/v or final k/v) -- equivalent to applying them
        # separately.
        if fused == 1:
            w = jax.random.normal(next(keys), (din, dout), jnp.float32) / math.sqrt(din)
        else:
            per = dout // fused
            w = jnp.concatenate(
                [jax.random.normal(next(keys), (din, per), jnp.float32) / math.sqrt(din)
                 for _ in range(fused)], axis=1)
        sw = jnp.full((din, dout), vi, jnp.float32)
        raw.append(w)
        raw.append(jnp.concatenate([w * w + sw, sw], axis=0))   # stacked variance RHS
        if bias:
            raw.append(jnp.zeros((1, dout), jnp.float32))        # b
            raw.append(jnp.full((1, dout), vi, jnp.float32))     # sigma_b

    def layer_norm():
        # rows: [gamma, sigma_gamma, beta, sigma_beta]
        raw.append(jnp.concatenate([jnp.ones((1, K), jnp.float32),
                                    jnp.full((1, K), vi, jnp.float32),
                                    jnp.zeros((1, K), jnp.float32),
                                    jnp.full((1, K), vi, jnp.float32)], axis=0))

    dims = [d] + list(emb_dim)
    for i in range(len(emb_dim)):
        lin(dims[i], dims[i + 1], bias=True)                    # embedding stack
    raw.append(positional_encoding(K, T))
    for i in range(n - 1):
        if i != 0:
            layer_norm()                                        # norm1[i-1]
        lin(K, 3 * K, bias=False, fused=3)                      # q, k, v
        layer_norm()                                            # norm2[i]
        lin(K, K, bias=True)                                    # fc[i]
    layer_norm()                                                # norm1[n-2]
    lin(K, 2 * K, bias=False, fused=2)                          # final k, v

    # pack everything into ONE lane-dense slab
    layout, total_rows, width = _param_layout(cfg)
    assert len(raw) == len(layout)
    slab_np = np.zeros((total_rows, width), np.float32)
    for arr, (off, r, c) in zip(raw, layout):
        a = np.asarray(arr, np.float32)
        assert a.shape == (r, c), (a.shape, (r, c))
        slab_np[off:off + r, :c] = a
    return dict(slab=jnp.asarray(slab_np), raw=tuple(raw))


# ----------------------------------------------------------------------------
# Main
# ----------------------------------------------------------------------------

if __name__ == "__main__":
    cfg = dict(dim=(3, 4),             # n = 3 -> 2 self-attention blocks + FinalHeadVDP, h = 4
               emb=[16, 32],           # embedding stack, K = 32
               max_ac=4, state_dim=4,  # d = max_ac * state_dim = 16 input features
               residual="identity",
               tol=1e-3,
               var_init=1e-8,
               T_in=8)                 # sequence length T = 8

    n, h = cfg["dim"]
    K = cfg["emb"][-1]
    dk = K // h
    d = cfg["max_ac"] * cfg["state_dim"]
    B, T = 2, cfg["T_in"]

    root = jax.random.PRNGKey(0)
    kp, kx = jax.random.split(root)
    params = build_params(kp, cfg)
    x = jax.random.normal(kx, (B, T, d), jnp.float32)

    fwd = jax.jit(functools.partial(encoder_vdp_forward, cfg=cfg))
    out = fwd(params, x)
    jax.block_until_ready(out)

    k_enc, var_k, v_enc, var_v = out
    assert k_enc.shape == (B, h, T, dk) and v_enc.shape == (B, h, T, dk)
    assert var_k.shape == (B, h, T, dk) and var_v.shape == (B, h, T, dk)
    for a in out:
        assert bool(jnp.all(jnp.isfinite(a)))

    # cross-check against a pure-JAX reference of the same VDP math.
    # 'highest' matmul precision is scoped to the reference only (the kernel uses the
    # default MXU lowering), so the tolerance allows for default-precision matmuls.
    with jax.default_matmul_precision("highest"):
        ref = jax.jit(functools.partial(encoder_vdp_reference, cfg=cfg))(params, x)
    for got, want in zip(out, ref):
        assert bool(jnp.allclose(got, want, rtol=5e-2, atol=1e-2))

    print("KERNEL_OK")
</pallas_src>

<mosaic_0001>
module attributes {stable_mosaic.version = 11 : i64} {
  func.func @kernel(%arg0: i32, %arg1: memref<16x16xf32, #tpu.memory_space<vmem>>, %arg2: memref<680x128xf32, #tpu.memory_space<vmem>>, %arg3: memref<16x128xf32, #tpu.memory_space<vmem>>) attributes {dimension_semantics = [#tpu.dimension_semantics<arbitrary>], iteration_bounds = array<i64: 1>, scalar_prefetch = 0 : i64, scratch_operands = 0 : i64, tpu.core_type = #tpu.core_type<tc>, window_params = [{pipeline_mode = #tpu.pipeline_mode<synchronous>, transform_indices = @transform_0, window_bounds = array<i64: 16, 16>}, {pipeline_mode = #tpu.pipeline_mode<synchronous>, transform_indices = @transform_1, window_bounds = array<i64: 680, 128>}, {pipeline_mode = #tpu.pipeline_mode<synchronous>, transform_indices = @transform_2, window_bounds = array<i64: 16, 128>}]} {
    %0 = tpu.iota {dimensions = array<i32: 0>} : vector<16x16xi32>
    %1 = tpu.iota {dimensions = array<i32: 1>} : vector<16x16xi32>
    %false = arith.constant false
    %2 = vector.broadcast %false : i1 to vector<16x16xi1>
    %c0_i32 = arith.constant 0 : i32
    %3 = vector.broadcast %c0_i32 : i32 to vector<16x16xi32>
    %4 = arith.cmpi sge, %0, %3 : vector<16x16xi32>
    %c8_i32 = arith.constant 8 : i32
    %5 = vector.broadcast %c8_i32 : i32 to vector<16x16xi32>
    %6 = arith.cmpi slt, %0, %5 : vector<16x16xi32>
    %7 = arith.andi %4, %6 : vector<16x16xi1>
    %c0_i32_0 = arith.constant 0 : i32
    %8 = vector.broadcast %c0_i32_0 : i32 to vector<16x16xi32>
    %9 = arith.cmpi sge, %1, %8 : vector<16x16xi32>
    %10 = arith.andi %7, %9 : vector<16x16xi1>
    %c8_i32_1 = arith.constant 8 : i32
    %11 = vector.broadcast %c8_i32_1 : i32 to vector<16x16xi32>
    %12 = arith.cmpi slt, %1, %11 : vector<16x16xi32>
    %13 = arith.andi %10, %12 : vector<16x16xi1>
    %14 = arith.ori %2, %13 : vector<16x16xi1>
    %c8_i32_2 = arith.constant 8 : i32
    %15 = vector.broadcast %c8_i32_2 : i32 to vector<16x16xi32>
    %16 = arith.cmpi sge, %0, %15 : vector<16x16xi32>
    %c16_i32 = arith.constant 16 : i32
    %17 = vector.broadcast %c16_i32 : i32 to vector<16x16xi32>
    %18 = arith.cmpi slt, %0, %17 : vector<16x16xi32>
    %19 = arith.andi %16, %18 : vector<16x16xi1>
    %c8_i32_3 = arith.constant 8 : i32
    %20 = vector.broadcast %c8_i32_3 : i32 to vector<16x16xi32>
    %21 = arith.cmpi sge, %1, %20 : vector<16x16xi32>
    %22 = arith.andi %19, %21 : vector<16x16xi1>
    %c16_i32_4 = arith.constant 16 : i32
    %23 = vector.broadcast %c16_i32_4 : i32 to vector<16x16xi32>
    %24 = arith.cmpi slt, %1, %23 : vector<16x16xi32>
    %25 = arith.andi %22, %24 : vector<16x16xi1>
    %26 = arith.ori %14, %25 : vector<16x16xi1>
    %c0 = arith.constant 0 : index
    %c0_5 = arith.constant 0 : index
    %27 = vector.load %arg1[%c0, %c0_5] : memref<16x16xf32, #tpu.memory_space<vmem>>, vector<16x16xf32>
    %cst = arith.constant 0.000000e+00 : f32
    %28 = vector.broadcast %cst : f32 to vector<16x16xf32>
    %c0_6 = arith.constant 0 : index
    %c0_7 = arith.constant 0 : index
    %29 = vector.load %arg2[%c0_6, %c0_7] : memref<680x128xf32, #tpu.memory_space<vmem>>, vector<16x16xf32>
    %c16 = arith.constant 16 : index
    %c0_8 = arith.constant 0 : index
    %30 = vector.load %arg2[%c16, %c0_8] : memref<680x128xf32, #tpu.memory_space<vmem>>, vector<16x16xf32>
    %c32 = arith.constant 32 : index
    %c0_9 = arith.constant 0 : index
    %31 = vector.load %arg2[%c32, %c0_9] : memref<680x128xf32, #tpu.memory_space<vmem>>, vector<16x16xf32>
    %cst_10 = arith.constant dense<0.000000e+00> : vector<16x16xf32>
    %32 = tpu.matmul %27, %29, %cst_10 {dimension_numbers = #tpu.dot_dimension_numbers<[1], [0], [0], [1], [0, 0, 1, 1], [], []>} : vector<16x16xf32>, vector<16x16xf32>, vector<16x16xf32> -> vector<16x16xf32>
    %cst_11 = arith.constant dense<0.000000e+00> : vector<16x16xf32>
    %33 = tpu.matmul %28, %30, %cst_11 {dimension_numbers = #tpu.dot_dimension_numbers<[1], [0], [0], [1], [0, 0, 1, 1], [], []>} : vector<16x16xf32>, vector<16x16xf32>, vector<16x16xf32> -> vector<16x16xf32>
    %34 = arith.mulf %27, %27 : vector<16x16xf32>
    %cst_12 = arith.constant dense<0.000000e+00> : vector<16x16xf32>
    %35 = tpu.matmul %34, %31, %cst_12 {dimension_numbers = #tpu.dot_dimension_numbers<[1], [0], [0], [1], [0, 0, 1, 1], [], []>} : vector<16x16xf32>, vector<16x16xf32>, vector<16x16xf32> -> vector<16x16xf32>
    %36 = arith.addf %33, %35 : vector<16x16xf32>
    %c48 = arith.constant 48 : index
    %c0_13 = arith.constant 0 : index
    %37 = vector.load %arg2[%c48, %c0_13] : memref<680x128xf32, #tpu.memory_space<vmem>>, vector<1x16xf32>
    %38 = vector.broadcast %37 : vector<1x16xf32> to vector<16x16xf32>
    %39 = arith.addf %32, %38 : vector<16x16xf32>
    %c56 = arith.constant 56 : index
    %c0_14 = arith.constant 0 : index
    %40 = vector.load %arg2[%c56, %c0_14] : memref<680x128xf32, #tpu.memory_space<vmem>>, vector<1x16xf32>
    %41 = vector.broadcast %40 : vector<1x16xf32> to vector<16x16xf32>
    %42 = arith.addf %36, %41 : vector<16x16xf32>
    %cst_15 = arith.constant 0.000000e+00 : f32
    %43 = vector.broadcast %cst_15 : f32 to vector<16x16xf32>
    %44 = arith.cmpf ogt, %39, %43 : vector<16x16xf32>
    %45 = arith.extui %44 : vector<16x16xi1> to vector<16x16xi32>
    %46 = arith.sitofp %45 : vector<16x16xi32> to vector<16x16xf32>
    %47 = arith.mulf %39, %46 : vector<16x16xf32>
    %48 = arith.mulf %42, %46 : vector<16x16xf32>
    %c64 = arith.constant 64 : index
    %c0_16 = arith.constant 0 : index
    %49 = vector.load %arg2[%c64, %c0_16] : memref<680x128xf32, #tpu.memory_space<vmem>>, vector<16x32xf32>
    %c80 = arith.constant 80 : index
    %c0_17 = arith.constant 0 : index
    %50 = vector.load %arg2[%c80, %c0_17] : memref<680x128xf32, #tpu.memory_space<vmem>>, vector<16x32xf32>
    %c96 = arith.constant 96 : index
    %c0_18 = arith.constant 0 : index
    %51 = vector.load %arg2[%c96, %c0_18] : memref<680x128xf32, #tpu.memory_space<vmem>>, vector<16x32xf32>
    %cst_19 = arith.constant dense<0.000000e+00> : vector<16x32xf32>
    %52 = tpu.matmul %47, %49, %cst_19 {dimension_numbers = #tpu.dot_dimension_numbers<[1], [0], [0], [1], [0, 0, 1, 1], [], []>} : vector<16x16xf32>, vector<16x32xf32>, vector<16x32xf32> -> vector<16x32xf32>
    %cst_20 = arith.constant dense<0.000000e+00> : vector<16x32xf32>
    %53 = tpu.matmul %48, %50, %cst_20 {dimension_numbers = #tpu.dot_dimension_numbers<[1], [0], [0], [1], [0, 0, 1, 1], [], []>} : vector<16x16xf32>, vector<16x32xf32>, vector<16x32xf32> -> vector<16x32xf32>
    %54 = arith.mulf %47, %47 : vector<16x16xf32>
    %cst_21 = arith.constant dense<0.000000e+00> : vector<16x32xf32>
    %55 = tpu.matmul %54, %51, %cst_21 {dimension_numbers = #tpu.dot_dimension_numbers<[1], [0], [0], [1], [0, 0, 1, 1], [], []>} : vector<16x16xf32>, vector<16x32xf32>, vector<16x32xf32> -> vector<16x32xf32>
    %56 = arith.addf %53, %55 : vector<16x32xf32>
    %c112 = arith.constant 112 : index
    %c0_22 = arith.constant 0 : index
    %57 = vector.load %arg2[%c112, %c0_22] : memref<680x128xf32, #tpu.memory_space<vmem>>, vector<1x32xf32>
    %58 = vector.broadcast %57 : vector<1x32xf32> to vector<16x32xf32>
    %59 = arith.addf %52, %58 : vector<16x32xf32>
    %c120 = arith.constant 120 : index
    %c0_23 = arith.constant 0 : index
    %60 = vector.load %arg2[%c120, %c0_23] : memref<680x128xf32, #tpu.memory_space<vmem>>, vector<1x32xf32>
    %61 = vector.broadcast %60 : vector<1x32xf32> to vector<16x32xf32>
    %62 = arith.addf %56, %61 : vector<16x32xf32>
    %c128 = arith.constant 128 : index
    %c0_24 = arith.constant 0 : index
    %63 = vector.load %arg2[%c128, %c0_24] : memref<680x128xf32, #tpu.memory_space<vmem>>, vector<8x32xf32>
    %64 = tpu.concatenate %63, %63 in 0 : vector<8x32xf32>, vector<8x32xf32> -> vector<16x32xf32>
    %65 = arith.addf %59, %64 : vector<16x32xf32>
    %c136 = arith.constant 136 : index
    %c0_25 = arith.constant 0 : index
    %66 = vector.load %arg2[%c136, %c0_25] : memref<680x128xf32, #tpu.memory_space<vmem>>, vector<32x96xf32>
    %c168 = arith.constant 168 : index
    %c0_26 = arith.constant 0 : index
    %67 = vector.load %arg2[%c168, %c0_26] : memref<680x128xf32, #tpu.memory_space<vmem>>, vector<32x96xf32>
    %c200 = arith.constant 200 : index
    %c0_27 = arith.constant 0 : index
    %68 = vector.load %arg2[%c200, %c0_27] : memref<680x128xf32, #tpu.memory_space<vmem>>, vector<32x96xf32>
    %cst_28 = arith.constant dense<0.000000e+00> : vector<16x96xf32>
    %69 = tpu.matmul %65, %66, %cst_28 {dimension_numbers = #tpu.dot_dimension_numbers<[1], [0], [0], [1], [0, 0, 1, 1], [], []>} : vector<16x32xf32>, vector<32x96xf32>, vector<16x96xf32> -> vector<16x96xf32>
    %cst_29 = arith.constant dense<0.000000e+00> : vector<16x96xf32>
    %70 = tpu.matmul %62, %67, %cst_29 {dimension_numbers = #tpu.dot_dimension_numbers<[1], [0], [0], [1], [0, 0, 1, 1], [], []>} : vector<16x32xf32>, vector<32x96xf32>, vector<16x96xf32> -> vector<16x96xf32>
    %71 = arith.mulf %65, %65 : vector<16x32xf32>
    %cst_30 = arith.constant dense<0.000000e+00> : vector<16x96xf32>
    %72 = tpu.matmul %71, %68, %cst_30 {dimension_numbers = #tpu.dot_dimension_numbers<[1], [0], [0], [1], [0, 0, 1, 1], [], []>} : vector<16x32xf32>, vector<32x96xf32>, vector<16x96xf32> -> vector<16x96xf32>
    %73 = arith.addf %70, %72 : vector<16x96xf32>
    %74 = vector.extract_strided_slice %69 {offsets = [0, 0], sizes = [16, 32], strides = [1, 1]} : vector<16x96xf32> to vector<16x32xf32>
    %cst_31 = arith.constant 0.176776692 : f32
    %75 = vector.broadcast %cst_31 : f32 to vector<16x32xf32>
    %76 = arith.mulf %74, %75 : vector<16x32xf32>
    %77 = vector.extract_strided_slice %69 {offsets = [0, 32], sizes = [16, 32], strides = [1, 1]} : vector<16x96xf32> to vector<16x32xf32>
    %78 = vector.extract_strided_slice %69 {offsets = [0, 64], sizes = [16, 32], strides = [1, 1]} : vector<16x96xf32> to vector<16x32xf32>
    %79 = vector.extract_strided_slice %73 {offsets = [0, 0], sizes = [16, 32], strides = [1, 1]} : vector<16x96xf32> to vector<16x32xf32>
    %cst_32 = arith.constant 3.125000e-02 : f32
    %80 = vector.broadcast %cst_32 : f32 to vector<16x32xf32>
    %81 = arith.mulf %79, %80 : vector<16x32xf32>
    %82 = vector.extract_strided_slice %73 {offsets = [0, 32], sizes = [16, 32], strides = [1, 1]} : vector<16x96xf32> to vector<16x32xf32>
    %83 = vector.extract_strided_slice %73 {offsets = [0, 64], sizes = [16, 32], strides = [1, 1]} : vector<16x96xf32> to vector<16x32xf32>
    %84 = arith.mulf %76, %76 : vector<16x32xf32>
    %85 = arith.mulf %77, %77 : vector<16x32xf32>
    %86 = arith.addf %82, %85 : vector<16x32xf32>
    %87 = arith.mulf %78, %78 : vector<16x32xf32>
    %88 = arith.addf %83, %87 : vector<16x32xf32>
    %89 = vector.extract_strided_slice %76 {offsets = [0, 0], sizes = [16, 8], strides = [1, 1]} : vector<16x32xf32> to vector<16x8xf32>
    %90 = vector.extract_strided_slice %77 {offsets = [0, 0], sizes = [16, 8], strides = [1, 1]} : vector<16x32xf32> to vector<16x8xf32>
    %91 = vector.extract_strided_slice %78 {offsets = [0, 0], sizes = [16, 8], strides = [1, 1]} : vector<16x32xf32> to vector<16x8xf32>
    %92 = vector.extract_strided_slice %81 {offsets = [0, 0], sizes = [16, 8], strides = [1, 1]} : vector<16x32xf32> to vector<16x8xf32>
    %93 = vector.extract_strided_slice %82 {offsets = [0, 0], sizes = [16, 8], strides = [1, 1]} : vector<16x32xf32> to vector<16x8xf32>
    %94 = vector.extract_strided_slice %83 {offsets = [0, 0], sizes = [16, 8], strides = [1, 1]} : vector<16x32xf32> to vector<16x8xf32>
    %95 = vector.extract_strided_slice %84 {offsets = [0, 0], sizes = [16, 8], strides = [1, 1]} : vector<16x32xf32> to vector<16x8xf32>
    %96 = vector.extract_strided_slice %86 {offsets = [0, 0], sizes = [16, 8], strides = [1, 1]} : vector<16x32xf32> to vector<16x8xf32>
    %97 = vector.extract_strided_slice %88 {offsets = [0, 0], sizes = [16, 8], strides = [1, 1]} : vector<16x32xf32> to vector<16x8xf32>
    %cst_33 = arith.constant dense<0.000000e+00> : vector<16x16xf32>
    %98 = tpu.matmul %89, %90, %cst_33 {dimension_numbers = #tpu.dot_dimension_numbers<[1], [1], [0], [0], [0, 0, 1, 0], [], []>} : vector<16x8xf32>, vector<16x8xf32>, vector<16x16xf32> -> vector<16x16xf32>
    %cst_34 = arith.constant -1.000000e+30 : f32
    %99 = vector.broadcast %cst_34 : f32 to vector<16x16xf32>
    %100 = arith.select %26, %98, %99 : vector<16x16xi1>, vector<16x16xf32>
    %cst_35 = arith.constant dense<0.000000e+00> : vector<16x16xf32>
    %101 = tpu.matmul %92, %96, %cst_35 {dimension_numbers = #tpu.dot_dimension_numbers<[1], [1], [0], [0], [0, 0, 1, 0], [], []>} : vector<16x8xf32>, vector<16x8xf32>, vector<16x16xf32> -> vector<16x16xf32>
    %cst_36 = arith.constant dense<0.000000e+00> : vector<16x16xf32>
    %102 = tpu.matmul %95, %93, %cst_36 {dimension_numbers = #tpu.dot_dimension_numbers<[1], [1], [0], [0], [0, 0, 1, 0], [], []>} : vector<16x8xf32>, vector<16x8xf32>, vector<16x16xf32> -> vector<16x16xf32>
    %103 = arith.addf %101, %102 : vector<16x16xf32>
    %cst_37 = arith.constant dense<0xFF800000> : vector<16xf32>
    %104 = vector.multi_reduction <maximumf>, %100, %cst_37 [1] : vector<16x16xf32> to vector<16xf32>
    %105 = vector.shape_cast %104 : vector<16xf32> to vector<16x1xf32>
    %106 = vector.broadcast %105 : vector<16x1xf32> to vector<16x16xf32>
    %107 = arith.subf %100, %106 : vector<16x16xf32>
    %108 = math.exp %107 : vector<16x16xf32>
    %cst_38 = arith.constant dense<0.000000e+00> : vector<16xf32>
    %109 = vector.multi_reduction <add>, %108, %cst_38 [1] : vector<16x16xf32> to vector<16xf32>
    %110 = vector.shape_cast %109 : vector<16xf32> to vector<16x1xf32>
    %111 = vector.broadcast %110 : vector<16x1xf32> to vector<16x16xf32>
    %112 = arith.divf %108, %111 : vector<16x16xf32>
    %cst_39 = arith.constant 1.000000e+00 : f32
    %113 = vector.broadcast %cst_39 : f32 to vector<16x16xf32>
    %114 = arith.subf %113, %112 : vector<16x16xf32>
    %115 = arith.mulf %112, %114 : vector<16x16xf32>
    %116 = arith.mulf %115, %115 : vector<16x16xf32>
    %117 = arith.mulf %116, %103 : vector<16x16xf32>
    %cst_40 = arith.constant dense<0.000000e+00> : vector<16x8xf32>
    %118 = tpu.matmul %112, %91, %cst_40 {dimension_numbers = #tpu.dot_dimension_numbers<[1], [0], [0], [1], [0, 0, 1, 1], [], []>} : vector<16x16xf32>, vector<16x8xf32>, vector<16x8xf32> -> vector<16x8xf32>
    %cst_41 = arith.constant dense<0.000000e+00> : vector<16x8xf32>
    %119 = tpu.matmul %117, %97, %cst_41 {dimension_numbers = #tpu.dot_dimension_numbers<[1], [0], [0], [1], [0, 0, 1, 1], [], []>} : vector<16x16xf32>, vector<16x8xf32>, vector<16x8xf32> -> vector<16x8xf32>
    %120 = arith.mulf %112, %112 : vector<16x16xf32>
    %cst_42 = arith.constant dense<0.000000e+00> : vector<16x8xf32>
    %121 = tpu.matmul %120, %94, %cst_42 {dimension_numbers = #tpu.dot_dimension_numbers<[1], [0], [0], [1], [0, 0, 1, 1], [], []>} : vector<16x16xf32>, vector<16x8xf32>, vector<16x8xf32> -> vector<16x8xf32>
    %122 = arith.addf %119, %121 : vector<16x8xf32>
    %123 = vector.extract_strided_slice %76 {offsets = [0, 8], sizes = [16, 8], strides = [1, 1]} : vector<16x32xf32> to vector<16x8xf32>
    %124 = vector.extract_strided_slice %77 {offsets = [0, 8], sizes = [16, 8], strides = [1, 1]} : vector<16x32xf32> to vector<16x8xf32>
    %125 = vector.extract_strided_slice %78 {offsets = [0, 8], sizes = [16, 8], strides = [1, 1]} : vector<16x32xf32> to vector<16x8xf32>
    %126 = vector.extract_strided_slice %81 {offsets = [0, 8], sizes = [16, 8], strides = [1, 1]} : vector<16x32xf32> to vector<16x8xf32>
    %127 = vector.extract_strided_slice %82 {offsets = [0, 8], sizes = [16, 8], strides = [1, 1]} : vector<16x32xf32> to vector<16x8xf32>
    %128 = vector.extract_strided_slice %83 {offsets = [0, 8], sizes = [16, 8], strides = [1, 1]} : vector<16x32xf32> to vector<16x8xf32>
    %129 = vector.extract_strided_slice %84 {offsets = [0, 8], sizes = [16, 8], strides = [1, 1]} : vector<16x32xf32> to vector<16x8xf32>
    %130 = vector.extract_strided_slice %86 {offsets = [0, 8], sizes = [16, 8], strides = [1, 1]} : vector<16x32xf32> to vector<16x8xf32>
    %131 = vector.extract_strided_slice %88 {offsets = [0, 8], sizes = [16, 8], strides = [1, 1]} : vector<16x32xf32> to vector<16x8xf32>
    %cst_43 = arith.constant dense<0.000000e+00> : vector<16x16xf32>
    %132 = tpu.matmul %123, %124, %cst_43 {dimension_numbers = #tpu.dot_dimension_numbers<[1], [1], [0], [0], [0, 0, 1, 0], [], []>} : vector<16x8xf32>, vector<16x8xf32>, vector<16x16xf32> -> vector<16x16xf32>
    %cst_44 = arith.constant -1.000000e+30 : f32
    %133 = vector.broadcast %cst_44 : f32 to vector<16x16xf32>
    %134 = arith.select %26, %132, %133 : vector<16x16xi1>, vector<16x16xf32>
    %cst_45 = arith.constant dense<0.000000e+00> : vector<16x16xf32>
    %135 = tpu.matmul %126, %130, %cst_45 {dimension_numbers = #tpu.dot_dimension_numbers<[1], [1], [0], [0], [0, 0, 1, 0], [], []>} : vector<16x8xf32>, vector<16x8xf32>, vector<16x16xf32> -> vector<16x16xf32>
    %cst_46 = arith.constant dense<0.000000e+00> : vector<16x16xf32>
    %136 = tpu.matmul %129, %127, %cst_46 {dimension_numbers = #tpu.dot_dimension_numbers<[1], [1], [0], [0], [0, 0, 1, 0], [], []>} : vector<16x8xf32>, vector<16x8xf32>, vector<16x16xf32> -> vector<16x16xf32>
    %137 = arith.addf %135, %136 : vector<16x16xf32>
    %cst_47 = arith.constant dense<0xFF800000> : vector<16xf32>
    %138 = vector.multi_reduction <maximumf>, %134, %cst_47 [1] : vector<16x16xf32> to vector<16xf32>
    %139 = vector.shape_cast %138 : vector<16xf32> to vector<16x1xf32>
    %140 = vector.broadcast %139 : vector<16x1xf32> to vector<16x16xf32>
    %141 = arith.subf %134, %140 : vector<16x16xf32>
    %142 = math.exp %141 : vector<16x16xf32>
    %cst_48 = arith.constant dense<0.000000e+00> : vector<16xf32>
    %143 = vector.multi_reduction <add>, %142, %cst_48 [1] : vector<16x16xf32> to vector<16xf32>
    %144 = vector.shape_cast %143 : vector<16xf32> to vector<16x1xf32>
    %145 = vector.broadcast %144 : vector<16x1xf32> to vector<16x16xf32>
    %146 = arith.divf %142, %145 : vector<16x16xf32>
    %cst_49 = arith.constant 1.000000e+00 : f32
    %147 = vector.broadcast %cst_49 : f32 to vector<16x16xf32>
    %148 = arith.subf %147, %146 : vector<16x16xf32>
    %149 = arith.mulf %146, %148 : vector<16x16xf32>
    %150 = arith.mulf %149, %149 : vector<16x16xf32>
    %151 = arith.mulf %150, %137 : vector<16x16xf32>
    %cst_50 = arith.constant dense<0.000000e+00> : vector<16x8xf32>
    %152 = tpu.matmul %146, %125, %cst_50 {dimension_numbers = #tpu.dot_dimension_numbers<[1], [0], [0], [1], [0, 0, 1, 1], [], []>} : vector<16x16xf32>, vector<16x8xf32>, vector<16x8xf32> -> vector<16x8xf32>
    %cst_51 = arith.constant dense<0.000000e+00> : vector<16x8xf32>
    %153 = tpu.matmul %151, %131, %cst_51 {dimension_numbers = #tpu.dot_dimension_numbers<[1], [0], [0], [1], [0, 0, 1, 1], [], []>} : vector<16x16xf32>, vector<16x8xf32>, vector<16x8xf32> -> vector<16x8xf32>
    %154 = arith.mulf %146, %146 : vector<16x16xf32>
    %cst_52 = arith.constant dense<0.000000e+00> : vector<16x8xf32>
    %155 = tpu.matmul %154, %128, %cst_52 {dimension_numbers = #tpu.dot_dimension_numbers<[1], [0], [0], [1], [0, 0, 1, 1], [], []>} : vector<16x16xf32>, vector<16x8xf32>, vector<16x8xf32> -> vector<16x8xf32>
    %156 = arith.addf %153, %155 : vector<16x8xf32>
    %157 = vector.extract_strided_slice %76 {offsets = [0, 16], sizes = [16, 8], strides = [1, 1]} : vector<16x32xf32> to vector<16x8xf32>
    %158 = vector.extract_strided_slice %77 {offsets = [0, 16], sizes = [16, 8], strides = [1, 1]} : vector<16x32xf32> to vector<16x8xf32>
    %159 = vector.extract_strided_slice %78 {offsets = [0, 16], sizes = [16, 8], strides = [1, 1]} : vector<16x32xf32> to vector<16x8xf32>
    %160 = vector.extract_strided_slice %81 {offsets = [0, 16], sizes = [16, 8], strides = [1, 1]} : vector<16x32xf32> to vector<16x8xf32>
    %161 = vector.extract_strided_slice %82 {offsets = [0, 16], sizes = [16, 8], strides = [1, 1]} : vector<16x32xf32> to vector<16x8xf32>
    %162 = vector.extract_strided_slice %83 {offsets = [0, 16], sizes = [16, 8], strides = [1, 1]} : vector<16x32xf32> to vector<16x8xf32>
    %163 = vector.extract_strided_slice %84 {offsets = [0, 16], sizes = [16, 8], strides = [1, 1]} : vector<16x32xf32> to vector<16x8xf32>
    %164 = vector.extract_strided_slice %86 {offsets = [0, 16], sizes = [16, 8], strides = [1, 1]} : vector<16x32xf32> to vector<16x8xf32>
    %165 = vector.extract_strided_slice %88 {offsets = [0, 16], sizes = [16, 8], strides = [1, 1]} : vector<16x32xf32> to vector<16x8xf32>
    %cst_53 = arith.constant dense<0.000000e+00> : vector<16x16xf32>
    %166 = tpu.matmul %157, %158, %cst_53 {dimension_numbers = #tpu.dot_dimension_numbers<[1], [1], [0], [0], [0, 0, 1, 0], [], []>} : vector<16x8xf32>, vector<16x8xf32>, vector<16x16xf32> -> vector<16x16xf32>
    %cst_54 = arith.constant -1.000000e+30 : f32
    %167 = vector.broadcast %cst_54 : f32 to vector<16x16xf32>
    %168 = arith.select %26, %166, %167 : vector<16x16xi1>, vector<16x16xf32>
    %cst_55 = arith.constant dense<0.000000e+00> : vector<16x16xf32>
    %169 = tpu.matmul %160, %164, %cst_55 {dimension_numbers = #tpu.dot_dimension_numbers<[1], [1], [0], [0], [0, 0, 1, 0], [], []>} : vector<16x8xf32>, vector<16x8xf32>, vector<16x16xf32> -> vector<16x16xf32>
    %cst_56 = arith.constant dense<0.000000e+00> : vector<16x16xf32>
    %170 = tpu.matmul %163, %161, %cst_56 {dimension_numbers = #tpu.dot_dimension_numbers<[1], [1], [0], [0], [0, 0, 1, 0], [], []>} : vector<16x8xf32>, vector<16x8xf32>, vector<16x16xf32> -> vector<16x16xf32>
    %171 = arith.addf %169, %170 : vector<16x16xf32>
    %cst_57 = arith.constant dense<0xFF800000> : vector<16xf32>
    %172 = vector.multi_reduction <maximumf>, %168, %cst_57 [1] : vector<16x16xf32> to vector<16xf32>
    %173 = vector.shape_cast %172 : vector<16xf32> to vector<16x1xf32>
    %174 = vector.broadcast %173 : vector<16x1xf32> to vector<16x16xf32>
    %175 = arith.subf %168, %174 : vector<16x16xf32>
    %176 = math.exp %175 : vector<16x16xf32>
    %cst_58 = arith.constant dense<0.000000e+00> : vector<16xf32>
    %177 = vector.multi_reduction <add>, %176, %cst_58 [1] : vector<16x16xf32> to vector<16xf32>
    %178 = vector.shape_cast %177 : vector<16xf32> to vector<16x1xf32>
    %179 = vector.broadcast %178 : vector<16x1xf32> to vector<16x16xf32>
    %180 = arith.divf %176, %179 : vector<16x16xf32>
    %cst_59 = arith.constant 1.000000e+00 : f32
    %181 = vector.broadcast %cst_59 : f32 to vector<16x16xf32>
    %182 = arith.subf %181, %180 : vector<16x16xf32>
    %183 = arith.mulf %180, %182 : vector<16x16xf32>
    %184 = arith.mulf %183, %183 : vector<16x16xf32>
    %185 = arith.mulf %184, %171 : vector<16x16xf32>
    %cst_60 = arith.constant dense<0.000000e+00> : vector<16x8xf32>
    %186 = tpu.matmul %180, %159, %cst_60 {dimension_numbers = #tpu.dot_dimension_numbers<[1], [0], [0], [1], [0, 0, 1, 1], [], []>} : vector<16x16xf32>, vector<16x8xf32>, vector<16x8xf32> -> vector<16x8xf32>
    %cst_61 = arith.constant dense<0.000000e+00> : vector<16x8xf32>
    %187 = tpu.matmul %185, %165, %cst_61 {dimension_numbers = #tpu.dot_dimension_numbers<[1], [0], [0], [1], [0, 0, 1, 1], [], []>} : vector<16x16xf32>, vector<16x8xf32>, vector<16x8xf32> -> vector<16x8xf32>
    %188 = arith.mulf %180, %180 : vector<16x16xf32>
    %cst_62 = arith.constant dense<0.000000e+00> : vector<16x8xf32>
    %189 = tpu.matmul %188, %162, %cst_62 {dimension_numbers = #tpu.dot_dimension_numbers<[1], [0], [0], [1], [0, 0, 1, 1], [], []>} : vector<16x16xf32>, vector<16x8xf32>, vector<16x8xf32> -> vector<16x8xf32>
    %190 = arith.addf %187, %189 : vector<16x8xf32>
    %191 = vector.extract_strided_slice %76 {offsets = [0, 24], sizes = [16, 8], strides = [1, 1]} : vector<16x32xf32> to vector<16x8xf32>
    %192 = vector.extract_strided_slice %77 {offsets = [0, 24], sizes = [16, 8], strides = [1, 1]} : vector<16x32xf32> to vector<16x8xf32>
    %193 = vector.extract_strided_slice %78 {offsets = [0, 24], sizes = [16, 8], strides = [1, 1]} : vector<16x32xf32> to vector<16x8xf32>
    %194 = vector.extract_strided_slice %81 {offsets = [0, 24], sizes = [16, 8], strides = [1, 1]} : vector<16x32xf32> to vector<16x8xf32>
    %195 = vector.extract_strided_slice %82 {offsets = [0, 24], sizes = [16, 8], strides = [1, 1]} : vector<16x32xf32> to vector<16x8xf32>
    %196 = vector.extract_strided_slice %83 {offsets = [0, 24], sizes = [16, 8], strides = [1, 1]} : vector<16x32xf32> to vector<16x8xf32>
    %197 = vector.extract_strided_slice %84 {offsets = [0, 24], sizes = [16, 8], strides = [1, 1]} : vector<16x32xf32> to vector<16x8xf32>
    %198 = vector.extract_strided_slice %86 {offsets = [0, 24], sizes = [16, 8], strides = [1, 1]} : vector<16x32xf32> to vector<16x8xf32>
    %199 = vector.extract_strided_slice %88 {offsets = [0, 24], sizes = [16, 8], strides = [1, 1]} : vector<16x32xf32> to vector<16x8xf32>
    %cst_63 = arith.constant dense<0.000000e+00> : vector<16x16xf32>
    %200 = tpu.matmul %191, %192, %cst_63 {dimension_numbers = #tpu.dot_dimension_numbers<[1], [1], [0], [0], [0, 0, 1, 0], [], []>} : vector<16x8xf32>, vector<16x8xf32>, vector<16x16xf32> -> vector<16x16xf32>
    %cst_64 = arith.constant -1.000000e+30 : f32
    %201 = vector.broadcast %cst_64 : f32 to vector<16x16xf32>
    %202 = arith.select %26, %200, %201 : vector<16x16xi1>, vector<16x16xf32>
    %cst_65 = arith.constant dense<0.000000e+00> : vector<16x16xf32>
    %203 = tpu.matmul %194, %198, %cst_65 {dimension_numbers = #tpu.dot_dimension_numbers<[1], [1], [0], [0], [0, 0, 1, 0], [], []>} : vector<16x8xf32>, vector<16x8xf32>, vector<16x16xf32> -> vector<16x16xf32>
    %cst_66 = arith.constant dense<0.000000e+00> : vector<16x16xf32>
    %204 = tpu.matmul %197, %195, %cst_66 {dimension_numbers = #tpu.dot_dimension_numbers<[1], [1], [0], [0], [0, 0, 1, 0], [], []>} : vector<16x8xf32>, vector<16x8xf32>, vector<16x16xf32> -> vector<16x16xf32>
    %205 = arith.addf %203, %204 : vector<16x16xf32>
    %cst_67 = arith.constant dense<0xFF800000> : vector<16xf32>
    %206 = vector.multi_reduction <maximumf>, %202, %cst_67 [1] : vector<16x16xf32> to vector<16xf32>
    %207 = vector.shape_cast %206 : vector<16xf32> to vector<16x1xf32>
    %208 = vector.broadcast %207 : vector<16x1xf32> to vector<16x16xf32>
    %209 = arith.subf %202, %208 : vector<16x16xf32>
    %210 = math.exp %209 : vector<16x16xf32>
    %cst_68 = arith.constant dense<0.000000e+00> : vector<16xf32>
    %211 = vector.multi_reduction <add>, %210, %cst_68 [1] : vector<16x16xf32> to vector<16xf32>
    %212 = vector.shape_cast %211 : vector<16xf32> to vector<16x1xf32>
    %213 = vector.broadcast %212 : vector<16x1xf32> to vector<16x16xf32>
    %214 = arith.divf %210, %213 : vector<16x16xf32>
    %cst_69 = arith.constant 1.000000e+00 : f32
    %215 = vector.broadcast %cst_69 : f32 to vector<16x16xf32>
    %216 = arith.subf %215, %214 : vector<16x16xf32>
    %217 = arith.mulf %214, %216 : vector<16x16xf32>
    %218 = arith.mulf %217, %217 : vector<16x16xf32>
    %219 = arith.mulf %218, %205 : vector<16x16xf32>
    %cst_70 = arith.constant dense<0.000000e+00> : vector<16x8xf32>
    %220 = tpu.matmul %214, %193, %cst_70 {dimension_numbers = #tpu.dot_dimension_numbers<[1], [0], [0], [1], [0, 0, 1, 1], [], []>} : vector<16x16xf32>, vector<16x8xf32>, vector<16x8xf32> -> vector<16x8xf32>
    %cst_71 = arith.constant dense<0.000000e+00> : vector<16x8xf32>
    %221 = tpu.matmul %219, %199, %cst_71 {dimension_numbers = #tpu.dot_dimension_numbers<[1], [0], [0], [1], [0, 0, 1, 1], [], []>} : vector<16x16xf32>, vector<16x8xf32>, vector<16x8xf32> -> vector<16x8xf32>
    %222 = arith.mulf %214, %214 : vector<16x16xf32>
    %cst_72 = arith.constant dense<0.000000e+00> : vector<16x8xf32>
    %223 = tpu.matmul %222, %196, %cst_72 {dimension_numbers = #tpu.dot_dimension_numbers<[1], [0], [0], [1], [0, 0, 1, 1], [], []>} : vector<16x16xf32>, vector<16x8xf32>, vector<16x8xf32> -> vector<16x8xf32>
    %224 = arith.addf %221, %223 : vector<16x8xf32>
    %225 = tpu.concatenate %118, %152, %186, %220 in 1 : vector<16x8xf32>, vector<16x8xf32>, vector<16x8xf32>, vector<16x8xf32> -> vector<16x32xf32>
    %226 = tpu.concatenate %122, %156, %190, %224 in 1 : vector<16x8xf32>, vector<16x8xf32>, vector<16x8xf32>, vector<16x8xf32> -> vector<16x32xf32>
    %227 = arith.addf %65, %225 : vector<16x32xf32>
    %228 = arith.addf %62, %226 : vector<16x32xf32>
    %c232 = arith.constant 232 : index
    %c0_73 = arith.constant 0 : index
    %229 = vector.load %arg2[%c232, %c0_73] : memref<680x128xf32, #tpu.memory_space<vmem>>, vector<4x32xf32>
    %230 = vector.extract_strided_slice %229 {offsets = [0, 0], sizes = [1, 32], strides = [1, 1]} : vector<4x32xf32> to vector<1x32xf32>
    %231 = vector.extract_strided_slice %229 {offsets = [1, 0], sizes = [1, 32], strides = [1, 1]} : vector<4x32xf32> to vector<1x32xf32>
    %232 = vector.extract_strided_slice %229 {offsets = [2, 0], sizes = [1, 32], strides = [1, 1]} : vector<4x32xf32> to vector<1x32xf32>
    %233 = vector.extract_strided_slice %229 {offsets = [3, 0], sizes = [1, 32], strides = [1, 1]} : vector<4x32xf32> to vector<1x32xf32>
    %cst_74 = arith.constant dense<0.000000e+00> : vector<16xf32>
    %234 = vector.multi_reduction <add>, %227, %cst_74 [1] : vector<16x32xf32> to vector<16xf32>
    %235 = vector.shape_cast %234 : vector<16xf32> to vector<16x1xf32>
    %cst_75 = arith.constant 3.200000e+01 : f32
    %236 = vector.broadcast %cst_75 : f32 to vector<16x1xf32>
    %237 = arith.divf %235, %236 : vector<16x1xf32>
    %238 = vector.broadcast %237 : vector<16x1xf32> to vector<16x32xf32>
    %239 = arith.subf %227, %238 : vector<16x32xf32>
    %240 = arith.mulf %239, %239 : vector<16x32xf32>
    %cst_76 = arith.constant dense<0.000000e+00> : vector<16xf32>
    %241 = vector.multi_reduction <add>, %240, %cst_76 [1] : vector<16x32xf32> to vector<16xf32>
    %242 = vector.shape_cast %241 : vector<16xf32> to vector<16x1xf32>
    %cst_77 = arith.constant 3.200000e+01 : f32
    %243 = vector.broadcast %cst_77 : f32 to vector<16x1xf32>
    %244 = arith.divf %242, %243 : vector<16x1xf32>
    %cst_78 = arith.constant 9.99999974E-6 : f32
    %245 = vector.broadcast %cst_78 : f32 to vector<16x1xf32>
    %246 = arith.addf %244, %245 : vector<16x1xf32>
    %247 = math.rsqrt %246 : vector<16x1xf32>
    %248 = vector.broadcast %237 : vector<16x1xf32> to vector<16x32xf32>
    %249 = arith.subf %227, %248 : vector<16x32xf32>
    %250 = vector.broadcast %247 : vector<16x1xf32> to vector<16x32xf32>
    %251 = arith.mulf %249, %250 : vector<16x32xf32>
    %252 = vector.broadcast %230 : vector<1x32xf32> to vector<16x32xf32>
    %253 = arith.mulf %251, %252 : vector<16x32xf32>
    %254 = vector.broadcast %232 : vector<1x32xf32> to vector<16x32xf32>
    %255 = arith.addf %253, %254 : vector<16x32xf32>
    %256 = arith.mulf %247, %247 : vector<16x1xf32>
    %257 = vector.broadcast %256 : vector<16x1xf32> to vector<16x32xf32>
    %258 = arith.mulf %228, %257 : vector<16x32xf32>
    %259 = arith.mulf %230, %230 : vector<1x32xf32>
    %260 = arith.addf %259, %231 : vector<1x32xf32>
    %261 = vector.broadcast %260 : vector<1x32xf32> to vector<16x32xf32>
    %262 = arith.mulf %258, %261 : vector<16x32xf32>
    %263 = arith.mulf %251, %251 : vector<16x32xf32>
    %264 = vector.broadcast %231 : vector<1x32xf32> to vector<16x32xf32>
    %265 = arith.mulf %263, %264 : vector<16x32xf32>
    %266 = arith.addf %262, %265 : vector<16x32xf32>
    %267 = vector.broadcast %233 : vector<1x32xf32> to vector<16x32xf32>
    %268 = arith.addf %266, %267 : vector<16x32xf32>
    %c240 = arith.constant 240 : index
    %c0_79 = arith.constant 0 : index
    %269 = vector.load %arg2[%c240, %c0_79] : memref<680x128xf32, #tpu.memory_space<vmem>>, vector<32x32xf32>
    %c272 = arith.constant 272 : index
    %c0_80 = arith.constant 0 : index
    %270 = vector.load %arg2[%c272, %c0_80] : memref<680x128xf32, #tpu.memory_space<vmem>>, vector<32x32xf32>
    %c304 = arith.constant 304 : index
    %c0_81 = arith.constant 0 : index
    %271 = vector.load %arg2[%c304, %c0_81] : memref<680x128xf32, #tpu.memory_space<vmem>>, vector<32x32xf32>
    %cst_82 = arith.constant dense<0.000000e+00> : vector<16x32xf32>
    %272 = tpu.matmul %255, %269, %cst_82 {dimension_numbers = #tpu.dot_dimension_numbers<[1], [0], [0], [1], [0, 0, 1, 1], [], []>} : vector<16x32xf32>, vector<32x32xf32>, vector<16x32xf32> -> vector<16x32xf32>
    %cst_83 = arith.constant dense<0.000000e+00> : vector<16x32xf32>
    %273 = tpu.matmul %268, %270, %cst_83 {dimension_numbers = #tpu.dot_dimension_numbers<[1], [0], [0], [1], [0, 0, 1, 1], [], []>} : vector<16x32xf32>, vector<32x32xf32>, vector<16x32xf32> -> vector<16x32xf32>
    %274 = arith.mulf %255, %255 : vector<16x32xf32>
    %cst_84 = arith.constant dense<0.000000e+00> : vector<16x32xf32>
    %275 = tpu.matmul %274, %271, %cst_84 {dimension_numbers = #tpu.dot_dimension_numbers<[1], [0], [0], [1], [0, 0, 1, 1], [], []>} : vector<16x32xf32>, vector<32x32xf32>, vector<16x32xf32> -> vector<16x32xf32>
    %276 = arith.addf %273, %275 : vector<16x32xf32>
    %c336 = arith.constant 336 : index
    %c0_85 = arith.constant 0 : index
    %277 = vector.load %arg2[%c336, %c0_85] : memref<680x128xf32, #tpu.memory_space<vmem>>, vector<1x32xf32>
    %278 = vector.broadcast %277 : vector<1x32xf32> to vector<16x32xf32>
    %279 = arith.addf %272, %278 : vector<16x32xf32>
    %c344 = arith.constant 344 : index
    %c0_86 = arith.constant 0 : index
    %280 = vector.load %arg2[%c344, %c0_86] : memref<680x128xf32, #tpu.memory_space<vmem>>, vector<1x32xf32>
    %281 = vector.broadcast %280 : vector<1x32xf32> to vector<16x32xf32>
    %282 = arith.addf %276, %281 : vector<16x32xf32>
    %cst_87 = arith.constant 0.000000e+00 : f32
    %283 = vector.broadcast %cst_87 : f32 to vector<16x32xf32>
    %284 = arith.cmpf ogt, %279, %283 : vector<16x32xf32>
    %285 = arith.extui %284 : vector<16x32xi1> to vector<16x32xi32>
    %286 = arith.sitofp %285 : vector<16x32xi32> to vector<16x32xf32>
    %287 = arith.mulf %279, %286 : vector<16x32xf32>
    %288 = arith.mulf %282, %286 : vector<16x32xf32>
    %289 = arith.addf %255, %287 : vector<16x32xf32>
    %290 = arith.addf %268, %288 : vector<16x32xf32>
    %c352 = arith.constant 352 : index
    %c0_88 = arith.constant 0 : index
    %291 = vector.load %arg2[%c352, %c0_88] : memref<680x128xf32, #tpu.memory_space<vmem>>, vector<4x32xf32>
    %292 = vector.extract_strided_slice %291 {offsets = [0, 0], sizes = [1, 32], strides = [1, 1]} : vector<4x32xf32> to vector<1x32xf32>
    %293 = vector.extract_strided_slice %291 {offsets = [1, 0], sizes = [1, 32], strides = [1, 1]} : vector<4x32xf32> to vector<1x32xf32>
    %294 = vector.extract_strided_slice %291 {offsets = [2, 0], sizes = [1, 32], strides = [1, 1]} : vector<4x32xf32> to vector<1x32xf32>
    %295 = vector.extract_strided_slice %291 {offsets = [3, 0], sizes = [1, 32], strides = [1, 1]} : vector<4x32xf32> to vector<1x32xf32>
    %cst_89 = arith.constant dense<0.000000e+00> : vector<16xf32>
    %296 = vector.multi_reduction <add>, %289, %cst_89 [1] : vector<16x32xf32> to vector<16xf32>
    %297 = vector.shape_cast %296 : vector<16xf32> to vector<16x1xf32>
    %cst_90 = arith.constant 3.200000e+01 : f32
    %298 = vector.broadcast %cst_90 : f32 to vector<16x1xf32>
    %299 = arith.divf %297, %298 : vector<16x1xf32>
    %300 = vector.broadcast %299 : vector<16x1xf32> to vector<16x32xf32>
    %301 = arith.subf %289, %300 : vector<16x32xf32>
    %302 = arith.mulf %301, %301 : vector<16x32xf32>
    %cst_91 = arith.constant dense<0.000000e+00> : vector<16xf32>
    %303 = vector.multi_reduction <add>, %302, %cst_91 [1] : vector<16x32xf32> to vector<16xf32>
    %304 = vector.shape_cast %303 : vector<16xf32> to vector<16x1xf32>
    %cst_92 = arith.constant 3.200000e+01 : f32
    %305 = vector.broadcast %cst_92 : f32 to vector<16x1xf32>
    %306 = arith.divf %304, %305 : vector<16x1xf32>
    %cst_93 = arith.constant 9.99999974E-6 : f32
    %307 = vector.broadcast %cst_93 : f32 to vector<16x1xf32>
    %308 = arith.addf %306, %307 : vector<16x1xf32>
    %309 = math.rsqrt %308 : vector<16x1xf32>
    %310 = vector.broadcast %299 : vector<16x1xf32> to vector<16x32xf32>
    %311 = arith.subf %289, %310 : vector<16x32xf32>
    %312 = vector.broadcast %309 : vector<16x1xf32> to vector<16x32xf32>
    %313 = arith.mulf %311, %312 : vector<16x32xf32>
    %314 = vector.broadcast %292 : vector<1x32xf32> to vector<16x32xf32>
    %315 = arith.mulf %313, %314 : vector<16x32xf32>
    %316 = vector.broadcast %294 : vector<1x32xf32> to vector<16x32xf32>
    %317 = arith.addf %315, %316 : vector<16x32xf32>
    %318 = arith.mulf %309, %309 : vector<16x1xf32>
    %319 = vector.broadcast %318 : vector<16x1xf32> to vector<16x32xf32>
    %320 = arith.mulf %290, %319 : vector<16x32xf32>
    %321 = arith.mulf %292, %292 : vector<1x32xf32>
    %322 = arith.addf %321, %293 : vector<1x32xf32>
    %323 = vector.broadcast %322 : vector<1x32xf32> to vector<16x32xf32>
    %324 = arith.mulf %320, %323 : vector<16x32xf32>
    %325 = arith.mulf %313, %313 : vector<16x32xf32>
    %326 = vector.broadcast %293 : vector<1x32xf32> to vector<16x32xf32>
    %327 = arith.mulf %325, %326 : vector<16x32xf32>
    %328 = arith.addf %324, %327 : vector<16x32xf32>
    %329 = vector.broadcast %295 : vector<1x32xf32> to vector<16x32xf32>
    %330 = arith.addf %328, %329 : vector<16x32xf32>
    %c360 = arith.constant 360 : index
    %c0_94 = arith.constant 0 : index
    %331 = vector.load %arg2[%c360, %c0_94] : memref<680x128xf32, #tpu.memory_space<vmem>>, vector<32x96xf32>
    %c392 = arith.constant 392 : index
    %c0_95 = arith.constant 0 : index
    %332 = vector.load %arg2[%c392, %c0_95] : memref<680x128xf32, #tpu.memory_space<vmem>>, vector<32x96xf32>
    %c424 = arith.constant 424 : index
    %c0_96 = arith.constant 0 : index
    %333 = vector.load %arg2[%c424, %c0_96] : memref<680x128xf32, #tpu.memory_space<vmem>>, vector<32x96xf32>
    %cst_97 = arith.constant dense<0.000000e+00> : vector<16x96xf32>
    %334 = tpu.matmul %317, %331, %cst_97 {dimension_numbers = #tpu.dot_dimension_numbers<[1], [0], [0], [1], [0, 0, 1, 1], [], []>} : vector<16x32xf32>, vector<32x96xf32>, vector<16x96xf32> -> vector<16x96xf32>
    %cst_98 = arith.constant dense<0.000000e+00> : vector<16x96xf32>
    %335 = tpu.matmul %330, %332, %cst_98 {dimension_numbers = #tpu.dot_dimension_numbers<[1], [0], [0], [1], [0, 0, 1, 1], [], []>} : vector<16x32xf32>, vector<32x96xf32>, vector<16x96xf32> -> vector<16x96xf32>
    %336 = arith.mulf %317, %317 : vector<16x32xf32>
    %cst_99 = arith.constant dense<0.000000e+00> : vector<16x96xf32>
    %337 = tpu.matmul %336, %333, %cst_99 {dimension_numbers = #tpu.dot_dimension_numbers<[1], [0], [0], [1], [0, 0, 1, 1], [], []>} : vector<16x32xf32>, vector<32x96xf32>, vector<16x96xf32> -> vector<16x96xf32>
    %338 = arith.addf %335, %337 : vector<16x96xf32>
    %339 = vector.extract_strided_slice %334 {offsets = [0, 0], sizes = [16, 32], strides = [1, 1]} : vector<16x96xf32> to vector<16x32xf32>
    %cst_100 = arith.constant 0.176776692 : f32
    %340 = vector.broadcast %cst_100 : f32 to vector<16x32xf32>
    %341 = arith.mulf %339, %340 : vector<16x32xf32>
    %342 = vector.extract_strided_slice %334 {offsets = [0, 32], sizes = [16, 32], strides = [1, 1]} : vector<16x96xf32> to vector<16x32xf32>
    %343 = vector.extract_strided_slice %334 {offsets = [0, 64], sizes = [16, 32], strides = [1, 1]} : vector<16x96xf32> to vector<16x32xf32>
    %344 = vector.extract_strided_slice %338 {offsets = [0, 0], sizes = [16, 32], strides = [1, 1]} : vector<16x96xf32> to vector<16x32xf32>
    %cst_101 = arith.constant 3.125000e-02 : f32
    %345 = vector.broadcast %cst_101 : f32 to vector<16x32xf32>
    %346 = arith.mulf %344, %345 : vector<16x32xf32>
    %347 = vector.extract_strided_slice %338 {offsets = [0, 32], sizes = [16, 32], strides = [1, 1]} : vector<16x96xf32> to vector<16x32xf32>
    %348 = vector.extract_strided_slice %338 {offsets = [0, 64], sizes = [16, 32], strides = [1, 1]} : vector<16x96xf32> to vector<16x32xf32>
    %349 = arith.mulf %341, %341 : vector<16x32xf32>
    %350 = arith.mulf %342, %342 : vector<16x32xf32>
    %351 = arith.addf %347, %350 : vector<16x32xf32>
    %352 = arith.mulf %343, %343 : vector<16x32xf32>
    %353 = arith.addf %348, %352 : vector<16x32xf32>
    %354 = vector.extract_strided_slice %341 {offsets = [0, 0], sizes = [16, 8], strides = [1, 1]} : vector<16x32xf32> to vector<16x8xf32>
    %355 = vector.extract_strided_slice %342 {offsets = [0, 0], sizes = [16, 8], strides = [1, 1]} : vector<16x32xf32> to vector<16x8xf32>
    %356 = vector.extract_strided_slice %343 {offsets = [0, 0], sizes = [16, 8], strides = [1, 1]} : vector<16x32xf32> to vector<16x8xf32>
    %357 = vector.extract_strided_slice %346 {offsets = [0, 0], sizes = [16, 8], strides = [1, 1]} : vector<16x32xf32> to vector<16x8xf32>
    %358 = vector.extract_strided_slice %347 {offsets = [0, 0], sizes = [16, 8], strides = [1, 1]} : vector<16x32xf32> to vector<16x8xf32>
    %359 = vector.extract_strided_slice %348 {offsets = [0, 0], sizes = [16, 8], strides = [1, 1]} : vector<16x32xf32> to vector<16x8xf32>
    %360 = vector.extract_strided_slice %349 {offsets = [0, 0], sizes = [16, 8], strides = [1, 1]} : vector<16x32xf32> to vector<16x8xf32>
    %361 = vector.extract_strided_slice %351 {offsets = [0, 0], sizes = [16, 8], strides = [1, 1]} : vector<16x32xf32> to vector<16x8xf32>
    %362 = vector.extract_strided_slice %353 {offsets = [0, 0], sizes = [16, 8], strides = [1, 1]} : vector<16x32xf32> to vector<16x8xf32>
    %cst_102 = arith.constant dense<0.000000e+00> : vector<16x16xf32>
    %363 = tpu.matmul %354, %355, %cst_102 {dimension_numbers = #tpu.dot_dimension_numbers<[1], [1], [0], [0], [0, 0, 1, 0], [], []>} : vector<16x8xf32>, vector<16x8xf32>, vector<16x16xf32> -> vector<16x16xf32>
    %cst_103 = arith.constant -1.000000e+30 : f32
    %364 = vector.broadcast %cst_103 : f32 to vector<16x16xf32>
    %365 = arith.select %26, %363, %364 : vector<16x16xi1>, vector<16x16xf32>
    %cst_104 = arith.constant dense<0.000000e+00> : vector<16x16xf32>
    %366 = tpu.matmul %357, %361, %cst_104 {dimension_numbers = #tpu.dot_dimension_numbers<[1], [1], [0], [0], [0, 0, 1, 0], [], []>} : vector<16x8xf32>, vector<16x8xf32>, vector<16x16xf32> -> vector<16x16xf32>
    %cst_105 = arith.constant dense<0.000000e+00> : vector<16x16xf32>
    %367 = tpu.matmul %360, %358, %cst_105 {dimension_numbers = #tpu.dot_dimension_numbers<[1], [1], [0], [0], [0, 0, 1, 0], [], []>} : vector<16x8xf32>, vector<16x8xf32>, vector<16x16xf32> -> vector<16x16xf32>
    %368 = arith.addf %366, %367 : vector<16x16xf32>
    %cst_106 = arith.constant dense<0xFF800000> : vector<16xf32>
    %369 = vector.multi_reduction <maximumf>, %365, %cst_106 [1] : vector<16x16xf32> to vector<16xf32>
    %370 = vector.shape_cast %369 : vector<16xf32> to vector<16x1xf32>
    %371 = vector.broadcast %370 : vector<16x1xf32> to vector<16x16xf32>
    %372 = arith.subf %365, %371 : vector<16x16xf32>
    %373 = math.exp %372 : vector<16x16xf32>
    %cst_107 = arith.constant dense<0.000000e+00> : vector<16xf32>
    %374 = vector.multi_reduction <add>, %373, %cst_107 [1] : vector<16x16xf32> to vector<16xf32>
    %375 = vector.shape_cast %374 : vector<16xf32> to vector<16x1xf32>
    %376 = vector.broadcast %375 : vector<16x1xf32> to vector<16x16xf32>
    %377 = arith.divf %373, %376 : vector<16x16xf32>
    %cst_108 = arith.constant 1.000000e+00 : f32
    %378 = vector.broadcast %cst_108 : f32 to vector<16x16xf32>
    %379 = arith.subf %378, %377 : vector<16x16xf32>
    %380 = arith.mulf %377, %379 : vector<16x16xf32>
    %381 = arith.mulf %380, %380 : vector<16x16xf32>
    %382 = arith.mulf %381, %368 : vector<16x16xf32>
    %cst_109 = arith.constant dense<0.000000e+00> : vector<16x8xf32>
    %383 = tpu.matmul %377, %356, %cst_109 {dimension_numbers = #tpu.dot_dimension_numbers<[1], [0], [0], [1], [0, 0, 1, 1], [], []>} : vector<16x16xf32>, vector<16x8xf32>, vector<16x8xf32> -> vector<16x8xf32>
    %cst_110 = arith.constant dense<0.000000e+00> : vector<16x8xf32>
    %384 = tpu.matmul %382, %362, %cst_110 {dimension_numbers = #tpu.dot_dimension_numbers<[1], [0], [0], [1], [0, 0, 1, 1], [], []>} : vector<16x16xf32>, vector<16x8xf32>, vector<16x8xf32> -> vector<16x8xf32>
    %385 = arith.mulf %377, %377 : vector<16x16xf32>
    %cst_111 = arith.constant dense<0.000000e+00> : vector<16x8xf32>
    %386 = tpu.matmul %385, %359, %cst_111 {dimension_numbers = #tpu.dot_dimension_numbers<[1], [0], [0], [1], [0, 0, 1, 1], [], []>} : vector<16x16xf32>, vector<16x8xf32>, vector<16x8xf32> -> vector<16x8xf32>
    %387 = arith.addf %384, %386 : vector<16x8xf32>
    %388 = vector.extract_strided_slice %341 {offsets = [0, 8], sizes = [16, 8], strides = [1, 1]} : vector<16x32xf32> to vector<16x8xf32>
    %389 = vector.extract_strided_slice %342 {offsets = [0, 8], sizes = [16, 8], strides = [1, 1]} : vector<16x32xf32> to vector<16x8xf32>
    %390 = vector.extract_strided_slice %343 {offsets = [0, 8], sizes = [16, 8], strides = [1, 1]} : vector<16x32xf32> to vector<16x8xf32>
    %391 = vector.extract_strided_slice %346 {offsets = [0, 8], sizes = [16, 8], strides = [1, 1]} : vector<16x32xf32> to vector<16x8xf32>
    %392 = vector.extract_strided_slice %347 {offsets = [0, 8], sizes = [16, 8], strides = [1, 1]} : vector<16x32xf32> to vector<16x8xf32>
    %393 = vector.extract_strided_slice %348 {offsets = [0, 8], sizes = [16, 8], strides = [1, 1]} : vector<16x32xf32> to vector<16x8xf32>
    %394 = vector.extract_strided_slice %349 {offsets = [0, 8], sizes = [16, 8], strides = [1, 1]} : vector<16x32xf32> to vector<16x8xf32>
    %395 = vector.extract_strided_slice %351 {offsets = [0, 8], sizes = [16, 8], strides = [1, 1]} : vector<16x32xf32> to vector<16x8xf32>
    %396 = vector.extract_strided_slice %353 {offsets = [0, 8], sizes = [16, 8], strides = [1, 1]} : vector<16x32xf32> to vector<16x8xf32>
    %cst_112 = arith.constant dense<0.000000e+00> : vector<16x16xf32>
    %397 = tpu.matmul %388, %389, %cst_112 {dimension_numbers = #tpu.dot_dimension_numbers<[1], [1], [0], [0], [0, 0, 1, 0], [], []>} : vector<16x8xf32>, vector<16x8xf32>, vector<16x16xf32> -> vector<16x16xf32>
    %cst_113 = arith.constant -1.000000e+30 : f32
    %398 = vector.broadcast %cst_113 : f32 to vector<16x16xf32>
    %399 = arith.select %26, %397, %398 : vector<16x16xi1>, vector<16x16xf32>
    %cst_114 = arith.constant dense<0.000000e+00> : vector<16x16xf32>
    %400 = tpu.matmul %391, %395, %cst_114 {dimension_numbers = #tpu.dot_dimension_numbers<[1], [1], [0], [0], [0, 0, 1, 0], [], []>} : vector<16x8xf32>, vector<16x8xf32>, vector<16x16xf32> -> vector<16x16xf32>
    %cst_115 = arith.constant dense<0.000000e+00> : vector<16x16xf32>
    %401 = tpu.matmul %394, %392, %cst_115 {dimension_numbers = #tpu.dot_dimension_numbers<[1], [1], [0], [0], [0, 0, 1, 0], [], []>} : vector<16x8xf32>, vector<16x8xf32>, vector<16x16xf32> -> vector<16x16xf32>
    %402 = arith.addf %400, %401 : vector<16x16xf32>
    %cst_116 = arith.constant dense<0xFF800000> : vector<16xf32>
    %403 = vector.multi_reduction <maximumf>, %399, %cst_116 [1] : vector<16x16xf32> to vector<16xf32>
    %404 = vector.shape_cast %403 : vector<16xf32> to vector<16x1xf32>
    %405 = vector.broadcast %404 : vector<16x1xf32> to vector<16x16xf32>
    %406 = arith.subf %399, %405 : vector<16x16xf32>
    %407 = math.exp %406 : vector<16x16xf32>
    %cst_117 = arith.constant dense<0.000000e+00> : vector<16xf32>
    %408 = vector.multi_reduction <add>, %407, %cst_117 [1] : vector<16x16xf32> to vector<16xf32>
    %409 = vector.shape_cast %408 : vector<16xf32> to vector<16x1xf32>
    %410 = vector.broadcast %409 : vector<16x1xf32> to vector<16x16xf32>
    %411 = arith.divf %407, %410 : vector<16x16xf32>
    %cst_118 = arith.constant 1.000000e+00 : f32
    %412 = vector.broadcast %cst_118 : f32 to vector<16x16xf32>
    %413 = arith.subf %412, %411 : vector<16x16xf32>
    %414 = arith.mulf %411, %413 : vector<16x16xf32>
    %415 = arith.mulf %414, %414 : vector<16x16xf32>
    %416 = arith.mulf %415, %402 : vector<16x16xf32>
    %cst_119 = arith.constant dense<0.000000e+00> : vector<16x8xf32>
    %417 = tpu.matmul %411, %390, %cst_119 {dimension_numbers = #tpu.dot_dimension_numbers<[1], [0], [0], [1], [0, 0, 1, 1], [], []>} : vector<16x16xf32>, vector<16x8xf32>, vector<16x8xf32> -> vector<16x8xf32>
    %cst_120 = arith.constant dense<0.000000e+00> : vector<16x8xf32>
    %418 = tpu.matmul %416, %396, %cst_120 {dimension_numbers = #tpu.dot_dimension_numbers<[1], [0], [0], [1], [0, 0, 1, 1], [], []>} : vector<16x16xf32>, vector<16x8xf32>, vector<16x8xf32> -> vector<16x8xf32>
    %419 = arith.mulf %411, %411 : vector<16x16xf32>
    %cst_121 = arith.constant dense<0.000000e+00> : vector<16x8xf32>
    %420 = tpu.matmul %419, %393, %cst_121 {dimension_numbers = #tpu.dot_dimension_numbers<[1], [0], [0], [1], [0, 0, 1, 1], [], []>} : vector<16x16xf32>, vector<16x8xf32>, vector<16x8xf32> -> vector<16x8xf32>
    %421 = arith.addf %418, %420 : vector<16x8xf32>
    %422 = vector.extract_strided_slice %341 {offsets = [0, 16], sizes = [16, 8], strides = [1, 1]} : vector<16x32xf32> to vector<16x8xf32>
    %423 = vector.extract_strided_slice %342 {offsets = [0, 16], sizes = [16, 8], strides = [1, 1]} : vector<16x32xf32> to vector<16x8xf32>
    %424 = vector.extract_strided_slice %343 {offsets = [0, 16], sizes = [16, 8], strides = [1, 1]} : vector<16x32xf32> to vector<16x8xf32>
    %425 = vector.extract_strided_slice %346 {offsets = [0, 16], sizes = [16, 8], strides = [1, 1]} : vector<16x32xf32> to vector<16x8xf32>
    %426 = vector.extract_strided_slice %347 {offsets = [0, 16], sizes = [16, 8], strides = [1, 1]} : vector<16x32xf32> to vector<16x8xf32>
    %427 = vector.extract_strided_slice %348 {offsets = [0, 16], sizes = [16, 8], strides = [1, 1]} : vector<16x32xf32> to vector<16x8xf32>
    %428 = vector.extract_strided_slice %349 {offsets = [0, 16], sizes = [16, 8], strides = [1, 1]} : vector<16x32xf32> to vector<16x8xf32>
    %429 = vector.extract_strided_slice %351 {offsets = [0, 16], sizes = [16, 8], strides = [1, 1]} : vector<16x32xf32> to vector<16x8xf32>
    %430 = vector.extract_strided_slice %353 {offsets = [0, 16], sizes = [16, 8], strides = [1, 1]} : vector<16x32xf32> to vector<16x8xf32>
    %cst_122 = arith.constant dense<0.000000e+00> : vector<16x16xf32>
    %431 = tpu.matmul %422, %423, %cst_122 {dimension_numbers = #tpu.dot_dimension_numbers<[1], [1], [0], [0], [0, 0, 1, 0], [], []>} : vector<16x8xf32>, vector<16x8xf32>, vector<16x16xf32> -> vector<16x16xf32>
    %cst_123 = arith.constant -1.000000e+30 : f32
    %432 = vector.broadcast %cst_123 : f32 to vector<16x16xf32>
    %433 = arith.select %26, %431, %432 : vector<16x16xi1>, vector<16x16xf32>
    %cst_124 = arith.constant dense<0.000000e+00> : vector<16x16xf32>
    %434 = tpu.matmul %425, %429, %cst_124 {dimension_numbers = #tpu.dot_dimension_numbers<[1], [1], [0], [0], [0, 0, 1, 0], [], []>} : vector<16x8xf32>, vector<16x8xf32>, vector<16x16xf32> -> vector<16x16xf32>
    %cst_125 = arith.constant dense<0.000000e+00> : vector<16x16xf32>
    %435 = tpu.matmul %428, %426, %cst_125 {dimension_numbers = #tpu.dot_dimension_numbers<[1], [1], [0], [0], [0, 0, 1, 0], [], []>} : vector<16x8xf32>, vector<16x8xf32>, vector<16x16xf32> -> vector<16x16xf32>
    %436 = arith.addf %434, %435 : vector<16x16xf32>
    %cst_126 = arith.constant dense<0xFF800000> : vector<16xf32>
    %437 = vector.multi_reduction <maximumf>, %433, %cst_126 [1] : vector<16x16xf32> to vector<16xf32>
    %438 = vector.shape_cast %437 : vector<16xf32> to vector<16x1xf32>
    %439 = vector.broadcast %438 : vector<16x1xf32> to vector<16x16xf32>
    %440 = arith.subf %433, %439 : vector<16x16xf32>
    %441 = math.exp %440 : vector<16x16xf32>
    %cst_127 = arith.constant dense<0.000000e+00> : vector<16xf32>
    %442 = vector.multi_reduction <add>, %441, %cst_127 [1] : vector<16x16xf32> to vector<16xf32>
    %443 = vector.shape_cast %442 : vector<16xf32> to vector<16x1xf32>
    %444 = vector.broadcast %443 : vector<16x1xf32> to vector<16x16xf32>
    %445 = arith.divf %441, %444 : vector<16x16xf32>
    %cst_128 = arith.constant 1.000000e+00 : f32
    %446 = vector.broadcast %cst_128 : f32 to vector<16x16xf32>
    %447 = arith.subf %446, %445 : vector<16x16xf32>
    %448 = arith.mulf %445, %447 : vector<16x16xf32>
    %449 = arith.mulf %448, %448 : vector<16x16xf32>
    %450 = arith.mulf %449, %436 : vector<16x16xf32>
    %cst_129 = arith.constant dense<0.000000e+00> : vector<16x8xf32>
    %451 = tpu.matmul %445, %424, %cst_129 {dimension_numbers = #tpu.dot_dimension_numbers<[1], [0], [0], [1], [0, 0, 1, 1], [], []>} : vector<16x16xf32>, vector<16x8xf32>, vector<16x8xf32> -> vector<16x8xf32>
    %cst_130 = arith.constant dense<0.000000e+00> : vector<16x8xf32>
    %452 = tpu.matmul %450, %430, %cst_130 {dimension_numbers = #tpu.dot_dimension_numbers<[1], [0], [0], [1], [0, 0, 1, 1], [], []>} : vector<16x16xf32>, vector<16x8xf32>, vector<16x8xf32> -> vector<16x8xf32>
    %453 = arith.mulf %445, %445 : vector<16x16xf32>
    %cst_131 = arith.constant dense<0.000000e+00> : vector<16x8xf32>
    %454 = tpu.matmul %453, %427, %cst_131 {dimension_numbers = #tpu.dot_dimension_numbers<[1], [0], [0], [1], [0, 0, 1, 1], [], []>} : vector<16x16xf32>, vector<16x8xf32>, vector<16x8xf32> -> vector<16x8xf32>
    %455 = arith.addf %452, %454 : vector<16x8xf32>
    %456 = vector.extract_strided_slice %341 {offsets = [0, 24], sizes = [16, 8], strides = [1, 1]} : vector<16x32xf32> to vector<16x8xf32>
    %457 = vector.extract_strided_slice %342 {offsets = [0, 24], sizes = [16, 8], strides = [1, 1]} : vector<16x32xf32> to vector<16x8xf32>
    %458 = vector.extract_strided_slice %343 {offsets = [0, 24], sizes = [16, 8], strides = [1, 1]} : vector<16x32xf32> to vector<16x8xf32>
    %459 = vector.extract_strided_slice %346 {offsets = [0, 24], sizes = [16, 8], strides = [1, 1]} : vector<16x32xf32> to vector<16x8xf32>
    %460 = vector.extract_strided_slice %347 {offsets = [0, 24], sizes = [16, 8], strides = [1, 1]} : vector<16x32xf32> to vector<16x8xf32>
    %461 = vector.extract_strided_slice %348 {offsets = [0, 24], sizes = [16, 8], strides = [1, 1]} : vector<16x32xf32> to vector<16x8xf32>
    %462 = vector.extract_strided_slice %349 {offsets = [0, 24], sizes = [16, 8], strides = [1, 1]} : vector<16x32xf32> to vector<16x8xf32>
    %463 = vector.extract_strided_slice %351 {offsets = [0, 24], sizes = [16, 8], strides = [1, 1]} : vector<16x32xf32> to vector<16x8xf32>
    %464 = vector.extract_strided_slice %353 {offsets = [0, 24], sizes = [16, 8], strides = [1, 1]} : vector<16x32xf32> to vector<16x8xf32>
    %cst_132 = arith.constant dense<0.000000e+00> : vector<16x16xf32>
    %465 = tpu.matmul %456, %457, %cst_132 {dimension_numbers = #tpu.dot_dimension_numbers<[1], [1], [0], [0], [0, 0, 1, 0], [], []>} : vector<16x8xf32>, vector<16x8xf32>, vector<16x16xf32> -> vector<16x16xf32>
    %cst_133 = arith.constant -1.000000e+30 : f32
    %466 = vector.broadcast %cst_133 : f32 to vector<16x16xf32>
    %467 = arith.select %26, %465, %466 : vector<16x16xi1>, vector<16x16xf32>
    %cst_134 = arith.constant dense<0.000000e+00> : vector<16x16xf32>
    %468 = tpu.matmul %459, %463, %cst_134 {dimension_numbers = #tpu.dot_dimension_numbers<[1], [1], [0], [0], [0, 0, 1, 0], [], []>} : vector<16x8xf32>, vector<16x8xf32>, vector<16x16xf32> -> vector<16x16xf32>
    %cst_135 = arith.constant dense<0.000000e+00> : vector<16x16xf32>
    %469 = tpu.matmul %462, %460, %cst_135 {dimension_numbers = #tpu.dot_dimension_numbers<[1], [1], [0], [0], [0, 0, 1, 0], [], []>} : vector<16x8xf32>, vector<16x8xf32>, vector<16x16xf32> -> vector<16x16xf32>
    %470 = arith.addf %468, %469 : vector<16x16xf32>
    %cst_136 = arith.constant dense<0xFF800000> : vector<16xf32>
    %471 = vector.multi_reduction <maximumf>, %467, %cst_136 [1] : vector<16x16xf32> to vector<16xf32>
    %472 = vector.shape_cast %471 : vector<16xf32> to vector<16x1xf32>
    %473 = vector.broadcast %472 : vector<16x1xf32> to vector<16x16xf32>
    %474 = arith.subf %467, %473 : vector<16x16xf32>
    %475 = math.exp %474 : vector<16x16xf32>
    %cst_137 = arith.constant dense<0.000000e+00> : vector<16xf32>
    %476 = vector.multi_reduction <add>, %475, %cst_137 [1] : vector<16x16xf32> to vector<16xf32>
    %477 = vector.shape_cast %476 : vector<16xf32> to vector<16x1xf32>
    %478 = vector.broadcast %477 : vector<16x1xf32> to vector<16x16xf32>
    %479 = arith.divf %475, %478 : vector<16x16xf32>
    %cst_138 = arith.constant 1.000000e+00 : f32
    %480 = vector.broadcast %cst_138 : f32 to vector<16x16xf32>
    %481 = arith.subf %480, %479 : vector<16x16xf32>
    %482 = arith.mulf %479, %481 : vector<16x16xf32>
    %483 = arith.mulf %482, %482 : vector<16x16xf32>
    %484 = arith.mulf %483, %470 : vector<16x16xf32>
    %cst_139 = arith.constant dense<0.000000e+00> : vector<16x8xf32>
    %485 = tpu.matmul %479, %458, %cst_139 {dimension_numbers = #tpu.dot_dimension_numbers<[1], [0], [0], [1], [0, 0, 1, 1], [], []>} : vector<16x16xf32>, vector<16x8xf32>, vector<16x8xf32> -> vector<16x8xf32>
    %cst_140 = arith.constant dense<0.000000e+00> : vector<16x8xf32>
    %486 = tpu.matmul %484, %464, %cst_140 {dimension_numbers = #tpu.dot_dimension_numbers<[1], [0], [0], [1], [0, 0, 1, 1], [], []>} : vector<16x16xf32>, vector<16x8xf32>, vector<16x8xf32> -> vector<16x8xf32>
    %487 = arith.mulf %479, %479 : vector<16x16xf32>
    %cst_141 = arith.constant dense<0.000000e+00> : vector<16x8xf32>
    %488 = tpu.matmul %487, %461, %cst_141 {dimension_numbers = #tpu.dot_dimension_numbers<[1], [0], [0], [1], [0, 0, 1, 1], [], []>} : vector<16x16xf32>, vector<16x8xf32>, vector<16x8xf32> -> vector<16x8xf32>
    %489 = arith.addf %486, %488 : vector<16x8xf32>
    %490 = tpu.concatenate %383, %417, %451, %485 in 1 : vector<16x8xf32>, vector<16x8xf32>, vector<16x8xf32>, vector<16x8xf32> -> vector<16x32xf32>
    %491 = tpu.concatenate %387, %421, %455, %489 in 1 : vector<16x8xf32>, vector<16x8xf32>, vector<16x8xf32>, vector<16x8xf32> -> vector<16x32xf32>
    %492 = arith.addf %317, %490 : vector<16x32xf32>
    %493 = arith.addf %330, %491 : vector<16x32xf32>
    %c456 = arith.constant 456 : index
    %c0_142 = arith.constant 0 : index
    %494 = vector.load %arg2[%c456, %c0_142] : memref<680x128xf32, #tpu.memory_space<vmem>>, vector<4x32xf32>
    %495 = vector.extract_strided_slice %494 {offsets = [0, 0], sizes = [1, 32], strides = [1, 1]} : vector<4x32xf32> to vector<1x32xf32>
    %496 = vector.extract_strided_slice %494 {offsets = [1, 0], sizes = [1, 32], strides = [1, 1]} : vector<4x32xf32> to vector<1x32xf32>
    %497 = vector.extract_strided_slice %494 {offsets = [2, 0], sizes = [1, 32], strides = [1, 1]} : vector<4x32xf32> to vector<1x32xf32>
    %498 = vector.extract_strided_slice %494 {offsets = [3, 0], sizes = [1, 32], strides = [1, 1]} : vector<4x32xf32> to vector<1x32xf32>
    %cst_143 = arith.constant dense<0.000000e+00> : vector<16xf32>
    %499 = vector.multi_reduction <add>, %492, %cst_143 [1] : vector<16x32xf32> to vector<16xf32>
    %500 = vector.shape_cast %499 : vector<16xf32> to vector<16x1xf32>
    %cst_144 = arith.constant 3.200000e+01 : f32
    %501 = vector.broadcast %cst_144 : f32 to vector<16x1xf32>
    %502 = arith.divf %500, %501 : vector<16x1xf32>
    %503 = vector.broadcast %502 : vector<16x1xf32> to vector<16x32xf32>
    %504 = arith.subf %492, %503 : vector<16x32xf32>
    %505 = arith.mulf %504, %504 : vector<16x32xf32>
    %cst_145 = arith.constant dense<0.000000e+00> : vector<16xf32>
    %506 = vector.multi_reduction <add>, %505, %cst_145 [1] : vector<16x32xf32> to vector<16xf32>
    %507 = vector.shape_cast %506 : vector<16xf32> to vector<16x1xf32>
    %cst_146 = arith.constant 3.200000e+01 : f32
    %508 = vector.broadcast %cst_146 : f32 to vector<16x1xf32>
    %509 = arith.divf %507, %508 : vector<16x1xf32>
    %cst_147 = arith.constant 9.99999974E-6 : f32
    %510 = vector.broadcast %cst_147 : f32 to vector<16x1xf32>
    %511 = arith.addf %509, %510 : vector<16x1xf32>
    %512 = math.rsqrt %511 : vector<16x1xf32>
    %513 = vector.broadcast %502 : vector<16x1xf32> to vector<16x32xf32>
    %514 = arith.subf %492, %513 : vector<16x32xf32>
    %515 = vector.broadcast %512 : vector<16x1xf32> to vector<16x32xf32>
    %516 = arith.mulf %514, %515 : vector<16x32xf32>
    %517 = vector.broadcast %495 : vector<1x32xf32> to vector<16x32xf32>
    %518 = arith.mulf %516, %517 : vector<16x32xf32>
    %519 = vector.broadcast %497 : vector<1x32xf32> to vector<16x32xf32>
    %520 = arith.addf %518, %519 : vector<16x32xf32>
    %521 = arith.mulf %512, %512 : vector<16x1xf32>
    %522 = vector.broadcast %521 : vector<16x1xf32> to vector<16x32xf32>
    %523 = arith.mulf %493, %522 : vector<16x32xf32>
    %524 = arith.mulf %495, %495 : vector<1x32xf32>
    %525 = arith.addf %524, %496 : vector<1x32xf32>
    %526 = vector.broadcast %525 : vector<1x32xf32> to vector<16x32xf32>
    %527 = arith.mulf %523, %526 : vector<16x32xf32>
    %528 = arith.mulf %516, %516 : vector<16x32xf32>
    %529 = vector.broadcast %496 : vector<1x32xf32> to vector<16x32xf32>
    %530 = arith.mulf %528, %529 : vector<16x32xf32>
    %531 = arith.addf %527, %530 : vector<16x32xf32>
    %532 = vector.broadcast %498 : vector<1x32xf32> to vector<16x32xf32>
    %533 = arith.addf %531, %532 : vector<16x32xf32>
    %c464 = arith.constant 464 : index
    %c0_148 = arith.constant 0 : index
    %534 = vector.load %arg2[%c464, %c0_148] : memref<680x128xf32, #tpu.memory_space<vmem>>, vector<32x32xf32>
    %c496 = arith.constant 496 : index
    %c0_149 = arith.constant 0 : index
    %535 = vector.load %arg2[%c496, %c0_149] : memref<680x128xf32, #tpu.memory_space<vmem>>, vector<32x32xf32>
    %c528 = arith.constant 528 : index
    %c0_150 = arith.constant 0 : index
    %536 = vector.load %arg2[%c528, %c0_150] : memref<680x128xf32, #tpu.memory_space<vmem>>, vector<32x32xf32>
    %cst_151 = arith.constant dense<0.000000e+00> : vector<16x32xf32>
    %537 = tpu.matmul %520, %534, %cst_151 {dimension_numbers = #tpu.dot_dimension_numbers<[1], [0], [0], [1], [0, 0, 1, 1], [], []>} : vector<16x32xf32>, vector<32x32xf32>, vector<16x32xf32> -> vector<16x32xf32>
    %cst_152 = arith.constant dense<0.000000e+00> : vector<16x32xf32>
    %538 = tpu.matmul %533, %535, %cst_152 {dimension_numbers = #tpu.dot_dimension_numbers<[1], [0], [0], [1], [0, 0, 1, 1], [], []>} : vector<16x32xf32>, vector<32x32xf32>, vector<16x32xf32> -> vector<16x32xf32>
    %539 = arith.mulf %520, %520 : vector<16x32xf32>
    %cst_153 = arith.constant dense<0.000000e+00> : vector<16x32xf32>
    %540 = tpu.matmul %539, %536, %cst_153 {dimension_numbers = #tpu.dot_dimension_numbers<[1], [0], [0], [1], [0, 0, 1, 1], [], []>} : vector<16x32xf32>, vector<32x32xf32>, vector<16x32xf32> -> vector<16x32xf32>
    %541 = arith.addf %538, %540 : vector<16x32xf32>
    %c560 = arith.constant 560 : index
    %c0_154 = arith.constant 0 : index
    %542 = vector.load %arg2[%c560, %c0_154] : memref<680x128xf32, #tpu.memory_space<vmem>>, vector<1x32xf32>
    %543 = vector.broadcast %542 : vector<1x32xf32> to vector<16x32xf32>
    %544 = arith.addf %537, %543 : vector<16x32xf32>
    %c568 = arith.constant 568 : index
    %c0_155 = arith.constant 0 : index
    %545 = vector.load %arg2[%c568, %c0_155] : memref<680x128xf32, #tpu.memory_space<vmem>>, vector<1x32xf32>
    %546 = vector.broadcast %545 : vector<1x32xf32> to vector<16x32xf32>
    %547 = arith.addf %541, %546 : vector<16x32xf32>
    %cst_156 = arith.constant 0.000000e+00 : f32
    %548 = vector.broadcast %cst_156 : f32 to vector<16x32xf32>
    %549 = arith.cmpf ogt, %544, %548 : vector<16x32xf32>
    %550 = arith.extui %549 : vector<16x32xi1> to vector<16x32xi32>
    %551 = arith.sitofp %550 : vector<16x32xi32> to vector<16x32xf32>
    %552 = arith.mulf %544, %551 : vector<16x32xf32>
    %553 = arith.mulf %547, %551 : vector<16x32xf32>
    %554 = arith.addf %520, %552 : vector<16x32xf32>
    %555 = arith.addf %533, %553 : vector<16x32xf32>
    %c576 = arith.constant 576 : index
    %c0_157 = arith.constant 0 : index
    %556 = vector.load %arg2[%c576, %c0_157] : memref<680x128xf32, #tpu.memory_space<vmem>>, vector<4x32xf32>
    %557 = vector.extract_strided_slice %556 {offsets = [0, 0], sizes = [1, 32], strides = [1, 1]} : vector<4x32xf32> to vector<1x32xf32>
    %558 = vector.extract_strided_slice %556 {offsets = [1, 0], sizes = [1, 32], strides = [1, 1]} : vector<4x32xf32> to vector<1x32xf32>
    %559 = vector.extract_strided_slice %556 {offsets = [2, 0], sizes = [1, 32], strides = [1, 1]} : vector<4x32xf32> to vector<1x32xf32>
    %560 = vector.extract_strided_slice %556 {offsets = [3, 0], sizes = [1, 32], strides = [1, 1]} : vector<4x32xf32> to vector<1x32xf32>
    %cst_158 = arith.constant dense<0.000000e+00> : vector<16xf32>
    %561 = vector.multi_reduction <add>, %554, %cst_158 [1] : vector<16x32xf32> to vector<16xf32>
    %562 = vector.shape_cast %561 : vector<16xf32> to vector<16x1xf32>
    %cst_159 = arith.constant 3.200000e+01 : f32
    %563 = vector.broadcast %cst_159 : f32 to vector<16x1xf32>
    %564 = arith.divf %562, %563 : vector<16x1xf32>
    %565 = vector.broadcast %564 : vector<16x1xf32> to vector<16x32xf32>
    %566 = arith.subf %554, %565 : vector<16x32xf32>
    %567 = arith.mulf %566, %566 : vector<16x32xf32>
    %cst_160 = arith.constant dense<0.000000e+00> : vector<16xf32>
    %568 = vector.multi_reduction <add>, %567, %cst_160 [1] : vector<16x32xf32> to vector<16xf32>
    %569 = vector.shape_cast %568 : vector<16xf32> to vector<16x1xf32>
    %cst_161 = arith.constant 3.200000e+01 : f32
    %570 = vector.broadcast %cst_161 : f32 to vector<16x1xf32>
    %571 = arith.divf %569, %570 : vector<16x1xf32>
    %cst_162 = arith.constant 9.99999974E-6 : f32
    %572 = vector.broadcast %cst_162 : f32 to vector<16x1xf32>
    %573 = arith.addf %571, %572 : vector<16x1xf32>
    %574 = math.rsqrt %573 : vector<16x1xf32>
    %575 = vector.broadcast %564 : vector<16x1xf32> to vector<16x32xf32>
    %576 = arith.subf %554, %575 : vector<16x32xf32>
    %577 = vector.broadcast %574 : vector<16x1xf32> to vector<16x32xf32>
    %578 = arith.mulf %576, %577 : vector<16x32xf32>
    %579 = vector.broadcast %557 : vector<1x32xf32> to vector<16x32xf32>
    %580 = arith.mulf %578, %579 : vector<16x32xf32>
    %581 = vector.broadcast %559 : vector<1x32xf32> to vector<16x32xf32>
    %582 = arith.addf %580, %581 : vector<16x32xf32>
    %583 = arith.mulf %574, %574 : vector<16x1xf32>
    %584 = vector.broadcast %583 : vector<16x1xf32> to vector<16x32xf32>
    %585 = arith.mulf %555, %584 : vector<16x32xf32>
    %586 = arith.mulf %557, %557 : vector<1x32xf32>
    %587 = arith.addf %586, %558 : vector<1x32xf32>
    %588 = vector.broadcast %587 : vector<1x32xf32> to vector<16x32xf32>
    %589 = arith.mulf %585, %588 : vector<16x32xf32>
    %590 = arith.mulf %578, %578 : vector<16x32xf32>
    %591 = vector.broadcast %558 : vector<1x32xf32> to vector<16x32xf32>
    %592 = arith.mulf %590, %591 : vector<16x32xf32>
    %593 = arith.addf %589, %592 : vector<16x32xf32>
    %594 = vector.broadcast %560 : vector<1x32xf32> to vector<16x32xf32>
    %595 = arith.addf %593, %594 : vector<16x32xf32>
    %c584 = arith.constant 584 : index
    %c0_163 = arith.constant 0 : index
    %596 = vector.load %arg2[%c584, %c0_163] : memref<680x128xf32, #tpu.memory_space<vmem>>, vector<32x64xf32>
    %c616 = arith.constant 616 : index
    %c0_164 = arith.constant 0 : index
    %597 = vector.load %arg2[%c616, %c0_164] : memref<680x128xf32, #tpu.memory_space<vmem>>, vector<32x64xf32>
    %c648 = arith.constant 648 : index
    %c0_165 = arith.constant 0 : index
    %598 = vector.load %arg2[%c648, %c0_165] : memref<680x128xf32, #tpu.memory_space<vmem>>, vector<32x64xf32>
    %cst_166 = arith.constant dense<0.000000e+00> : vector<16x64xf32>
    %599 = tpu.matmul %582, %596, %cst_166 {dimension_numbers = #tpu.dot_dimension_numbers<[1], [0], [0], [1], [0, 0, 1, 1], [], []>} : vector<16x32xf32>, vector<32x64xf32>, vector<16x64xf32> -> vector<16x64xf32>
    %cst_167 = arith.constant dense<0.000000e+00> : vector<16x64xf32>
    %600 = tpu.matmul %595, %597, %cst_167 {dimension_numbers = #tpu.dot_dimension_numbers<[1], [0], [0], [1], [0, 0, 1, 1], [], []>} : vector<16x32xf32>, vector<32x64xf32>, vector<16x64xf32> -> vector<16x64xf32>
    %601 = arith.mulf %582, %582 : vector<16x32xf32>
    %cst_168 = arith.constant dense<0.000000e+00> : vector<16x64xf32>
    %602 = tpu.matmul %601, %598, %cst_168 {dimension_numbers = #tpu.dot_dimension_numbers<[1], [0], [0], [1], [0, 0, 1, 1], [], []>} : vector<16x32xf32>, vector<32x64xf32>, vector<16x64xf32> -> vector<16x64xf32>
    %603 = arith.addf %600, %602 : vector<16x64xf32>
    %604 = tpu.concatenate %599, %603 in 1 : vector<16x64xf32>, vector<16x64xf32> -> vector<16x128xf32>
    %c0_169 = arith.constant 0 : index
    %c0_170 = arith.constant 0 : index
    %605 = vector.load %arg3[%c0_169, %c0_170] : memref<16x128xf32, #tpu.memory_space<vmem>>, vector<16x128xf32>
    tpu.vector_store %arg3[%c0_169, %c0_170], %604 {strides = array<i32>} : memref<16x128xf32, #tpu.memory_space<vmem>>, vector<16x128xf32>,
    return
  }
  func.func @transform_0(%arg0: i32) -> (i32, i32) {
    %c0_i32 = arith.constant 0 : i32
    %c0_i32_0 = arith.constant 0 : i32
    %c0_i32_1 = arith.constant 0 : i32
    return %c0_i32, %c0_i32_0 : i32, i32
  }
  func.func @transform_1(%arg0: i32) -> (i32, i32) {
    %c0_i32 = arith.constant 0 : i32
    %c0_i32_0 = arith.constant 0 : i32
    %c0_i32_1 = arith.constant 0 : i32
    return %c0_i32, %c0_i32_0 : i32, i32
  }
  func.func @transform_2(%arg0: i32) -> (i32, i32) {
    %c0_i32 = arith.constant 0 : i32
    %c0_i32_0 = arith.constant 0 : i32
    %c0_i32_1 = arith.constant 0 : i32
    return %c0_i32, %c0_i32_0 : i32, i32
  }
}

</mosaic_0001>

<bundles_post_ra>
// kernel: encoder_vdp_forward.1
= control target key start
LH: loop header
LB: loop body
LE: loop exit
PB: predicated region body
PF: predicated region fallthrough
CT: control target
= control target key end

     0   :  { %7 = vsyncpa [#allocation3], 0  ;;  %s9251_s0 = inlined_call_operand.hbm [shape: f32[16,16], index: 0, kind: input, shape index: {}]   ;;  %s9252_s1 = inlined_call_operand.hbm [shape: f32[680,128], index: 1, kind: input, shape index: {}]   ;;  %s9253_s2 = inlined_call_operand.vmem [shape: f32[16,128], index: 2, kind: output, shape index: {}]  }
   0x1   :  { %8 = vsyncpa [#allocation5], 0  ;;  %s8130_s9 = smov [#allocation2]  }
   0x2   :  { %s14_s10 = sshll.u32 %s8130_s9, 4  ;;  %s15_s10 = int_to_ptr.vmem [resolvable:$true] %s14_s10 }
   0x3   :  { %s8094_s11 = scalar_lea.vmem %s15_s10, 256  ;;  %p8099_p1 = scmp.lt.s32.totalorder %s15_s10, %s15_s10 }
   0x4   :  { %p8095_p0 = scmp.ne.s32.totalorder %s15_s10, %s8094_s11  ;;  %p8100_p2 = scmp.lt.s32.totalorder %s8094_s11, %s8094_s11 }
   0x6   :  { %p8101_p3 = por %p8100_p2, %p8099_p1 }
   0x8   :  { %p8102_p4 = pnand %p8101_p3, %p8095_p0 }
   0xa   :  { %8105 = shalt.err (!%p8102_p4)
}
   0xb   :  { %s8131_s12 = smov 128   ;;  %s8132_s13 = smov 8  }
   0xc   :  { %20 = dma.hbm_to_vmem [thread:$0]  %s9251_s0, 256, %s15_s10, [#allocation3], %s8131_s12, %s8131_s12, %s8132_s13  }
   0xd   :  { %s8133_s16 = smov [#allocation4]  }
   0xe   :  { %s26_s17 = sshll.u32 %s8133_s16, 4  ;;  %s27_s17 = int_to_ptr.vmem [resolvable:$true] %s26_s17 }
   0xf   :  { %s8114_s18 = scalar_lea.vmem %s27_s17, 10880  ;;  %p8119_p6 = scmp.lt.s32.totalorder %s27_s17, %s27_s17 }
  0x10   :  { %p8115_p5 = scmp.ne.s32.totalorder %s27_s17, %s8114_s18  ;;  %p8120_p7 = scmp.lt.s32.totalorder %s8114_s18, %s8114_s18 }
  0x12   :  { %p8121_p8 = por %p8120_p7, %p8119_p6 }
  0x14   :  { %p8122_p9 = pnand %p8121_p8, %p8115_p5 }
  0x16   :  { %8125 = shalt.err (!%p8122_p9)
}
  0x17   :  { %32 = dma.hbm_to_vmem [thread:$0]  %s9252_s1, 10880, %s27_s17, [#allocation5], %s8131_s12, %s8131_s12, %s8132_s13  }
  0x18   :  { %8126 = dma.done.wait [#allocation3], 256  }
  0x19   :  { %8127 = vsyncadd [#allocation3], 4294967040 }
  0x1a   :  { %8128 = dma.done.wait [#allocation5], 10880  }
  0x1b   :  { %8129 = vsyncadd [#allocation5], 4294956416  ;;  %v8134_v0 = vmov 0.0   ;;  %v77_v1 = vld [vmem:[#allocation4 + $0x28] sm:$0xff]  ;;  %v75_v2 = vld [vmem:[#allocation4 + $0x18] sm:$0xff]  ;;  %vm80_vm0 = vcmask 130048  }
  0x1c   :  { %7456 = vmatprep.mubr.f32.mxu1 %v8134_v0  ;;  %v76_v3 = vld [vmem:[#allocation4 + $0x20] sm:$0xff]  ;;  %7445 = vmatprep.subr.mxu0 %v77_v1  ;;  %v74_v4 = vld [vmem:[#allocation4 + $0x10] sm:$0xff]  ;;  %v71_v6 = vld [vmem:[#allocation2 + $0x8] sm:$0xff]  ;;  %vm621_vm3 = vcmask 261120   ;;  %s8135_s0 = smov 96   ;;  %vm883_vm4 = vcmask 64512  }
  0x1d   :  { %7452 = vmatprep.subr.mxu1 %v75_v2  ;;  %v70_v5 = vld [vmem:[#allocation2] sm:$0xff]  ;;  %7446 = vmatpush3.msra.mxu0 %v77_v1  ;;  %v79_v8 = vmul.f32 %v71_v6, %v71_v6  ;;  %v73_v9 = vld [vmem:[#allocation4 + $0x8] sm:$0xff]  ;;  %v72_v10 = vld [vmem:[#allocation4] sm:$0xff]  ;;  %s8136_s1 = smov 64   ;;  %s8137_s21 = smov 88   ;;  %vm3178_vm9 = vcmask 195584  }
  0x1e   :  { %7453 = vmatpush3.msra.mxu1 %v75_v2  ;;  %v78_v7 = vmul.f32 %v70_v5, %v70_v5  ;;  %7447 = vmatprep.subr.mxu0 %v76_v3  ;;  %v346_v11 = vld [vmem:[#allocation4 + $0x58] sm:$0xff]  ;;  %v348_v12 = vld [vmem:[#allocation4 + $0x68] sm:$0xff]  ;;  %v345_v13 = vld [vmem:[#allocation4 + $0x50] sm:$0xff]  ;;  %s8138_s22 = smov 120   ;;  %s8139_s23 = smov 56   ;;  %vm6930_vm14 = vcmask 523264  }
  0x1f   :  { %7454 = vmatprep.subr.mxu1 %v74_v4  ;;  %7448 = vmatpush3.msra.mxu0 %v76_v3  ;;  %v347_v14 = vld [vmem:[#allocation4 + $0x60] sm:$0xff]  ;;  %v344_v15 = vld [vmem:[#allocation4 + $0x48] sm:$0xff]  ;;  %v6943_v20 = vld [vmem:[#allocation4 + $0x30] ss:$0 sm:$0xff]  ;;  %s8140_s24 = smov 80   ;;  %s8141_s25 = smov 112  }
  0x20   :  { %7449 = vmatprep.mubr.msk.f32.mxu0 %vm80_vm0, %v78_v7  ;;  %7455 = vmatpush3.msra.mxu1 %v74_v4  ;;  %v6946_v26 = vld [vmem:[#allocation4 + $0x38] ss:$0 sm:$0xff]  ;;  %v343_v38 = vld [vmem:[#allocation4 + $0x40] sm:$0xff]  ;;  %v610_v42 = vld [vmem:[#allocation4 + $0x90] sm:$0xff]  ;;  %s8142_s26 = smov 48   ;;  %s8143_s27 = smov 72  }
  0x21   :  { %7450 = vmatmul.mubr.msk.f32.vlgmr.msra.gmra.mxu0 %vm80_vm0, %v79_v8  ;;  %7457 = vmatmul.mubr.f32.vlgmr.msra.gmra.mxu1 %v8134_v0  ;;  %v612_v39 = vld [vmem:[#allocation4 + $0xa0] sm:$0xff]  ;;  %v611_v40 = vld [vmem:[#allocation4 + $0x98] sm:$0xff]  ;;  %v609_v44 = vld [vmem:[#allocation4 + $0x88] sm:$0xff]  ;;  %s8144_s28 = smov 104   ;;  %s8145_s29 = smov 40  }
  0x22   :  { %7459 = vmatprep.subr.mxu0 %v73_v9  ;;  %7463 = vmatprep.mubr.msk.f32.mxu0 %vm80_vm0, %v70_v5  ;;  %v620_v41 = vld [vmem:[#allocation4 + $0xe0] sm:$0xff]  ;;  %v619_v43 = vld [vmem:[#allocation4 + $0xd8] sm:$0xff]  ;;  %v618_v45 = vld [vmem:[#allocation4 + $0xd0] sm:$0xff]  ;;  %s8146_s30 = smov 16   ;;  %s8147_s3 = smov 24  }
  0x23   :  { %7460 = vmatpush3.msra.mxu0 %v73_v9  ;;  %7466 = vmatprep.subr.mxu1 %v348_v12  ;;  %v616_v46 = vld [vmem:[#allocation4 + $0xc0] sm:$0xff]  ;;  %v617_v47 = vld [vmem:[#allocation4 + $0xc8] sm:$0xff]  ;;  %v6953_v50 = vld [vmem:[#allocation4 + $0x70] ss:$0 sm:$0xff] }
  0x24   :  { %7461 = vmatprep.subr.mxu0 %v72_v10  ;;  %7467 = vmatpush3.msra.mxu1 %v348_v12  ;;  %v606_v54 = vld [vmem:[#allocation4 + $0x80] sm:$0xff]  ;;  %v6956_v61 = vld [vmem:[#allocation4 + $0x78] ss:$0 sm:$0xff]  ;;  %v614_v3 = vld [vmem:[#allocation4 + $0xb0] sm:$0xff] }
  0x25   :  { %7462 = vmatpush3.msra.mxu0 %v72_v10  ;;  %7468 = vmatprep.subr.mxu1 %v347_v14  ;;  %v615_v63 = vld [vmem:[#allocation4 + $0xb8] sm:$0xff]  ;;  %v613_v5 = vld [vmem:[#allocation4 + $0xa8] sm:$0xff] }
  0x26   :  { %7464 = vmatmul.mubr.msk.f32.vlgmr.msra.gmra.mxu0 %vm80_vm0, %v71_v6  ;;  %7473 = vmatprep.subr.mxu0 %v346_v11 }
  0x27   :  { %7474 = vmatpush3.msra.mxu0 %v346_v11  ;;  %7469 = vmatpush3.msra.mxu1 %v347_v14 }
  0x28   :  { %7475 = vmatprep.subr.mxu0 %v345_v13  ;;  %7480 = vmatprep.subr.mxu1 %v344_v15 }
  0x29   :  { %7476 = vmatpush3.msra.mxu0 %v345_v13 }
  0x2a   :  { %7487 = vmatprep.subr.mxu0 %v612_v39 }
  0xe1   :  { %v7451_v16 = vpop.f32.mrf.mxu0  ;;  %v7458_v17 = vpop.f32.mrf.mxu1 }
  0xe2   :  { %v237_v24 = vadd.f32 %v7458_v17, %v7451_v16 }
  0xe3   :  { %v153_v18 = vpop.f32.mrf.mxu0  ;;  %v231_v19 = vpop.f32.mrf.mxu1 }
  0xe4   :  { %v232_v22 = vadd.f32 %v231_v19, %v153_v18  ;;  %v332_v30 = vadd.f32 %v6946_v26, %v237_v24 }
  0xe6   :  { %v7465_v21 = vpop.f32.mrf.mxu0  ;;  %v331_v29 = vadd.f32 %v6946_v26, %v232_v22 }
  0xe7   :  { %v323_v23 = vadd.f32 %v7465_v21, %v6943_v20  ;;  %v42_v21 = vlaneseq }
  0xe8   :  { %v317_v25 = vpop.f32.mrf.mxu0 }
  0xe9   :  { %vm334_vm1 = vcmp.gt.f32.partialorder %v323_v23, 0.0  ;;  %v318_v27 = vadd.f32 %v6943_v20, %v317_v25  ;;  %v8245_v22 = vand.u32 127, %v42_v21 }
  0xea   :  { %v6948_v28 = vsel %vm334_vm1, 1.0, %v8134_v0 }
  0xeb   :  { %vm333_vm2 = vcmp.gt.f32.partialorder %v318_v27, 0.0  ;;  %v340_v31 = vmul.f32 %v6948_v28, %v323_v23  ;;  %v342_v35 = vmul.f32 %v6948_v28, %v332_v30  ;;  %vm62_vm5 = vcmp.ge.s32.totalorder %v8245_v22, 8 }
  0xec   :  { %v6947_v32 = vsel %vm333_vm2, 1.0, %v8134_v0  ;;  %vm65_vm6 = vcmp.lt.s32.totalorder %v8245_v22, 16  ;;  %vm53_vm7 = vcmp.lt.s32.totalorder %v8245_v22, 8 }
  0xed   :  { %v339_v33 = vmul.f32 %v6947_v32, %v318_v27  ;;  %v341_v34 = vmul.f32 %v6947_v32, %v331_v29  ;;  %v350_v37 = vmul.f32 %v340_v31, %v340_v31  ;;  %vm8250_vm8 = vmand %vm62_vm5, %vm65_vm6 }
  0xef   :  { %v349_v36 = vmul.f32 %v339_v33, %v339_v33  ;;  %7477 = vmatprep.mubr.msk.f32.mxu0 %vm80_vm0, %v341_v34 }
  0xf0   :  { %7478 = vmatmul.mubr.msk.f32.vlgmr.msra.gmra.mxu0 %vm80_vm0, %v342_v35 }
  0xf1   :  { %7470 = vmatprep.mubr.msk.f32.mxu1 %vm80_vm0, %v349_v36  ;;  %7488 = vmatpush3.msra.mxu0 %v612_v39 }
  0xf2   :  { %7471 = vmatmul.mubr.msk.f32.vlgmr.msra.gmra.mxu1 %vm80_vm0, %v350_v37  ;;  %7489 = vmatprep.subr.mxu0 %v611_v40 }
  0xf3   :  { %7481 = vmatpush3.msra.mxu1 %v344_v15  ;;  %7484 = vmatprep.mubr.msk.f32.mxu1 %vm80_vm0, %v339_v33 }
  0xf4   :  { %7482 = vmatprep.subr.mxu1 %v343_v38  ;;  %7490 = vmatpush3.msra.mxu0 %v611_v40 }
  0xf5   :  { %7483 = vmatpush3.msra.mxu1 %v343_v38  ;;  %7491 = vmatprep.subr.mxu0 %v610_v42 }
  0xf6   :  { %7485 = vmatmul.mubr.msk.f32.vlgmr.msra.gmra.mxu1 %vm80_vm0, %v340_v31  ;;  %7498 = vmatprep.subr.mxu1 %v620_v41 }
  0xf7   :  { %7499 = vmatpush3.msra.mxu1 %v620_v41  ;;  %7492 = vmatpush3.msra.mxu0 %v610_v42 }
  0xf8   :  { %7500 = vmatprep.subr.mxu1 %v619_v43  ;;  %7493 = vmatprep.subr.mxu0 %v609_v44 }
  0xf9   :  { %7501 = vmatpush3.msra.mxu1 %v619_v43  ;;  %7494 = vmatpush3.msra.mxu0 %v609_v44 }
  0xfa   :  { %7502 = vmatprep.subr.mxu1 %v618_v45  ;;  %7509 = vmatprep.subr.mxu0 %v616_v46 }
  0xfb   :  { %7503 = vmatpush3.msra.mxu1 %v618_v45 }
  0xfc   :  { %7504 = vmatprep.subr.mxu1 %v617_v47 }
  0xfd   :  { %7505 = vmatpush3.msra.mxu1 %v617_v47 }
 0x1b0   :  { %v7479_v51 = vpop.f32.mrf.mxu0 }
 0x1b2   :  { %v7472_v48 = vpop.f32.mrf.mxu1  ;;  %v504_v56 = vpop.f32.mrf.mxu0 }
 0x1b3   :  { %v510_v4 = vadd.f32 %v7479_v51, %v7472_v48 }
 0x1b4   :  { %v423_v49 = vpop.f32.mrf.mxu1 }
 0x1b5   :  { %v505_v58 = vadd.f32 %v504_v56, %v423_v49  ;;  %v8203_v6 = vadd.f32 %v6956_v61, %v510_v4 }
 0x1b6   :  { %v7486_v52 = vpop.f32.mrf.mxu1 }
 0x1b7   :  { %v596_v53 = vadd.f32 %v7486_v52, %v6953_v50  ;;  %v8193_v1 = vadd.f32 %v6956_v61, %v505_v58 }
 0x1b8   :  { %v590_v55 = vpop.f32.mrf.mxu1 }
 0x1b9   :  { %v591_v57 = vadd.f32 %v6953_v50, %v590_v55  ;;  %v8185_v59 = vadd.f32 %v606_v54, %v596_v53 }
 0x1bb   :  { %v8187_v60 = vadd.f32 %v606_v54, %v591_v57  ;;  %v704_v2 = vmul.f32 %v8185_v59, %v8185_v59 }
 0x1bd   :  { %v703_v62 = vmul.f32 %v8187_v60, %v8187_v60  ;;  %7495 = vmatprep.mubr.msk.f32.mxu0 %vm621_vm3, %v8187_v60 }
 0x1be   :  { %7496 = vmatmul.mubr.msk.f32.vlgmr.msra.gmra.mxu0 %vm621_vm3, %v8185_v59 }
 0x1bf   :  { %7510 = vmatpush3.msra.mxu0 %v616_v46  ;;  %7506 = vmatprep.mubr.msk.f32.mxu1 %vm621_vm3, %v703_v62 }
 0x1c0   :  { %7511 = vmatprep.subr.mxu0 %v615_v63  ;;  %7517 = vmatprep.mubr.msk.f32.mxu0 %vm621_vm3, %v8193_v1 }
 0x1c1   :  { %7507 = vmatmul.mubr.msk.f32.vlgmr.msra.gmra.mxu1 %vm621_vm3, %v704_v2  ;;  %7512 = vmatpush3.msra.mxu0 %v615_v63 }
 0x1c2   :  { %7513 = vmatprep.subr.mxu0 %v614_v3 }
 0x1c3   :  { %7514 = vmatpush3.msra.mxu0 %v614_v3 }
 0x1c4   :  { %7515 = vmatprep.subr.mxu0 %v613_v5 }
 0x1c5   :  { %7516 = vmatpush3.msra.mxu0 %v613_v5 }
 0x1c6   :  { %7518 = vmatmul.mubr.msk.f32.vlgmr.msra.gmra.mxu0 %vm621_vm3, %v8203_v6 }
 0x27e   :  { %v8207_v7 = vpop.f32.mrf.mxu0 }
 0x27f   :  { %881 = vrot.lane.b32.xlu0 %v8207_v7, %s8135_s0  ;;  %v8235_v19 = vmul.f32 0.17677669, %v8207_v7  ;;  %v874_v30 = vmul.f32 %v8207_v7, %v8207_v7 }
 0x280   :  { %v8211_v8 = vpop.f32.mrf.mxu0 }
 0x281   :  { %v8214_v9 = vmul.f32 0.17677669, %v8211_v8  ;;  %v7508_v11 = vpop.f32.mrf.mxu1  ;;  %v873_v32 = vmul.f32 %v8211_v8, %v8211_v8  ;;  %v8317_v3 = vmul.f32 %v8235_v19, %v8235_v19 }
 0x283   :  { %879 = vrot.lane.b32.xlu0 %v8211_v8, %s8135_s0  ;;  %7524 = vmatprep.mubr.msk.f32.mxu1 %vm883_vm4, %v8214_v9  ;;  %v8222_v10 = vmul.f32 %v8214_v9, %v8214_v9  ;;  %v777_v16 = vpop.f32.mrf.mxu1 }
 0x285   :  { %7531 = vmatprep.mubr.msk.f32.mxu0 %vm883_vm4, %v8222_v10 }
 0x286   :  { %v7519_v12 = vpop.f32.mrf.mxu0 }
 0x287   :  { %v8226_v13 = vadd.f32 %v7519_v12, %v7508_v11 }
 0x288   :  { %v858_v15 = vpop.f32.mrf.mxu0 }
 0x289   :  { %v8230_v17 = vadd.f32 %v858_v15, %v777_v16  ;;  %v8263_v31 = vadd.f32 %v874_v30, %v8226_v13  ;;  %v8283_v42 = vmul.f32 0.03125, %v8226_v13 }
 0x28b   :  { %v8238_v20 = vmul.f32 0.03125, %v8230_v17  ;;  %v8270_v33 = vadd.f32 %v873_v32, %v8230_v17 }
 0x2f1   :  { %v882_v14 = vpop.permute.xlu0 %881 }
 0x2f2   :  { %7520 = vmatprep.subr.msk.mxu1 %vm883_vm4, %v882_v14 }
 0x2f3   :  { %7521 = vmatpush3.xpose.msk.msra.mxu1 %vm883_vm4, %v882_v14 }
 0x2f5   :  { %v880_v18 = vpop.permute.xlu0 %879 }
 0x2f6   :  { %7522 = vmatprep.subr.msk.mxu1 %vm883_vm4, %v880_v18 }
 0x2f7   :  { %7523 = vmatpush3.xpose.msk.msra.mxu1 %vm883_vm4, %v880_v18 }
 0x2fa   :  { %7525 = vmatmul.mubr.msk.f32.vlgmr.msra.gmra.mxu1 %vm883_vm4, %v8235_v19 }
 0x2fb   :  { %7538 = vmatprep.mubr.msk.f32.mxu1 %vm883_vm4, %v8238_v20 }
 0x3ba   :  { %v7526_v23 = vpop.f32.mrf.mxu1 }
 0x3bb   :  { %v970_v28 = vsel %vm8250_vm8, %v7526_v23, -1e+30 }
 0x3bc   :  { %v960_v25 = vpop.f32.mrf.mxu1  ;;  %v1156_v29 = vsel %vm80_vm0, %v970_v28, -inf }
 0x3bd   :  { %v969_v26 = vsel %vm53_vm7, %v960_v25, -1e+30 }
 0x3be   :  { %v1153_v27 = vsel %vm80_vm0, %v969_v26, -inf }
 0x3bf   :  { %1154 = vmax.xlane.f32.xlu1 %v1153_v27 }
 0x3c3   :  { %1157 = vmax.xlane.f32.xlu1 %v1156_v29 }
 0x3d4   :  { %1066 = vrot.lane.b32.xlu1 %v8263_v31, %s8135_s0 }
 0x3d8   :  { %1064 = vrot.lane.b32.xlu1 %v8270_v33, %s8135_s0 }
 0x3dc   :  { %1274 = vrot.lane.b32.xlu1 %v8226_v13, %s8136_s1 }
 0x3e0   :  { %1272 = vrot.lane.b32.xlu1 %v8230_v17, %s8136_s1 }
 0x448   :  { %v1155_v34 = vpop.xlane.xlu1 %1154 }
 0x449   :  { %v1159_v35 = vsub.f32 %v969_v26, %v1155_v34 }
 0x44b   :  { %v1161_v36 = vmul.f32 1.442695, %v1159_v35 }
 0x44c   :  { %v1158_v37 = vpop.xlane.xlu1 %1157 }
 0x44d   :  { %8006 = vpow2.f32 %v1161_v36  ;;  %v1160_v38 = vsub.f32 %v970_v28, %v1158_v37 }
 0x44f   :  { %v1163_v39 = vmul.f32 1.442695, %v1160_v38 }
 0x450   :  { %v1067_v40 = vpop.permute.xlu1 %1066 }
 0x451   :  { %8008 = vpow2.f32 %v1163_v39  ;;  %7534 = vmatprep.subr.msk.mxu1 %vm883_vm4, %v1067_v40 }
 0x452   :  { %7535 = vmatpush3.xpose.msk.msra.mxu1 %vm883_vm4, %v1067_v40 }
 0x454   :  { %v1065_v41 = vpop.permute.xlu1 %1064 }
 0x455   :  { %7536 = vmatprep.subr.msk.mxu1 %vm883_vm4, %v1065_v41 }
 0x456   :  { %7537 = vmatpush3.xpose.msk.msra.mxu1 %vm883_vm4, %v1065_v41 }
 0x458   :  { %v1275_v43 = vpop.permute.xlu1 %1274 }
 0x459   :  { %7539 = vmatmul.mubr.msk.f32.vlgmr.msra.gmra.mxu1 %vm883_vm4, %v8283_v42  ;;  %7548 = vmatprep.subr.mxu1 %v1275_v43 }
 0x45a   :  { %v8007_v44 = vpop.eup %8006  ;;  %7549 = vmatpush3.msra.mxu1 %v1275_v43 }
 0x45b   :  { %v1165_v45 = vsel %vm80_vm0, %v8007_v44, 0.0 }
 0x45c   :  { %1166 = vadd.xlane.f32.xlu0 %v1165_v45  ;;  %v1273_v46 = vpop.permute.xlu1 %1272 }
 0x45d   :  { %7550 = vmatprep.subr.mxu1 %v1273_v46 }
 0x45e   :  { %v8009_v47 = vpop.eup %8008  ;;  %7551 = vmatpush3.msra.mxu1 %v1273_v46 }
 0x45f   :  { %v1168_v48 = vsel %vm80_vm0, %v8009_v47, 0.0 }
 0x460   :  { %1169 = vadd.xlane.f32.xlu1 %v1168_v48 }
 0x471   :  { %1450 = vrot.lane.b32.xlu1 %v8211_v8, %s8137_s21 }
 0x472   :  { %1452 = vrot.lane.b32.xlu0 %v8207_v7, %s8137_s21 }
 0x475   :  { %1446 = vrot.lane.b32.xlu1 %v8214_v9, %s8138_s22 }
 0x479   :  { %1448 = vrot.lane.b32.xlu1 %v8235_v19, %s8138_s22 }
 0x47d   :  { %975 = vrot.lane.b32.xlu1 %v8226_v13, %s8135_s0 }
 0x481   :  { %973 = vrot.lane.b32.xlu1 %v8230_v17, %s8135_s0 }
 0x4e5   :  { %v1167_v49 = vpop.xlane.xlu0 %1166 }
 0x4e6   :  { %8010 = vrcp.f32 %v1167_v49 }
 0x4e9   :  { %v1453_v50 = vpop.permute.xlu0 %1452  ;;  %v1170_v51 = vpop.xlane.xlu1 %1169 }
 0x4ea   :  { %8012 = vrcp.f32 %v1170_v51  ;;  %7562 = vmatprep.subr.msk.mxu1 %vm883_vm4, %v1453_v50 }
 0x4ed   :  { %v1451_v52 = vpop.permute.xlu1 %1450 }
 0x4f1   :  { %v1447_v53 = vpop.permute.xlu1 %1446 }
 0x4f3   :  { %v8011_v54 = vpop.eup %8010 }
 0x4f4   :  { %v1172_v55 = vmul.f32 %v8011_v54, %v8007_v44 }
 0x4f5   :  { %v1449_v56 = vpop.permute.xlu1 %1448 }
 0x4f6   :  { %v1270_v57 = vmul.f32 %v1172_v55, %v1172_v55  ;;  %v1175_v11 = vsub.f32 1.0, %v1172_v55 }
 0x4f7   :  { %v8013_v58 = vpop.eup %8012 }
 0x4f8   :  { %v8302_v61 = vmul.f32 %v8013_v58, %v8009_v47  ;;  %7552 = vmatprep.mubr.msk.f32.mxu1 %vm80_vm0, %v1270_v57  ;;  %v1177_v14 = vmul.f32 %v1175_v11, %v1172_v55 }
 0x4f9   :  { %v976_v62 = vpop.permute.xlu1 %975 }
 0x4fa   :  { %7527 = vmatprep.subr.msk.mxu0 %vm883_vm4, %v976_v62  ;;  %v1271_v63 = vmul.f32 %v8302_v61, %v8302_v61  ;;  %v1179_v27 = vmul.f32 %v1177_v14, %v1177_v14  ;;  %v1176_v38 = vsub.f32 1.0, %v8302_v61 }
 0x4fb   :  { %7528 = vmatpush3.xpose.msk.msra.mxu0 %vm883_vm4, %v976_v62 }
 0x4fc   :  { %7553 = vmatmul.mubr.msk.f32.vlgmr.msra.gmra.mxu1 %vm80_vm0, %v1271_v63  ;;  %v1178_v45 = vmul.f32 %v1176_v38, %v8302_v61 }
 0x4fd   :  { %7563 = vmatpush3.xpose.msk.msra.mxu1 %vm883_vm4, %v1453_v50  ;;  %v974_v2 = vpop.permute.xlu1 %973  ;;  %7566 = vmatprep.mubr.msk.f32.mxu1 %vm883_vm4, %v1447_v53 }
 0x4fe   :  { %7564 = vmatprep.subr.msk.mxu1 %vm883_vm4, %v1451_v52  ;;  %7529 = vmatprep.subr.msk.mxu0 %vm883_vm4, %v974_v2  ;;  %v1180_v49 = vmul.f32 %v1178_v45, %v1178_v45 }
 0x4ff   :  { %7530 = vmatpush3.xpose.msk.msra.mxu0 %vm883_vm4, %v974_v2 }
 0x501   :  { %7565 = vmatpush3.xpose.msk.msra.mxu1 %vm883_vm4, %v1451_v52 }
 0x502   :  { %7532 = vmatmul.mubr.msk.f32.vlgmr.msra.gmra.mxu0 %vm883_vm4, %v8317_v3 }
 0x503   :  { %7545 = vmatprep.mubr.msk.f32.mxu0 %vm80_vm0, %v1172_v55 }
 0x504   :  { %7567 = vmatmul.mubr.msk.f32.vlgmr.msra.gmra.mxu1 %vm883_vm4, %v1449_v56 }
 0x519   :  { %v7540_v4 = vpop.f32.mrf.mxu1 }
 0x51b   :  { %v1144_v5 = vpop.f32.mrf.mxu1 }
 0x5bc   :  { %v8324_v12 = vpop.f32.mrf.mxu1 }
 0x5be   :  { %v8326_v15 = vpop.f32.mrf.mxu1 }
 0x5c2   :  { %v7533_v16 = vpop.f32.mrf.mxu0 }
 0x5c3   :  { %v1150_v47 = vadd.f32 %v7540_v4, %v7533_v16 }
 0x5c4   :  { %v7568_v18 = vpop.f32.mrf.mxu1  ;;  %v1053_v23 = vpop.f32.mrf.mxu0 }
 0x5c5   :  { %v1538_v25 = vsel %vm8250_vm8, %v7568_v18, -1e+30  ;;  %v1145_v26 = vadd.f32 %v1144_v5, %v1053_v23  ;;  %v1182_v51 = vmul.f32 %v1180_v49, %v1150_v47 }
 0x5c6   :  { %v1528_v28 = vpop.f32.mrf.mxu1  ;;  %v1724_v29 = vsel %vm80_vm0, %v1538_v25, -inf }
 0x5c7   :  { %v1181_v30 = vmul.f32 %v1179_v27, %v1145_v26  ;;  %v1537_v32 = vsel %vm53_vm7, %v1528_v28, -1e+30  ;;  %1725 = vmax.xlane.f32.xlu1 %v1724_v29 }
 0x5c8   :  { %v1721_v34 = vsel %vm80_vm0, %v1537_v32, -inf }
 0x5c9   :  { %1722 = vmax.xlane.f32.xlu0 %v1721_v34 }
 0x5d8   :  { %1185 = vrot.lane.b32.xlu1 %v8207_v7, %s8136_s1 }
 0x5dc   :  { %1361 = vrot.lane.b32.xlu1 %v8263_v31, %s8136_s1 }
 0x5df   :  { %1183 = vrot.lane.b32.xlu0 %v8211_v8, %s8136_s1 }
 0x5e0   :  { %1359 = vrot.lane.b32.xlu1 %v8270_v33, %s8136_s1 }
 0x5e3   :  { %1545 = vrot.lane.b32.xlu0 %v8226_v13, %s8137_s21 }
 0x5e4   :  { %1543 = vrot.lane.b32.xlu1 %v8230_v17, %s8137_s21 }
 0x5e7   :  { %1539 = vrot.lane.b32.xlu0 %v8222_v10, %s8138_s22 }
 0x5e8   :  { %1753 = vrot.lane.b32.xlu1 %v8207_v7, %s8139_s23 }
 0x5eb   :  { %1541 = vrot.lane.b32.xlu0 %v8317_v3, %s8138_s22 }
 0x5ec   :  { %1751 = vrot.lane.b32.xlu1 %v8211_v8, %s8139_s23 }
 0x5f0   :  { %1840 = vrot.lane.b32.xlu1 %v8230_v17, %s8139_s23 }
 0x5f4   :  { %2018 = vrot.lane.b32.xlu1 %v8211_v8, %s8140_s24 }
 0x5f8   :  { %2016 = vrot.lane.b32.xlu1 %v8235_v19, %s8141_s25 }
 0x5fc   :  { %1634 = vrot.lane.b32.xlu1 %v8270_v33, %s8137_s21 }
 0x600   :  { %1632 = vrot.lane.b32.xlu1 %v8283_v42, %s8138_s22 }
 0x650   :  { %v1726_v35 = vpop.xlane.xlu1 %1725 }
 0x651   :  { %v1728_v36 = vsub.f32 %v1538_v25, %v1726_v35 }
 0x652   :  { %v1723_v37 = vpop.xlane.xlu0 %1722 }
 0x653   :  { %v1731_v39 = vmul.f32 1.442695, %v1728_v36  ;;  %v1727_v40 = vsub.f32 %v1537_v32, %v1723_v37 }
 0x654   :  { %v1186_v41 = vpop.permute.xlu1 %1185 }
 0x655   :  { %8014 = vpow2.f32 %v1731_v39  ;;  %v1729_v43 = vmul.f32 1.442695, %v1727_v40  ;;  %7541 = vmatprep.subr.mxu0 %v1186_v41 }
 0x656   :  { %7542 = vmatpush3.msra.mxu0 %v1186_v41  ;;  %v1184_v44 = vpop.permute.xlu0 %1183 }
 0x657   :  { %8016 = vpow2.f32 %v1729_v43  ;;  %7543 = vmatprep.subr.mxu0 %v1184_v44 }
 0x658   :  { %v1362_v46 = vpop.permute.xlu1 %1361  ;;  %7544 = vmatpush3.msra.mxu0 %v1184_v44 }
 0x659   :  { %7546 = vmatmul.mubr.msk.f32.vlgmr.msra.gmra.mxu0 %vm80_vm0, %v8302_v61  ;;  %7555 = vmatprep.subr.mxu0 %v1362_v46 }
 0x65a   :  { %7556 = vmatpush3.msra.mxu0 %v1362_v46  ;;  %v1546_v48 = vpop.permute.xlu0 %1545  ;;  %7559 = vmatprep.mubr.msk.f32.mxu0 %vm80_vm0, %v1181_v30 }
 0x65c   :  { %v1360_v50 = vpop.permute.xlu1 %1359 }
 0x65d   :  { %7557 = vmatprep.subr.mxu0 %v1360_v50 }
 0x65e   :  { %7558 = vmatpush3.msra.mxu0 %v1360_v50  ;;  %v1540_v52 = vpop.permute.xlu0 %1539 }
 0x65f   :  { %7560 = vmatmul.mubr.msk.f32.vlgmr.msra.gmra.mxu0 %vm80_vm0, %v1182_v51  ;;  %7569 = vmatprep.subr.msk.mxu0 %vm883_vm4, %v1546_v48 }
 0x660   :  { %v1544_v53 = vpop.permute.xlu1 %1543  ;;  %7570 = vmatpush3.xpose.msk.msra.mxu0 %vm883_vm4, %v1546_v48  ;;  %7573 = vmatprep.mubr.msk.f32.mxu0 %vm883_vm4, %v1540_v52 }
 0x661   :  { %7571 = vmatprep.subr.msk.mxu0 %vm883_vm4, %v1544_v53 }
 0x662   :  { %v8015_v54 = vpop.eup %8014  ;;  %v1542_v58 = vpop.permute.xlu0 %1541 }
 0x663   :  { %v1736_v55 = vsel %vm80_vm0, %v8015_v54, 0.0 }
 0x664   :  { %v8017_v56 = vpop.eup %8016  ;;  %v1754_v57 = vpop.permute.xlu1 %1753  ;;  %1737 = vadd.xlane.f32.xlu0 %v1736_v55  ;;  %7572 = vmatpush3.xpose.msk.msra.mxu0 %vm883_vm4, %v1544_v53 }
 0x665   :  { %7583 = vmatprep.subr.mxu0 %v1754_v57  ;;  %v1733_v61 = vsel %vm80_vm0, %v8017_v56, 0.0 }
 0x667   :  { %7574 = vmatmul.mubr.msk.f32.vlgmr.msra.gmra.mxu0 %vm883_vm4, %v1542_v58 }
 0x668   :  { %v1752_v62 = vpop.permute.xlu1 %1751  ;;  %1734 = vadd.xlane.f32.xlu0 %v1733_v61  ;;  %7584 = vmatpush3.msra.mxu0 %v1754_v57 }
 0x669   :  { %7585 = vmatprep.subr.mxu0 %v1752_v62 }
 0x66a   :  { %7586 = vmatpush3.msra.mxu0 %v1752_v62 }
 0x66c   :  { %v1841_v2 = vpop.permute.xlu1 %1840 }
 0x670   :  { %v2019_v11 = vpop.permute.xlu1 %2018 }
 0x674   :  { %v2017_v16 = vpop.permute.xlu1 %2016 }
 0x678   :  { %v1635_v30 = vpop.permute.xlu1 %1634 }
 0x67c   :  { %v1633_v35 = vpop.permute.xlu1 %1632 }
 0x67e   :  { %1842 = vrot.lane.b32.xlu0 %v8226_v13, %s8139_s23 }
 0x682   :  { %2020 = vrot.lane.b32.xlu0 %v8207_v7, %s8140_s24 }
 0x686   :  { %2014 = vrot.lane.b32.xlu0 %v8214_v9, %s8141_s25 }
 0x68a   :  { %1636 = vrot.lane.b32.xlu0 %v8263_v31, %s8137_s21 }
 0x68e   :  { %1630 = vrot.lane.b32.xlu0 %v8238_v20, %s8138_s22 }
 0x6ed   :  { %v1738_v63 = vpop.xlane.xlu0 %1737 }
 0x6ee   :  { %8018 = vrcp.f32 %v1738_v63 }
 0x6f1   :  { %v1735_v4 = vpop.xlane.xlu0 %1734 }
 0x6f2   :  { %8020 = vrcp.f32 %v1735_v4 }
 0x6f5   :  { %v1843_v5 = vpop.permute.xlu0 %1842 }
 0x6f6   :  { %7590 = vmatprep.subr.mxu0 %v1843_v5 }
 0x6f9   :  { %v2021_v14 = vpop.permute.xlu0 %2020 }
 0x6fb   :  { %v8019_v23 = vpop.eup %8018 }
 0x6fc   :  { %v1742_v28 = vmul.f32 %v8019_v23, %v8015_v54 }
 0x6fd   :  { %v2015_v18 = vpop.permute.xlu0 %2014 }
 0x6fe   :  { %v1839_v34 = vmul.f32 %v1742_v28, %v1742_v28  ;;  %v1744_v44 = vsub.f32 1.0, %v1742_v28 }
 0x6ff   :  { %v8021_v25 = vpop.eup %8020 }
 0x700   :  { %v1740_v26 = vmul.f32 %v8021_v25, %v8017_v56  ;;  %v1746_v47 = vmul.f32 %v1744_v44, %v1742_v28 }
 0x701   :  { %v1637_v27 = vpop.permute.xlu0 %1636 }
 0x702   :  { %7576 = vmatprep.subr.msk.mxu1 %vm883_vm4, %v1637_v27  ;;  %7587 = vmatprep.mubr.msk.f32.mxu0 %vm80_vm0, %v1740_v26  ;;  %v1838_v29 = vmul.f32 %v1740_v26, %v1740_v26  ;;  %v1743_v45 = vsub.f32 1.0, %v1740_v26  ;;  %v1748_v52 = vmul.f32 %v1746_v47, %v1746_v47 }
 0x703   :  { %7577 = vmatpush3.xpose.msk.msra.mxu1 %vm883_vm4, %v1637_v27  ;;  %7588 = vmatmul.mubr.msk.f32.vlgmr.msra.gmra.mxu0 %vm80_vm0, %v1742_v28 }
 0x704   :  { %7591 = vmatpush3.msra.mxu0 %v1843_v5  ;;  %7578 = vmatprep.subr.msk.mxu1 %vm883_vm4, %v1635_v30  ;;  %v1745_v48 = vmul.f32 %v1743_v45, %v1740_v26 }
 0x705   :  { %7592 = vmatprep.subr.mxu0 %v1841_v2  ;;  %7594 = vmatprep.mubr.msk.f32.mxu0 %vm80_vm0, %v1838_v29  ;;  %v1631_v32 = vpop.permute.xlu0 %1630 }
 0x706   :  { %7593 = vmatpush3.msra.mxu0 %v1841_v2  ;;  %7580 = vmatprep.mubr.msk.f32.mxu1 %vm883_vm4, %v1631_v32  ;;  %v1747_v56 = vmul.f32 %v1745_v48, %v1745_v48 }
 0x707   :  { %7604 = vmatprep.subr.msk.mxu0 %vm883_vm4, %v2021_v14  ;;  %7579 = vmatpush3.xpose.msk.msra.mxu1 %vm883_vm4, %v1635_v30 }
 0x708   :  { %7595 = vmatmul.mubr.msk.f32.vlgmr.msra.gmra.mxu0 %vm80_vm0, %v1839_v34 }
 0x709   :  { %7605 = vmatpush3.xpose.msk.msra.mxu0 %vm883_vm4, %v2021_v14  ;;  %7608 = vmatprep.mubr.msk.f32.mxu0 %vm883_vm4, %v2015_v18 }
 0x70a   :  { %7606 = vmatprep.subr.msk.mxu0 %vm883_vm4, %v2019_v11  ;;  %7581 = vmatmul.mubr.msk.f32.vlgmr.msra.gmra.mxu1 %vm883_vm4, %v1633_v35 }
 0x70d   :  { %7607 = vmatpush3.xpose.msk.msra.mxu0 %vm883_vm4, %v2019_v11 }
 0x710   :  { %7609 = vmatmul.mubr.msk.f32.vlgmr.msra.gmra.mxu0 %vm883_vm4, %v2017_v16 }
 0x719   :  { %v8404_v36 = vpop.f32.mrf.mxu0 }
 0x71b   :  { %v8406_v37 = vpop.f32.mrf.mxu0 }
 0x71f   :  { %v8408_v38 = vpop.f32.mrf.mxu0 }
 0x721   :  { %v8410_v39 = vpop.f32.mrf.mxu0 }
 0x727   :  { %v7575_v40 = vpop.f32.mrf.mxu0 }
 0x729   :  { %v1621_v41 = vpop.f32.mrf.mxu0 }
 0x7c3   :  { %v8412_v43 = vpop.f32.mrf.mxu0 }
 0x7c5   :  { %v8414_v46 = vpop.f32.mrf.mxu0 }
 0x7c8   :  { %v8416_v49 = vpop.f32.mrf.mxu0 }
 0x7ca   :  { %v7582_v50 = vpop.f32.mrf.mxu1  ;;  %v8418_v57 = vpop.f32.mrf.mxu0 }
 0x7cb   :  { %v1718_v51 = vadd.f32 %v7582_v50, %v7575_v40 }
 0x7cc   :  { %v1712_v53 = vpop.f32.mrf.mxu1 }
 0x7cd   :  { %v1750_v54 = vmul.f32 %v1748_v52, %v1718_v51  ;;  %v1713_v55 = vadd.f32 %v1712_v53, %v1621_v41 }
 0x7cf   :  { %v1749_v58 = vmul.f32 %v1747_v56, %v1713_v55 }
 0x7d0   :  { %v7610_v61 = vpop.f32.mrf.mxu0 }
 0x7d1   :  { %v2106_v62 = vsel %vm8250_vm8, %v7610_v61, -1e+30  ;;  %7601 = vmatprep.mubr.msk.f32.mxu1 %vm80_vm0, %v1749_v58 }
 0x7d2   :  { %v2096_v63 = vpop.f32.mrf.mxu0  ;;  %v2292_v2 = vsel %vm80_vm0, %v2106_v62, -inf }
 0x7d3   :  { %v2105_v4 = vsel %vm53_vm7, %v2096_v63, -1e+30  ;;  %2293 = vmax.xlane.f32.xlu1 %v2292_v2 }
 0x7d4   :  { %v2289_v5 = vsel %vm80_vm0, %v2105_v4, -inf }
 0x7d5   :  { %2290 = vmax.xlane.f32.xlu0 %v2289_v5 }
 0x7e4   :  { %1929 = vrot.lane.b32.xlu1 %v8263_v31, %s8139_s23 }
 0x7e8   :  { %2113 = vrot.lane.b32.xlu1 %v8226_v13, %s8140_s24 }
 0x7eb   :  { %1927 = vrot.lane.b32.xlu0 %v8270_v33, %s8139_s23 }
 0x7ec   :  { %2111 = vrot.lane.b32.xlu1 %v8230_v17, %s8140_s24 }
 0x7ef   :  { %2107 = vrot.lane.b32.xlu0 %v8222_v10, %s8141_s25 }
 0x7f0   :  { %2321 = vrot.lane.b32.xlu1 %v8207_v7, %s8142_s26 }
 0x7f3   :  { %2109 = vrot.lane.b32.xlu0 %v8317_v3, %s8141_s25 }
 0x7f4   :  { %2319 = vrot.lane.b32.xlu1 %v8211_v8, %s8142_s26 }
 0x7f8   :  { %2408 = vrot.lane.b32.xlu1 %v8230_v17, %s8142_s26 }
 0x7fc   :  { %2586 = vrot.lane.b32.xlu1 %v8211_v8, %s8143_s27 }
 0x800   :  { %2584 = vrot.lane.b32.xlu1 %v8235_v19, %s8144_s28 }
 0x804   :  { %2202 = vrot.lane.b32.xlu1 %v8270_v33, %s8140_s24 }
 0x808   :  { %2200 = vrot.lane.b32.xlu1 %v8283_v42, %s8141_s25 }
 0x85c   :  { %v2294_v11 = vpop.xlane.xlu1 %2293 }
 0x85d   :  { %v2296_v14 = vsub.f32 %v2106_v62, %v2294_v11 }
 0x85e   :  { %v2291_v16 = vpop.xlane.xlu0 %2290 }
 0x85f   :  { %v2299_v18 = vmul.f32 1.442695, %v2296_v14  ;;  %v2295_v23 = vsub.f32 %v2105_v4, %v2291_v16 }
 0x860   :  { %v1930_v25 = vpop.permute.xlu1 %1929 }
 0x861   :  { %8022 = vpow2.f32 %v2299_v18  ;;  %v2297_v26 = vmul.f32 1.442695, %v2295_v23  ;;  %7597 = vmatprep.subr.mxu1 %v1930_v25 }
 0x862   :  { %7598 = vmatpush3.msra.mxu1 %v1930_v25  ;;  %v1928_v27 = vpop.permute.xlu0 %1927 }
 0x863   :  { %8024 = vpow2.f32 %v2297_v26  ;;  %7599 = vmatprep.subr.mxu1 %v1928_v27 }
 0x864   :  { %v2114_v19 = vpop.permute.xlu1 %2113  ;;  %7600 = vmatpush3.msra.mxu1 %v1928_v27 }
 0x865   :  { %7602 = vmatmul.mubr.msk.f32.vlgmr.msra.gmra.mxu1 %vm80_vm0, %v1750_v54  ;;  %7611 = vmatprep.subr.msk.mxu1 %vm883_vm4, %v2114_v19 }
 0x866   :  { %v2108_v28 = vpop.permute.xlu0 %2107  ;;  %7612 = vmatpush3.xpose.msk.msra.mxu1 %vm883_vm4, %v2114_v19 }
 0x867   :  { %7615 = vmatprep.mubr.msk.f32.mxu1 %vm883_vm4, %v2108_v28 }
 0x868   :  { %v2112_v29 = vpop.permute.xlu1 %2111 }
 0x869   :  { %7613 = vmatprep.subr.msk.mxu1 %vm883_vm4, %v2112_v29 }
 0x86a   :  { %7614 = vmatpush3.xpose.msk.msra.mxu1 %vm883_vm4, %v2112_v29  ;;  %v2110_v30 = vpop.permute.xlu0 %2109 }
 0x86c   :  { %v2322_v32 = vpop.permute.xlu1 %2321 }
 0x86d   :  { %7616 = vmatmul.mubr.msk.f32.vlgmr.msra.gmra.mxu1 %vm883_vm4, %v2110_v30  ;;  %7625 = vmatprep.subr.mxu1 %v2322_v32 }
 0x86e   :  { %v8023_v34 = vpop.eup %8022  ;;  %7626 = vmatpush3.msra.mxu1 %v2322_v32 }
 0x86f   :  { %v2304_v35 = vsel %vm80_vm0, %v8023_v34, 0.0 }
 0x870   :  { %v8025_v40 = vpop.eup %8024  ;;  %v2320_v41 = vpop.permute.xlu1 %2319  ;;  %2305 = vadd.xlane.f32.xlu0 %v2304_v35 }
 0x871   :  { %7627 = vmatprep.subr.mxu1 %v2320_v41  ;;  %v2301_v44 = vsel %vm80_vm0, %v8025_v40, 0.0 }
 0x872   :  { %7628 = vmatpush3.msra.mxu1 %v2320_v41 }
 0x874   :  { %2302 = vadd.xlane.f32.xlu0 %v2301_v44  ;;  %v2409_v47 = vpop.permute.xlu1 %2408 }
 0x878   :  { %v2587_v51 = vpop.permute.xlu1 %2586 }
 0x87c   :  { %v2585_v53 = vpop.permute.xlu1 %2584 }
 0x880   :  { %v2203_v63 = vpop.permute.xlu1 %2202 }
 0x884   :  { %v2201_v5 = vpop.permute.xlu1 %2200 }
 0x88a   :  { %2410 = vrot.lane.b32.xlu0 %v8226_v13, %s8142_s26 }
 0x88e   :  { %2588 = vrot.lane.b32.xlu0 %v8207_v7, %s8143_s27 }
 0x892   :  { %2582 = vrot.lane.b32.xlu0 %v8214_v9, %s8144_s28 }
 0x896   :  { %2204 = vrot.lane.b32.xlu0 %v8263_v31, %s8140_s24 }
 0x89a   :  { %2198 = vrot.lane.b32.xlu0 %v8238_v20, %s8141_s25 }
 0x8f9   :  { %v2306_v45 = vpop.xlane.xlu0 %2305 }
 0x8fa   :  { %8026 = vrcp.f32 %v2306_v45 }
 0x8fd   :  { %v2303_v48 = vpop.xlane.xlu0 %2302 }
 0x8fe   :  { %8028 = vrcp.f32 %v2303_v48 }
 0x901   :  { %v2411_v50 = vpop.permute.xlu0 %2410 }
 0x902   :  { %7632 = vmatprep.subr.mxu1 %v2411_v50 }
 0x905   :  { %v2589_v52 = vpop.permute.xlu0 %2588 }
 0x907   :  { %v8027_v55 = vpop.eup %8026 }
 0x908   :  { %v2310_v61 = vmul.f32 %v8027_v55, %v8023_v34 }
 0x909   :  { %v2583_v54 = vpop.permute.xlu0 %2582 }
 0x90a   :  { %v2407_v4 = vmul.f32 %v2310_v61, %v2310_v61  ;;  %v2312_v25 = vsub.f32 1.0, %v2310_v61 }
 0x90b   :  { %v8029_v56 = vpop.eup %8028 }
 0x90c   :  { %v2308_v9 = vmul.f32 %v8029_v56, %v8025_v40  ;;  %v2314_v19 = vmul.f32 %v2312_v25, %v2310_v61 }
 0x90d   :  { %v2205_v58 = vpop.permute.xlu0 %2204 }
 0x90e   :  { %7618 = vmatprep.subr.msk.mxu0 %vm883_vm4, %v2205_v58  ;;  %7629 = vmatprep.mubr.msk.f32.mxu1 %vm80_vm0, %v2308_v9  ;;  %v2406_v62 = vmul.f32 %v2308_v9, %v2308_v9  ;;  %v2311_v26 = vsub.f32 1.0, %v2308_v9  ;;  %v2316_v34 = vmul.f32 %v2314_v19, %v2314_v19 }
 0x90f   :  { %7619 = vmatpush3.xpose.msk.msra.mxu0 %vm883_vm4, %v2205_v58  ;;  %7630 = vmatmul.mubr.msk.f32.vlgmr.msra.gmra.mxu1 %vm80_vm0, %v2310_v61 }
 0x910   :  { %7633 = vmatpush3.msra.mxu1 %v2411_v50  ;;  %7620 = vmatprep.subr.msk.mxu0 %vm883_vm4, %v2203_v63  ;;  %v2313_v28 = vmul.f32 %v2311_v26, %v2308_v9 }
 0x911   :  { %7634 = vmatprep.subr.mxu1 %v2409_v47  ;;  %7636 = vmatprep.mubr.msk.f32.mxu1 %vm80_vm0, %v2406_v62  ;;  %v2199_v2 = vpop.permute.xlu0 %2198 }
 0x912   :  { %7635 = vmatpush3.msra.mxu1 %v2409_v47  ;;  %7622 = vmatprep.mubr.msk.f32.mxu0 %vm883_vm4, %v2199_v2  ;;  %v2315_v44 = vmul.f32 %v2313_v28, %v2313_v28 }
 0x913   :  { %7646 = vmatprep.subr.msk.mxu1 %vm883_vm4, %v2589_v52  ;;  %7621 = vmatpush3.xpose.msk.msra.mxu0 %vm883_vm4, %v2203_v63 }
 0x914   :  { %7637 = vmatmul.mubr.msk.f32.vlgmr.msra.gmra.mxu1 %vm80_vm0, %v2407_v4 }
 0x915   :  { %7647 = vmatpush3.xpose.msk.msra.mxu1 %vm883_vm4, %v2589_v52  ;;  %7650 = vmatprep.mubr.msk.f32.mxu1 %vm883_vm4, %v2583_v54 }
 0x916   :  { %7648 = vmatprep.subr.msk.mxu1 %vm883_vm4, %v2587_v51  ;;  %7623 = vmatmul.mubr.msk.f32.vlgmr.msra.gmra.mxu0 %vm883_vm4, %v2201_v5 }
 0x919   :  { %7649 = vmatpush3.xpose.msk.msra.mxu1 %vm883_vm4, %v2587_v51 }
 0x91c   :  { %7651 = vmatmul.mubr.msk.f32.vlgmr.msra.gmra.mxu1 %vm883_vm4, %v2585_v53 }
 0x925   :  { %v8488_v11 = vpop.f32.mrf.mxu1 }
 0x927   :  { %v8490_v14 = vpop.f32.mrf.mxu1 }
 0x92d   :  { %v7617_v16 = vpop.f32.mrf.mxu1 }
 0x92f   :  { %v2189_v18 = vpop.f32.mrf.mxu1 }
 0x9cf   :  { %v7631_v23 = vpop.f32.mrf.mxu1 }
 0x9d1   :  { %v8492_v27 = vpop.f32.mrf.mxu1 }
 0x9d4   :  { %v8494_v29 = vpop.f32.mrf.mxu1 }
 0x9d6   :  { %v7624_v30 = vpop.f32.mrf.mxu0  ;;  %v8496_v45 = vpop.f32.mrf.mxu1 }
 0x9d7   :  { %v2286_v32 = vadd.f32 %v7624_v30, %v7617_v16 }
 0x9d8   :  { %v2280_v35 = vpop.f32.mrf.mxu0 }
 0x9d9   :  { %v2318_v40 = vmul.f32 %v2316_v34, %v2286_v32  ;;  %v2281_v41 = vadd.f32 %v2280_v35, %v2189_v18 }
 0x9db   :  { %v2317_v47 = vmul.f32 %v2315_v44, %v2281_v41 }
 0x9dc   :  { %v7652_v48 = vpop.f32.mrf.mxu1 }
 0x9dd   :  { %v2674_v50 = vsel %vm8250_vm8, %v7652_v48, -1e+30  ;;  %7643 = vmatprep.mubr.msk.f32.mxu0 %vm80_vm0, %v2317_v47 }
 0x9de   :  { %v2664_v51 = vpop.f32.mrf.mxu1  ;;  %v2860_v52 = vsel %vm80_vm0, %v2674_v50, -inf }
 0x9df   :  { %v2673_v53 = vsel %vm53_vm7, %v2664_v51, -1e+30  ;;  %2861 = vmax.xlane.f32.xlu1 %v2860_v52 }
 0x9e0   :  { %v2857_v54 = vsel %vm80_vm0, %v2673_v53, -inf }
 0x9e1   :  { %2858 = vmax.xlane.f32.xlu0 %v2857_v54 }
 0x9f0   :  { %2497 = vrot.lane.b32.xlu1 %v8263_v31, %s8142_s26 }
 0x9f4   :  { %2681 = vrot.lane.b32.xlu1 %v8226_v13, %s8143_s27 }
 0x9f7   :  { %2495 = vrot.lane.b32.xlu0 %v8270_v33, %s8142_s26 }
 0x9f8   :  { %2679 = vrot.lane.b32.xlu1 %v8230_v17, %s8143_s27 }
 0x9fb   :  { %2675 = vrot.lane.b32.xlu0 %v8222_v10, %s8144_s28 }
 0x9fc   :  { %2677 = vrot.lane.b32.xlu1 %v8317_v3, %s8144_s28 }
 0xa00   :  { %2887 = vrot.lane.b32.xlu1 %v8211_v8, %s8145_s29 }
 0xa04   :  { %3154 = vrot.lane.b32.xlu1 %v8412_v43, %s8132_s13 }
 0xa08   :  { %3162 = vrot.lane.b32.xlu1 %v7631_v23, %s8146_s30 }
 0xa68   :  { %v2862_v55 = vpop.xlane.xlu1 %2861 }
 0xa69   :  { %v2864_v56 = vsub.f32 %v2674_v50, %v2862_v55 }
 0xa6a   :  { %v2859_v9 = vpop.xlane.xlu0 %2858 }
 0xa6b   :  { %v2867_v58 = vmul.f32 1.442695, %v2864_v56  ;;  %v2863_v61 = vsub.f32 %v2673_v53, %v2859_v9 }
 0xa6c   :  { %v2498_v62 = vpop.permute.xlu1 %2497 }
 0xa6d   :  { %8030 = vpow2.f32 %v2867_v58  ;;  %v2865_v10 = vmul.f32 1.442695, %v2863_v61  ;;  %7639 = vmatprep.subr.mxu0 %v2498_v62 }
 0xa6e   :  { %7640 = vmatpush3.msra.mxu0 %v2498_v62  ;;  %v2496_v3 = vpop.permute.xlu0 %2495 }
 0xa6f   :  { %8032 = vpow2.f32 %v2865_v10  ;;  %7641 = vmatprep.subr.mxu0 %v2496_v3 }
 0xa70   :  { %v2682_v8 = vpop.permute.xlu1 %2681  ;;  %7642 = vmatpush3.msra.mxu0 %v2496_v3 }
 0xa71   :  { %7644 = vmatmul.mubr.msk.f32.vlgmr.msra.gmra.mxu0 %vm80_vm0, %v2318_v40  ;;  %7653 = vmatprep.subr.msk.mxu0 %vm883_vm4, %v2682_v8 }
 0xa72   :  { %v2676_v43 = vpop.permute.xlu0 %2675  ;;  %7654 = vmatpush3.xpose.msk.msra.mxu0 %vm883_vm4, %v2682_v8 }
 0xa73   :  { %7657 = vmatprep.mubr.msk.f32.mxu0 %vm883_vm4, %v2676_v43 }
 0xa74   :  { %v2680_v63 = vpop.permute.xlu1 %2679 }
 0xa75   :  { %7655 = vmatprep.subr.msk.mxu0 %vm883_vm4, %v2680_v63 }
 0xa76   :  { %7656 = vmatpush3.xpose.msk.msra.mxu0 %vm883_vm4, %v2680_v63 }
 0xa78   :  { %v2678_v2 = vpop.permute.xlu1 %2677 }
 0xa79   :  { %7658 = vmatmul.mubr.msk.f32.vlgmr.msra.gmra.mxu0 %vm883_vm4, %v2678_v2 }
 0xa7a   :  { %v8031_v4 = vpop.eup %8030 }
 0xa7b   :  { %v2872_v5 = vsel %vm80_vm0, %v8031_v4, 0.0 }
 0xa7c   :  { %v8033_v16 = vpop.eup %8032  ;;  %2873 = vadd.xlane.f32.xlu0 %v2872_v5  ;;  %v2888_v19 = vpop.permute.xlu1 %2887 }
 0xa7d   :  { %v2869_v18 = vsel %vm80_vm0, %v8033_v16, 0.0 }
 0xa80   :  { %2870 = vadd.xlane.f32.xlu0 %v2869_v18  ;;  %v3155_v47 = vpop.permute.xlu1 %3154 }
 0xa81   :  { %v3175_v52 = vsel %vm883_vm4, %v8404_v36, %v3155_v47  ;;  %v3296_v47 = vld [vmem:[#allocation4 + $0x140] sm:$0xff] }
 0xa84   :  { %v3163_v50 = vpop.permute.xlu1 %3162 }
 0xa85   :  { %v3177_v53 = vsel %vm80_vm0, %v3175_v52, %v3163_v50  ;;  %v3294_v52 = vld [vmem:[#allocation4 + $0x130] sm:$0xff] }
 0xa96   :  { %2889 = vrot.lane.b32.xlu0 %v8207_v7, %s8145_s29 }
 0xa9a   :  { %3152 = vrot.lane.b32.xlu0 %v8414_v46, %s8132_s13 }
 0xa9e   :  { %3160 = vrot.lane.b32.xlu0 %v8492_v27, %s8146_s30 }
 0xb05   :  { %v2874_v23 = vpop.xlane.xlu0 %2873 }
 0xb06   :  { %8034 = vrcp.f32 %v2874_v23 }
 0xb09   :  { %v2871_v25 = vpop.xlane.xlu0 %2870 }
 0xb0a   :  { %8036 = vrcp.f32 %v2871_v25 }
 0xb0d   :  { %v2890_v26 = vpop.permute.xlu0 %2889 }
 0xb0e   :  { %7667 = vmatprep.subr.mxu0 %v2890_v26 }
 0xb0f   :  { %7668 = vmatpush3.msra.mxu0 %v2890_v26 }
 0xb10   :  { %7669 = vmatprep.subr.mxu0 %v2888_v19 }
 0xb11   :  { %7670 = vmatpush3.msra.mxu0 %v2888_v19  ;;  %v3153_v48 = vpop.permute.xlu0 %3152 }
 0xb12   :  { %v3174_v55 = vsel %vm883_vm4, %v8406_v37, %v3153_v48 }
 0xb13   :  { %v8035_v28 = vpop.eup %8034 }
 0xb14   :  { %v8539_v7 = vmul.f32 %v8035_v28, %v8031_v4 }
 0xb15   :  { %v3161_v51 = vpop.permute.xlu0 %3160 }
 0xb16   :  { %v3176_v9 = vsel %vm80_vm0, %v3174_v55, %v3161_v51  ;;  %v8603_v51 = vld [vmem:[#allocation4 + $0xe8] sm:$0xf] }
 0xb17   :  { %v8037_v30 = vpop.eup %8036  ;;  %v3289_v55 = vld [vmem:[#allocation4 + $0x108] sm:$0xff] }
 0xb18   :  { %v8537_v32 = vmul.f32 %v8037_v30, %v8033_v16 }
 0xb1a   :  { %7671 = vmatprep.mubr.msk.f32.mxu0 %vm80_vm0, %v8537_v32  ;;  %v2974_v46 = vmul.f32 %v8537_v32, %v8537_v32 }
 0xb1b   :  { %7672 = vmatmul.mubr.msk.f32.vlgmr.msra.gmra.mxu0 %vm80_vm0, %v8539_v7 }
 0xb1c   :  { %7678 = vmatprep.mubr.msk.f32.mxu0 %vm80_vm0, %v2974_v46 }
 0xb31   :  { %v8548_v27 = vpop.f32.mrf.mxu0 }
 0xb33   :  { %v8550_v34 = vpop.f32.mrf.mxu0 }
 0xb39   :  { %v8552_v35 = vpop.f32.mrf.mxu0 }
 0xb3b   :  { %v8554_v40 = vpop.f32.mrf.mxu0 }
 0xbdb   :  { %v7673_v41 = vpop.f32.mrf.mxu0 }
 0xbdc   :  { %3170 = vrot.lane.b32.xlu1 %v7673_v41, %s8147_s3 }
 0xbdd   :  { %v2965_v44 = vpop.f32.mrf.mxu0 }
 0xbde   :  { %3168 = vrot.lane.b32.xlu0 %v2965_v44, %s8147_s3 }
 0xbe0   :  { %2770 = vrot.lane.b32.xlu1 %v8270_v33, %s8143_s27 }
 0xbe2   :  { %2772 = vrot.lane.b32.xlu0 %v8263_v31, %s8143_s27 }
 0xc4e   :  { %v3171_v54 = vpop.permute.xlu1 %3170 }
 0xc4f   :  { %v3180_v56 = vsel %vm3178_vm9, %v3177_v53, %v3171_v54 }
 0xc50   :  { %v3169_v58 = vpop.permute.xlu0 %3168  ;;  %v3212_v61 = vadd.f32 %v3180_v56, %v8185_v59 }
 0xc51   :  { %v3179_v62 = vsel %vm3178_vm9, %v3176_v9, %v3169_v58 }
 0xc52   :  { %v3219_v10 = vsel %vm621_vm3, %v3212_v61, 0.0  ;;  %v3211_v3 = vadd.f32 %v3179_v62, %v8187_v60  ;;  %v2771_v37 = vpop.permute.xlu1 %2770 }
 0xc53   :  { %3220 = vadd.xlane.f32.xlu1 %v3219_v10 }
 0xc54   :  { %v2773_v36 = vpop.permute.xlu0 %2772  ;;  %v3216_v8 = vsel %vm621_vm3, %v3211_v3, 0.0 }
 0xc55   :  { %3217 = vadd.xlane.f32.xlu0 %v3216_v8  ;;  %7660 = vmatprep.subr.msk.mxu1 %vm883_vm4, %v2773_v36 }
 0xc56   :  { %7661 = vmatpush3.xpose.msk.msra.mxu1 %vm883_vm4, %v2773_v36 }
 0xc57   :  { %7662 = vmatprep.subr.msk.mxu1 %vm883_vm4, %v2771_v37 }
 0xc5a   :  { %7663 = vmatpush3.xpose.msk.msra.mxu1 %vm883_vm4, %v2771_v37 }
 0xc64   :  { %2768 = vrot.lane.b32.xlu1 %v8283_v42, %s8144_s28 }
 0xc6b   :  { %2766 = vrot.lane.b32.xlu0 %v8238_v20, %s8144_s28 }
 0xcdc   :  { %v3221_v59 = vpop.xlane.xlu1 %3220 }
 0xcdd   :  { %v3224_v60 = vmul.f32 0.03125, %v3221_v59 }
 0xcde   :  { %v3218_v43 = vpop.xlane.xlu0 %3217 }
 0xcdf   :  { %v3226_v63 = vsub.f32 %v3212_v61, %v3224_v60  ;;  %v3223_v2 = vmul.f32 0.03125, %v3218_v43  ;;  %v3288_v60 = vld [vmem:[#allocation4 + $0x100] sm:$0xff]  ;;  %v3287_v43 = vld [vmem:[#allocation4 + $0xf8] sm:$0xff] }
 0xce0   :  { %v2769_v18 = vpop.permute.xlu1 %2768 }
 0xce1   :  { %v3225_v4 = vsub.f32 %v3211_v3, %v3223_v2  ;;  %v3228_v5 = vmul.f32 %v3226_v63, %v3226_v63  ;;  %v2879_v2 = vsub.f32 1.0, %v8537_v32 }
 0xce2   :  { %v2767_v16 = vpop.permute.xlu0 %2766 }
 0xce3   :  { %7664 = vmatprep.mubr.msk.f32.mxu1 %vm883_vm4, %v2767_v16  ;;  %v3232_v23 = vsel %vm621_vm3, %v3228_v5, 0.0  ;;  %v3227_v25 = vmul.f32 %v3225_v4, %v3225_v4  ;;  %v2881_v5 = vmul.f32 %v2879_v2, %v8537_v32  ;;  %v3261_v2 = vrot.slane %v8603_v51, 1 }
 0xce4   :  { %3233 = vadd.xlane.f32.xlu1 %v3232_v23  ;;  %7665 = vmatmul.mubr.msk.f32.vlgmr.msra.gmra.mxu1 %vm883_vm4, %v2769_v18 }
 0xce5   :  { %v3229_v42 = vsel %vm621_vm3, %v3227_v25, 0.0 }
 0xce6   :  { %3230 = vadd.xlane.f32.xlu0 %v3229_v42 }
 0xcf5   :  { %2976 = vrot.lane.b32.xlu1 %v8230_v17, %s8145_s29  ;;  %v8595_v17 = vshrl.u32 %v42_v21, 7  ;;  %v3295_v21 = vld [vmem:[#allocation4 + $0x138] sm:$0xff] }
 0xcf7   :  { %v8601_v50 = vsub.s32 0, %v8595_v17  ;;  %v8606_v53 = vsub.s32 2, %v8595_v17 }
 0xcf9   :  { %3063 = vrot.lane.b32.xlu1 %v8270_v33, %s8145_s29  ;;  %v3246_v54 = vrot.slane %v8603_v51, %v8601_v50  ;;  %v3252_v61 = vrot.slane %v8603_v51, %v8606_v53 }
 0xcfc   :  { %2978 = vrot.lane.b32.xlu0 %v8226_v13, %s8145_s29  ;;  %v2975_v13 = vmul.f32 %v8539_v7, %v8539_v7 }
 0xd00   :  { %3065 = vrot.lane.b32.xlu0 %v8263_v31, %s8145_s29  ;;  %v3297_v31 = vld [vmem:[#allocation4 + $0x148] sm:$0xff] }
 0xd6d   :  { %v3234_v20 = vpop.xlane.xlu1 %3233 }
 0xd6e   :  { %v3236_v26 = vmul.f32 0.03125, %v3234_v20  ;;  %v2883_v20 = vmul.f32 %v2881_v5, %v2881_v5 }
 0xd6f   :  { %v3231_v19 = vpop.xlane.xlu0 %3230 }
 0xd70   :  { %v3238_v28 = vadd.f32 1e-05, %v3236_v26  ;;  %v3235_v30 = vmul.f32 0.03125, %v3231_v19 }
 0xd71   :  { %v2977_v41 = vpop.permute.xlu1 %2976 }
 0xd72   :  { %8038 = vrsqrt.f32 %v3238_v28  ;;  %v3237_v46 = vadd.f32 1e-05, %v3235_v30 }
 0xd73   :  { %v2979_v44 = vpop.permute.xlu0 %2978 }
 0xd74   :  { %8040 = vrsqrt.f32 %v3237_v46  ;;  %7674 = vmatprep.subr.mxu0 %v2979_v44 }
 0xd75   :  { %7675 = vmatpush3.msra.mxu0 %v2979_v44  ;;  %v3064_v48 = vpop.permute.xlu1 %3063 }
 0xd76   :  { %7676 = vmatprep.subr.mxu0 %v2977_v41 }
 0xd77   :  { %7677 = vmatpush3.msra.mxu0 %v2977_v41  ;;  %v3066_v33 = vpop.permute.xlu0 %3065 }
 0xd78   :  { %7679 = vmatmul.mubr.msk.f32.vlgmr.msra.gmra.mxu0 %vm80_vm0, %v2975_v13  ;;  %7681 = vmatprep.subr.mxu1 %v3066_v33 }
 0xd79   :  { %7682 = vmatpush3.msra.mxu1 %v3066_v33  ;;  %7688 = vmatprep.subr.mxu0 %v3297_v31 }
 0xd7a   :  { %7683 = vmatprep.subr.mxu1 %v3064_v48  ;;  %7689 = vmatpush3.msra.mxu0 %v3297_v31 }
 0xd7b   :  { %7684 = vmatpush3.msra.mxu1 %v3064_v48  ;;  %7690 = vmatprep.subr.mxu0 %v3296_v47 }
 0xd7c   :  { %7691 = vmatpush3.msra.mxu0 %v3296_v47 }
 0xd7d   :  { %7692 = vmatprep.subr.mxu0 %v3295_v21 }
 0xd7e   :  { %7693 = vmatpush3.msra.mxu0 %v3295_v21 }
 0xd7f   :  { %v8610_v56 = vpop.eup %8038  ;;  %7694 = vmatprep.subr.mxu0 %v3294_v52 }
 0xd80   :  { %v8613_v9 = vmul.f32 %v8610_v56, %v3226_v63  ;;  %7695 = vmatpush3.msra.mxu0 %v3294_v52  ;;  %v3286_v63 = vld [vmem:[#allocation4 + $0xf0] sm:$0xff] }
 0xd81   :  { %v8615_v58 = vpop.eup %8040  ;;  %7710 = vmatprep.subr.mxu0 %v3289_v55 }
 0xd82   :  { %v8620_v62 = vmul.f32 %v8615_v58, %v3225_v4  ;;  %v3248_v10 = vmul.f32 %v3246_v54, %v8613_v9  ;;  %v2880_v4 = vsub.f32 1.0, %v8539_v7 }
 0xd84   :  { %v3247_v3 = vmul.f32 %v3246_v54, %v8620_v62  ;;  %v3254_v36 = vadd.f32 %v3252_v61, %v3248_v10  ;;  %v2882_v18 = vmul.f32 %v2880_v4, %v8539_v7  ;;  %v7039_v7 = vld [vmem:[#allocation4 + $0x150] ss:$0 sm:$0xff]  ;;  %v2574_v10 = vadd.f32 %v8550_v34, %v8496_v45 }
 0xd86   :  { %v3253_v8 = vadd.f32 %v3252_v61, %v3247_v3  ;;  %v3299_v59 = vmul.f32 %v3254_v36, %v3254_v36  ;;  %v2884_v26 = vmul.f32 %v2882_v18, %v2882_v18  ;;  %v2006_v61 = vadd.f32 %v8490_v14, %v8418_v57 }
 0xd87   :  { %v2011_v3 = vadd.f32 %v8488_v11, %v8416_v49  ;;  %v1443_v18 = vadd.f32 %v8408_v38, %v8324_v12  ;;  %v3271_v12 = vmul.f32 %v8613_v9, %v8613_v9  ;;  %v3650_v9 = vld [vmem:[#allocation4 + $0x1c0] sm:$0xff] }
 0xd88   :  { %v3298_v37 = vmul.f32 %v3253_v8, %v3253_v8 }
 0xd8a   :  { %7696 = vmatprep.mubr.msk.f32.mxu0 %vm621_vm3, %v3298_v37 }
 0xd8b   :  { %7697 = vmatmul.mubr.msk.f32.vlgmr.msra.gmra.mxu0 %vm621_vm3, %v3299_v59 }
 0xd8c   :  { %7711 = vmatpush3.msra.mxu0 %v3289_v55  ;;  %7718 = vmatprep.mubr.msk.f32.mxu0 %vm621_vm3, %v3253_v8 }
 0xd8d   :  { %7712 = vmatprep.subr.mxu0 %v3288_v60 }
 0xd8e   :  { %7713 = vmatpush3.msra.mxu0 %v3288_v60 }
 0xd8f   :  { %7714 = vmatprep.subr.mxu0 %v3287_v43 }
 0xd90   :  { %7715 = vmatpush3.msra.mxu0 %v3287_v43 }
 0xd91   :  { %7716 = vmatprep.subr.mxu0 %v3286_v63 }
 0xd92   :  { %7717 = vmatpush3.msra.mxu0 %v3286_v63  ;;  %v3259_v63 = vmul.f32 %v8603_v51, %v8603_v51 }
 0xd93   :  { %7719 = vmatmul.mubr.msk.f32.vlgmr.msra.gmra.mxu0 %vm621_vm3, %v3254_v36  ;;  %7732 = vmatprep.subr.mxu0 %v3650_v9 }
 0xd94   :  { %7733 = vmatpush3.msra.mxu0 %v3650_v9 }
 0xda4   :  { %v7666_v16 = vpop.f32.mrf.mxu1 }
 0xda5   :  { %v2854_v23 = vadd.f32 %v7666_v16, %v8552_v35 }
 0xda6   :  { %v2848_v25 = vpop.f32.mrf.mxu1 }
 0xda7   :  { %v2849_v42 = vadd.f32 %v2848_v25, %v8554_v40  ;;  %v2886_v28 = vmul.f32 %v2884_v26, %v2854_v23  ;;  %v8683_v23 = vsub.s32 1, %v8595_v17  ;;  %v3263_v25 = vadd.f32 %v3261_v2, %v3259_v63 }
 0xda8   :  { %v3270_v63 = vmul.f32 %v8620_v62, %v8620_v62 }
 0xda9   :  { %v2885_v19 = vmul.f32 %v2883_v20, %v2849_v42 }
 0xdab   :  { %7685 = vmatprep.mubr.msk.f32.mxu1 %vm80_vm0, %v2885_v19  ;;  %v3275_v19 = vrot.slane %v8603_v51, %v8683_v23 }
 0xdac   :  { %7686 = vmatmul.mubr.msk.f32.vlgmr.msra.gmra.mxu1 %vm80_vm0, %v2886_v28 }
 0xe38   :  { %v7680_v30 = vpop.f32.mrf.mxu0 }
 0xe3a   :  { %v8636_v46 = vpop.f32.mrf.mxu0 }
 0xe4b   :  { %v8638_v32 = vpop.f32.mrf.mxu0 }
 0xe4d   :  { %v8640_v41 = vpop.f32.mrf.mxu0 }
 0xe53   :  { %v7720_v35 = vpop.f32.mrf.mxu0 }
 0xe54   :  { %v3545_v44 = vadd.f32 %v7720_v35, %v7039_v7 }
 0xe55   :  { %v3539_v13 = vpop.f32.mrf.mxu0 }
 0xe56   :  { %vm3556_vm10 = vcmp.gt.f32.partialorder %v3545_v44, 0.0  ;;  %v3540_v40 = vadd.f32 %v7039_v7, %v3539_v13  ;;  %v3267_v7 = vrot.slane %v3263_v25, %v8601_v50 }
 0xe57   :  { %v8643_v31 = vsel %vm3556_vm10, 1.0, %v8134_v0 }
 0xe58   :  { %v3562_v33 = vmul.f32 %v8643_v31, %v3545_v44  ;;  %vm3555_vm11 = vcmp.gt.f32.partialorder %v3540_v40, 0.0  ;;  %v3277_v44 = vmul.f32 %v3275_v19, %v3271_v12 }
 0xe59   :  { %v8647_v47 = vsel %vm3555_vm11, 1.0, %v8134_v0 }
 0xe5a   :  { %v3561_v48 = vmul.f32 %v8647_v47, %v3540_v40  ;;  %v3566_v21 = vadd.f32 %v3562_v33, %v3254_v36  ;;  %v2579_v36 = vadd.f32 %v8548_v27, %v8494_v29 }
 0xe5c   :  { %v3573_v52 = vsel %vm621_vm3, %v3566_v21, 0.0  ;;  %v3565_v54 = vadd.f32 %v3561_v48, %v3253_v8  ;;  %v3293_v48 = vld [vmem:[#allocation4 + $0x128] sm:$0xff] }
 0xe5d   :  { %3574 = vadd.xlane.f32.xlu1 %v3573_v52  ;;  %7699 = vmatprep.subr.mxu1 %v3293_v48 }
 0xe5e   :  { %v3570_v55 = vsel %vm621_vm3, %v3565_v54, 0.0  ;;  %7700 = vmatpush3.msra.mxu1 %v3293_v48 }
 0xe5f   :  { %3571 = vadd.xlane.f32.xlu0 %v3570_v55  ;;  %v3649_v55 = vld [vmem:[#allocation4 + $0x1b8] sm:$0xff] }
 0xe60   :  { %7734 = vmatprep.subr.mxu0 %v3649_v55 }
 0xe61   :  { %7735 = vmatpush3.msra.mxu0 %v3649_v55 }
 0xe6c   :  { %v7687_v8 = vpop.f32.mrf.mxu1 }
 0xe6d   :  { %v3147_v37 = vadd.f32 %v7687_v8, %v7680_v30  ;;  %v3256_v30 = vmul.f32 %v8610_v56, %v8610_v56  ;;  %v3291_v56 = vld [vmem:[#allocation4 + $0x118] sm:$0xff] }
 0xe6e   :  { %3183 = vrot.lane.b32.xlu1 %v2006_v61, %s8132_s13  ;;  %v3141_v33 = vpop.f32.mrf.mxu1  ;;  %v3648_v61 = vld [vmem:[#allocation4 + $0x1b0] sm:$0xff] }
 0xe6f   :  { %v3142_v52 = vadd.f32 %v3141_v33, %v8636_v46  ;;  %7736 = vmatprep.subr.mxu0 %v3648_v61  ;;  %v3647_v46 = vld [vmem:[#allocation4 + $0x1a8] sm:$0xff] }
 0xe70   :  { %7737 = vmatpush3.msra.mxu0 %v3648_v61 }
 0xe71   :  { %7738 = vmatprep.subr.mxu0 %v3647_v46 }
 0xe72   :  { %3191 = vrot.lane.b32.xlu1 %v2574_v10, %s8146_s30  ;;  %7739 = vmatpush3.msra.mxu0 %v3647_v46 }
 0xe75   :  { %3185 = vrot.lane.b32.xlu0 %v2011_v3, %s8132_s13 }
 0xe76   :  { %3193 = vrot.lane.b32.xlu1 %v2579_v36, %s8146_s30 }
 0xe7a   :  { %3201 = vrot.lane.b32.xlu1 %v3147_v37, %s8147_s3  ;;  %v1438_v37 = vadd.f32 %v8410_v39, %v8326_v15  ;;  %v8710_v39 = vsub.s32 3, %v8595_v17  ;;  %v3641_v17 = vld [vmem:[#allocation4 + $0x178] sm:$0xff] }
 0xee6   :  { %v3575_v57 = vpop.xlane.xlu1 %3574 }
 0xee7   :  { %v3577_v14 = vmul.f32 0.03125, %v3575_v57 }
 0xee8   :  { %v3572_v59 = vpop.xlane.xlu0 %3571 }
 0xee9   :  { %v8665_v45 = vsub.f32 %v3566_v21, %v3577_v14  ;;  %v3576_v34 = vmul.f32 0.03125, %v3572_v59  ;;  %v3292_v21 = vld [vmem:[#allocation4 + $0x120] sm:$0xff] }
 0xeea   :  { %v8667_v60 = vpop.permute.xlu1 %3183  ;;  %7701 = vmatprep.subr.mxu1 %v3292_v21 }
 0xeeb   :  { %v8669_v49 = vsub.f32 %v3565_v54, %v3576_v34  ;;  %v3581_v11 = vmul.f32 %v8665_v45, %v8665_v45  ;;  %7702 = vmatpush3.msra.mxu1 %v3292_v21  ;;  %v3290_v54 = vld [vmem:[#allocation4 + $0x110] sm:$0xff]  ;;  %v3205_v14 = vsel %vm883_vm4, %v1438_v37, %v8667_v60  ;;  %v3276_v60 = vmul.f32 %v3275_v19, %v3270_v63  ;;  %v7042_v21 = vld [vmem:[#allocation4 + $0x158] ss:$0 sm:$0xff] }
 0xeec   :  { %v3186_v5 = vpop.permute.xlu0 %3185  ;;  %7703 = vmatprep.subr.mxu1 %v3291_v56 }
 0xeed   :  { %v3585_v29 = vsel %vm621_vm3, %v3581_v11, 0.0  ;;  %v3580_v27 = vmul.f32 %v8669_v49, %v8669_v49  ;;  %v3206_v42 = vsel %vm883_vm4, %v1443_v18, %v3186_v5  ;;  %7704 = vmatpush3.msra.mxu1 %v3291_v56  ;;  %v8714_v5 = vld [vmem:[#allocation4 + $0x160] sm:$0xf] }
 0xeee   :  { %3586 = vadd.xlane.f32.xlu0 %v3585_v29  ;;  %v3192_v43 = vpop.permute.xlu1 %3191  ;;  %7705 = vmatprep.subr.mxu1 %v3290_v54  ;;  %v3614_v33 = vrot.slane %v8714_v5, 1 }
 0xeef   :  { %v3582_v4 = vsel %vm621_vm3, %v3580_v27, 0.0  ;;  %7706 = vmatpush3.msra.mxu1 %v3290_v54  ;;  %v3207_v34 = vsel %vm80_vm0, %v3205_v14, %v3192_v43  ;;  %v3255_v27 = vmul.f32 %v8615_v58, %v8615_v58  ;;  %v3283_v43 = vrot.slane %v8603_v51, %v8710_v39 }
 0xef0   :  { %v3599_v58 = vrot.slane %v8714_v5, %v8601_v50 }
 0xef2   :  { %3583 = vadd.xlane.f32.xlu0 %v3582_v4  ;;  %v3194_v16 = vpop.permute.xlu1 %3193 }
 0xef3   :  { %v3208_v20 = vsel %vm80_vm0, %v3206_v42, %v3194_v16 }
 0xef6   :  { %v3202_v26 = vpop.permute.xlu1 %3201 }
 0xef7   :  { %v3210_v28 = vsel %vm3178_vm9, %v3208_v20, %v3202_v26  ;;  %v3640_v20 = vld [vmem:[#allocation4 + $0x170] sm:$0xff]  ;;  %v3605_v26 = vrot.slane %v8714_v5, %v8606_v53 }
 0xef8   :  { %v3214_v38 = vadd.f32 %v3210_v28, %v8203_v6  ;;  %v3642_v6 = vld [vmem:[#allocation4 + $0x180] sm:$0xff]  ;;  %v3639_v28 = vld [vmem:[#allocation4 + $0x168] sm:$0xff] }
 0xef9   :  { %7721 = vmatprep.subr.mxu1 %v3642_v6 }
 0xefa   :  { %v3258_v35 = vmul.f32 %v3256_v30, %v3214_v38  ;;  %v3646_v38 = vld [vmem:[#allocation4 + $0x1a0] sm:$0xff] }
 0xefc   :  { %v3269_v13 = vmul.f32 %v3267_v7, %v3258_v35  ;;  %v3645_v35 = vld [vmem:[#allocation4 + $0x198] sm:$0xff] }
 0xefe   :  { %v3279_v40 = vadd.f32 %v3277_v44, %v3269_v13  ;;  %v3644_v44 = vld [vmem:[#allocation4 + $0x190] sm:$0xff]  ;;  %v3643_v13 = vld [vmem:[#allocation4 + $0x188] sm:$0xff] }
 0xf00   :  { %v3285_v62 = vadd.f32 %v3283_v43, %v3279_v40  ;;  %v3612_v40 = vmul.f32 %v8714_v5, %v8714_v5 }
 0xf08   :  { %3199 = vrot.lane.b32.xlu0 %v3142_v52, %s8147_s3 }
 0xf77   :  { %v3587_v10 = vpop.xlane.xlu0 %3586 }
 0xf78   :  { %v3589_v3 = vmul.f32 0.03125, %v3587_v10  ;;  %v3628_v10 = vrot.slane %v8714_v5, %v8683_v23 }
 0xf7a   :  { %v3591_v36 = vadd.f32 1e-05, %v3589_v3 }
 0xf7b   :  { %v3584_v8 = vpop.xlane.xlu0 %3583 }
 0xf7c   :  { %8042 = vrsqrt.f32 %v3591_v36  ;;  %v3588_v57 = vmul.f32 0.03125, %v3584_v8 }
 0xf7e   :  { %v3590_v59 = vadd.f32 1e-05, %v3588_v57 }
 0xf7f   :  { %v3200_v11 = vpop.permute.xlu0 %3199 }
 0xf80   :  { %8044 = vrsqrt.f32 %v3590_v59  ;;  %v3209_v29 = vsel %vm3178_vm9, %v3207_v34, %v3200_v11 }
 0xf81   :  { %v3213_v15 = vadd.f32 %v3209_v29, %v8193_v1 }
 0xf83   :  { %v3257_v2 = vmul.f32 %v3255_v27, %v3213_v15 }
 0xf85   :  { %v3268_v4 = vmul.f32 %v3267_v7, %v3257_v2  ;;  %v3636_v2 = vrot.slane %v8714_v5, %v8710_v39 }
 0xf87   :  { %v3278_v16 = vadd.f32 %v3276_v60, %v3268_v4 }
 0xf89   :  { %v8043_v18 = vpop.eup %8042  ;;  %v3284_v25 = vadd.f32 %v3283_v43, %v3278_v16 }
 0xf8a   :  { %v3595_v1 = vmul.f32 %v8043_v18, %v8665_v45  ;;  %v3609_v46 = vmul.f32 %v8043_v18, %v8043_v18 }
 0xf8b   :  { %7707 = vmatprep.mubr.msk.f32.mxu1 %vm621_vm3, %v3284_v25 }
 0xf8c   :  { %7708 = vmatmul.mubr.msk.f32.vlgmr.msra.gmra.mxu1 %vm621_vm3, %v3285_v62  ;;  %v3601_v51 = vmul.f32 %v3599_v58, %v3595_v1  ;;  %v3624_v8 = vmul.f32 %v3595_v1, %v3595_v1 }
 0xf8d   :  { %v8045_v42 = vpop.eup %8044  ;;  %7722 = vmatpush3.msra.mxu1 %v3642_v6  ;;  %v3616_v6 = vadd.f32 %v3614_v33, %v3612_v40 }
 0xf8e   :  { %7723 = vmatprep.subr.mxu1 %v3641_v17  ;;  %v3594_v19 = vmul.f32 %v8045_v42, %v8669_v49  ;;  %v8724_v45 = vadd.f32 %v3605_v26, %v3601_v51  ;;  %v3608_v14 = vmul.f32 %v8045_v42, %v8045_v42 }
 0xf8f   :  { %7724 = vmatpush3.msra.mxu1 %v3641_v17  ;;  %v3620_v36 = vrot.slane %v3616_v6, %v8601_v50 }
 0xf90   :  { %7725 = vmatprep.subr.mxu1 %v3640_v20  ;;  %v3600_v30 = vmul.f32 %v3599_v58, %v3594_v19  ;;  %v3733_v49 = vmul.f32 %v8724_v45, %v8724_v45  ;;  %v3623_v34 = vmul.f32 %v3594_v19, %v3594_v19 }
 0xf91   :  { %7726 = vmatpush3.msra.mxu1 %v3640_v20 }
 0xf92   :  { %7727 = vmatprep.subr.mxu1 %v3639_v28  ;;  %v8726_v7 = vadd.f32 %v3605_v26, %v3600_v30  ;;  %v3629_v15 = vmul.f32 %v3628_v10, %v3623_v34 }
 0xf93   :  { %7728 = vmatpush3.msra.mxu1 %v3639_v28 }
 0xf94   :  { %7729 = vmatprep.mubr.msk.f32.mxu1 %vm621_vm3, %v8726_v7  ;;  %v3732_v12 = vmul.f32 %v8726_v7, %v8726_v7  ;;  %7743 = vmatprep.subr.mxu1 %v3646_v38 }
 0xf95   :  { %7730 = vmatmul.mubr.msk.f32.vlgmr.msra.gmra.mxu1 %vm621_vm3, %v8724_v45 }
 0xf96   :  { %7740 = vmatprep.mubr.msk.f32.mxu0 %vm621_vm3, %v3732_v12  ;;  %7744 = vmatpush3.msra.mxu1 %v3646_v38 }
 0xf97   :  { %7741 = vmatmul.mubr.msk.f32.vlgmr.msra.gmra.mxu0 %vm621_vm3, %v3733_v49  ;;  %7745 = vmatprep.subr.mxu1 %v3645_v35 }
 0xf98   :  { %7746 = vmatpush3.msra.mxu1 %v3645_v35 }
 0xf99   :  { %7747 = vmatprep.subr.mxu1 %v3644_v44 }
 0xf9a   :  { %7748 = vmatpush3.msra.mxu1 %v3644_v44 }
 0xf9b   :  { %7749 = vmatprep.subr.mxu1 %v3643_v13 }
 0xf9c   :  { %7750 = vmatpush3.msra.mxu1 %v3643_v13 }
0x104c   :  { %v7709_v48 = vpop.f32.mrf.mxu1 }
0x104d   :  { %v3459_v52 = vadd.f32 %v7709_v48, %v8638_v32 }
0x104e   :  { %v3453_v56 = vpop.f32.mrf.mxu1 }
0x104f   :  { %v3554_v54 = vadd.f32 %v7042_v21, %v3459_v52  ;;  %v3454_v9 = vadd.f32 %v3453_v56, %v8640_v41 }
0x1051   :  { %v3564_v55 = vmul.f32 %v8643_v31, %v3554_v54  ;;  %v3553_v61 = vadd.f32 %v7042_v21, %v3454_v9  ;;  %v3630_v31 = vmul.f32 %v3628_v10, %v3624_v8 }
0x1053   :  { %v3568_v3 = vadd.f32 %v3564_v55, %v3285_v62  ;;  %v3563_v37 = vmul.f32 %v8647_v47, %v3553_v61 }
0x1055   :  { %v3611_v57 = vmul.f32 %v3609_v46, %v3568_v3  ;;  %v3567_v32 = vadd.f32 %v3563_v37, %v3284_v25  ;;  %v8748_v59 = vpop.f32.mrf.mxu1 }
0x1056   :  { %3910 = vrot.lane.b32.xlu0 %v8748_v59, %s8135_s0  ;;  %v8782_v25 = vmul.f32 0.17677669, %v8748_v59  ;;  %v3903_v3 = vmul.f32 %v8748_v59, %v8748_v59 }
0x1057   :  { %v3622_v41 = vmul.f32 %v3620_v36, %v3611_v57  ;;  %v3610_v11 = vmul.f32 %v3608_v14, %v3567_v32  ;;  %v8752_v29 = vpop.f32.mrf.mxu1  ;;  %v7742_v58 = vpop.f32.mrf.mxu0 }
0x1058   :  { %3908 = vrot.lane.b32.xlu1 %v8752_v29, %s8135_s0  ;;  %v8757_v27 = vmul.f32 0.17677669, %v8752_v29  ;;  %v3902_v38 = vmul.f32 %v8752_v29, %v8752_v29  ;;  %v8828_v6 = vmul.f32 %v8782_v25, %v8782_v25 }
0x1059   :  { %v3632_v47 = vadd.f32 %v3630_v31, %v3622_v41  ;;  %v3621_v63 = vmul.f32 %v3620_v36, %v3610_v11  ;;  %v3806_v1 = vpop.f32.mrf.mxu0 }
0x105a   :  { %7758 = vmatprep.mubr.msk.f32.mxu0 %vm883_vm4, %v8757_v27  ;;  %v8771_v16 = vmul.f32 %v8757_v27, %v8757_v27 }
0x105b   :  { %v3631_v60 = vadd.f32 %v3629_v15, %v3621_v63  ;;  %v8765_v43 = vadd.f32 %v3636_v2, %v3632_v47 }
0x105d   :  { %v8763_v4 = vadd.f32 %v3636_v2, %v3631_v60 }
0x105f   :  { %7751 = vmatprep.mubr.msk.f32.mxu1 %vm621_vm3, %v8763_v4 }
0x1060   :  { %7752 = vmatmul.mubr.msk.f32.vlgmr.msra.gmra.mxu1 %vm621_vm3, %v8765_v43 }
0x1061   :  { %7765 = vmatprep.mubr.msk.f32.mxu1 %vm883_vm4, %v8771_v16 }
0x10c8   :  { %v3911_v18 = vpop.permute.xlu0 %3910 }
0x10c9   :  { %7754 = vmatprep.subr.msk.mxu0 %vm883_vm4, %v3911_v18 }
0x10ca   :  { %7755 = vmatpush3.xpose.msk.msra.mxu0 %vm883_vm4, %v3911_v18  ;;  %v3909_v5 = vpop.permute.xlu1 %3908 }
0x10cb   :  { %7756 = vmatprep.subr.msk.mxu0 %vm883_vm4, %v3909_v5 }
0x10ce   :  { %7757 = vmatpush3.xpose.msk.msra.mxu0 %vm883_vm4, %v3909_v5 }
0x10d1   :  { %7759 = vmatmul.mubr.msk.f32.vlgmr.msra.gmra.mxu0 %vm883_vm4, %v8782_v25 }
0x1120   :  { %v7753_v62 = vpop.f32.mrf.mxu1 }
0x1121   :  { %v8799_v49 = vadd.f32 %v7753_v62, %v7742_v58 }
0x1122   :  { %v3887_v17 = vpop.f32.mrf.mxu1 }
0x1123   :  { %v8786_v42 = vadd.f32 %v3887_v17, %v3806_v1  ;;  %v8843_v36 = vadd.f32 %v3903_v3, %v8799_v49  ;;  %v8857_v58 = vmul.f32 0.03125, %v8799_v49 }
0x1125   :  { %v8789_v20 = vmul.f32 0.03125, %v8786_v42  ;;  %v8818_v35 = vadd.f32 %v3902_v38, %v8786_v42 }
0x1127   :  { %7772 = vmatprep.mubr.msk.f32.mxu0 %vm883_vm4, %v8789_v20 }
0x1191   :  { %v7760_v51 = vpop.f32.mrf.mxu0 }
0x1192   :  { %v3998_v26 = vsel %vm8250_vm8, %v7760_v51, -1e+30 }
0x1193   :  { %v4184_v19 = vsel %vm80_vm0, %v3998_v26, -inf  ;;  %v3988_v28 = vpop.f32.mrf.mxu0 }
0x1194   :  { %v3997_v30 = vsel %vm53_vm7, %v3988_v28, -1e+30  ;;  %4185 = vmax.xlane.f32.xlu1 %v4184_v19 }
0x1195   :  { %v4181_v12 = vsel %vm80_vm0, %v3997_v30, -inf }
0x1196   :  { %4182 = vmax.xlane.f32.xlu0 %v4181_v12 }
0x11a5   :  { %4003 = vrot.lane.b32.xlu1 %v8799_v49, %s8135_s0 }
0x11a9   :  { %4213 = vrot.lane.b32.xlu1 %v8748_v59, %s8136_s1 }
0x11ac   :  { %4001 = vrot.lane.b32.xlu0 %v8786_v42, %s8135_s0 }
0x11ad   :  { %4211 = vrot.lane.b32.xlu1 %v8752_v29, %s8136_s1 }
0x11b1   :  { %4300 = vrot.lane.b32.xlu1 %v8786_v42, %s8136_s1 }
0x11b5   :  { %4478 = vrot.lane.b32.xlu1 %v8752_v29, %s8137_s21 }
0x11b9   :  { %4476 = vrot.lane.b32.xlu1 %v8782_v25, %s8138_s22 }
0x11bd   :  { %4092 = vrot.lane.b32.xlu1 %v8818_v35, %s8135_s0 }
0x121d   :  { %v4186_v44 = vpop.xlane.xlu1 %4185 }
0x121e   :  { %v4188_v13 = vsub.f32 %v3998_v26, %v4186_v44 }
0x121f   :  { %v4183_v40 = vpop.xlane.xlu0 %4182 }
0x1220   :  { %v4191_v33 = vmul.f32 1.442695, %v4188_v13  ;;  %v4187_v48 = vsub.f32 %v3997_v30, %v4183_v40 }
0x1221   :  { %v4004_v21 = vpop.permute.xlu1 %4003 }
0x1222   :  { %8046 = vpow2.f32 %v4191_v33  ;;  %v4189_v52 = vmul.f32 1.442695, %v4187_v48  ;;  %7761 = vmatprep.subr.msk.mxu1 %vm883_vm4, %v4004_v21 }
0x1223   :  { %7762 = vmatpush3.xpose.msk.msra.mxu1 %vm883_vm4, %v4004_v21  ;;  %v4002_v56 = vpop.permute.xlu0 %4001 }
0x1224   :  { %8048 = vpow2.f32 %v4189_v52  ;;  %7763 = vmatprep.subr.msk.mxu1 %vm883_vm4, %v4002_v56 }
0x1225   :  { %v4214_v54 = vpop.permute.xlu1 %4213 }
0x1227   :  { %7764 = vmatpush3.xpose.msk.msra.mxu1 %vm883_vm4, %v4002_v56 }
0x1228   :  { %7775 = vmatprep.subr.mxu1 %v4214_v54 }
0x1229   :  { %v4212_v9 = vpop.permute.xlu1 %4211 }
0x122a   :  { %7766 = vmatmul.mubr.msk.f32.vlgmr.msra.gmra.mxu1 %vm883_vm4, %v8828_v6 }
0x122b   :  { %7776 = vmatpush3.msra.mxu1 %v4214_v54 }
0x122c   :  { %7777 = vmatprep.subr.mxu1 %v4212_v9 }
0x122d   :  { %7778 = vmatpush3.msra.mxu1 %v4212_v9  ;;  %v4301_v37 = vpop.permute.xlu1 %4300 }
0x122f   :  { %v8047_v55 = vpop.eup %8046 }
0x1230   :  { %v4196_v61 = vsel %vm80_vm0, %v8047_v55, 0.0 }
0x1231   :  { %v8049_v46 = vpop.eup %8048  ;;  %4197 = vadd.xlane.f32.xlu0 %v4196_v61  ;;  %v4479_v14 = vpop.permute.xlu1 %4478 }
0x1232   :  { %v4193_v10 = vsel %vm80_vm0, %v8049_v46, 0.0 }
0x1235   :  { %4194 = vadd.xlane.f32.xlu0 %v4193_v10  ;;  %v4477_v41 = vpop.permute.xlu1 %4476 }
0x1239   :  { %v4093_v18 = vpop.permute.xlu1 %4092 }
0x124b   :  { %4302 = vrot.lane.b32.xlu0 %v8799_v49, %s8136_s1 }
0x124f   :  { %4480 = vrot.lane.b32.xlu0 %v8748_v59, %s8137_s21 }
0x1253   :  { %4474 = vrot.lane.b32.xlu0 %v8757_v27, %s8138_s22 }
0x1257   :  { %4094 = vrot.lane.b32.xlu0 %v8843_v36, %s8135_s0 }
0x12ba   :  { %v4198_v8 = vpop.xlane.xlu0 %4197 }
0x12bb   :  { %8050 = vrcp.f32 %v4198_v8 }
0x12be   :  { %v4195_v57 = vpop.xlane.xlu0 %4194 }
0x12bf   :  { %8052 = vrcp.f32 %v4195_v57 }
0x12c2   :  { %v4303_v32 = vpop.permute.xlu0 %4302 }
0x12c3   :  { %7782 = vmatprep.subr.mxu1 %v4303_v32 }
0x12c6   :  { %v4481_v34 = vpop.permute.xlu0 %4480 }
0x12c8   :  { %v8051_v11 = vpop.eup %8050 }
0x12c9   :  { %v4202_v2 = vmul.f32 %v8051_v11, %v8047_v55 }
0x12ca   :  { %v4475_v31 = vpop.permute.xlu0 %4474 }
0x12cb   :  { %v4299_v5 = vmul.f32 %v4202_v2, %v4202_v2  ;;  %v4204_v51 = vsub.f32 1.0, %v4202_v2 }
0x12cc   :  { %v8053_v47 = vpop.eup %8052 }
0x12cd   :  { %v4200_v63 = vmul.f32 %v8053_v47, %v8049_v46  ;;  %v4206_v28 = vmul.f32 %v4204_v51, %v4202_v2 }
0x12ce   :  { %v4095_v15 = vpop.permute.xlu0 %4094 }
0x12cf   :  { %7768 = vmatprep.subr.msk.mxu0 %vm883_vm4, %v4095_v15  ;;  %7779 = vmatprep.mubr.msk.f32.mxu1 %vm80_vm0, %v4200_v63  ;;  %v4298_v60 = vmul.f32 %v4200_v63, %v4200_v63  ;;  %v4203_v26 = vsub.f32 1.0, %v4200_v63  ;;  %v4208_v13 = vmul.f32 %v4206_v28, %v4206_v28 }
0x12d0   :  { %7769 = vmatpush3.xpose.msk.msra.mxu0 %vm883_vm4, %v4095_v15  ;;  %7780 = vmatmul.mubr.msk.f32.vlgmr.msra.gmra.mxu1 %vm80_vm0, %v4202_v2 }
0x12d1   :  { %7783 = vmatpush3.msra.mxu1 %v4303_v32  ;;  %7770 = vmatprep.subr.msk.mxu0 %vm883_vm4, %v4093_v18  ;;  %v4205_v30 = vmul.f32 %v4203_v26, %v4200_v63 }
0x12d2   :  { %7784 = vmatprep.subr.mxu1 %v4301_v37  ;;  %7786 = vmatprep.mubr.msk.f32.mxu1 %vm80_vm0, %v4298_v60 }
0x12d3   :  { %7785 = vmatpush3.msra.mxu1 %v4301_v37  ;;  %v4207_v21 = vmul.f32 %v4205_v30, %v4205_v30 }
0x12d4   :  { %7796 = vmatprep.subr.msk.mxu1 %vm883_vm4, %v4481_v34  ;;  %7771 = vmatpush3.xpose.msk.msra.mxu0 %vm883_vm4, %v4093_v18 }
0x12d5   :  { %7787 = vmatmul.mubr.msk.f32.vlgmr.msra.gmra.mxu1 %vm80_vm0, %v4299_v5 }
0x12d6   :  { %7797 = vmatpush3.xpose.msk.msra.mxu1 %vm883_vm4, %v4481_v34  ;;  %7800 = vmatprep.mubr.msk.f32.mxu1 %vm883_vm4, %v4475_v31 }
0x12d7   :  { %7798 = vmatprep.subr.msk.mxu1 %vm883_vm4, %v4479_v14  ;;  %7773 = vmatmul.mubr.msk.f32.vlgmr.msra.gmra.mxu0 %vm883_vm4, %v8857_v58 }
0x12da   :  { %7799 = vmatpush3.xpose.msk.msra.mxu1 %vm883_vm4, %v4479_v14 }
0x12dd   :  { %7801 = vmatmul.mubr.msk.f32.vlgmr.msra.gmra.mxu1 %vm883_vm4, %v4477_v41 }
0x12ea   :  { %v7767_v62 = vpop.f32.mrf.mxu1 }
0x12ec   :  { %v4081_v1 = vpop.f32.mrf.mxu1 }
0x1390   :  { %v8866_v17 = vpop.f32.mrf.mxu1 }
0x1392   :  { %v8868_v19 = vpop.f32.mrf.mxu1 }
0x1395   :  { %v8870_v12 = vpop.f32.mrf.mxu1 }
0x1397   :  { %v7774_v38 = vpop.f32.mrf.mxu0  ;;  %v8872_v52 = vpop.f32.mrf.mxu1 }
0x1398   :  { %v4178_v44 = vadd.f32 %v7774_v38, %v7767_v62 }
0x1399   :  { %v4172_v40 = vpop.f32.mrf.mxu0 }
0x139a   :  { %v4210_v33 = vmul.f32 %v4208_v13, %v4178_v44  ;;  %v4173_v48 = vadd.f32 %v4172_v40, %v4081_v1 }
0x139c   :  { %v4209_v56 = vmul.f32 %v4207_v21, %v4173_v48 }
0x139d   :  { %v7802_v54 = vpop.f32.mrf.mxu1 }
0x139e   :  { %v4566_v9 = vsel %vm8250_vm8, %v7802_v54, -1e+30  ;;  %7793 = vmatprep.mubr.msk.f32.mxu0 %vm80_vm0, %v4209_v56 }
0x139f   :  { %v4752_v55 = vsel %vm80_vm0, %v4566_v9, -inf  ;;  %v4556_v61 = vpop.f32.mrf.mxu1 }
0x13a0   :  { %v4565_v46 = vsel %vm53_vm7, %v4556_v61, -1e+30  ;;  %4753 = vmax.xlane.f32.xlu1 %v4752_v55 }
0x13a1   :  { %v4749_v10 = vsel %vm80_vm0, %v4565_v46, -inf }
0x13a2   :  { %4750 = vmax.xlane.f32.xlu0 %v4749_v10 }
0x13b1   :  { %4389 = vrot.lane.b32.xlu1 %v8843_v36, %s8136_s1 }
0x13b5   :  { %4573 = vrot.lane.b32.xlu1 %v8799_v49, %s8137_s21 }
0x13b8   :  { %4387 = vrot.lane.b32.xlu0 %v8818_v35, %s8136_s1 }
0x13b9   :  { %4571 = vrot.lane.b32.xlu1 %v8786_v42, %s8137_s21 }
0x13bc   :  { %4567 = vrot.lane.b32.xlu0 %v8771_v16, %s8138_s22 }
0x13bd   :  { %4781 = vrot.lane.b32.xlu1 %v8748_v59, %s8139_s23 }
0x13c0   :  { %4569 = vrot.lane.b32.xlu0 %v8828_v6, %s8138_s22 }
0x13c1   :  { %4779 = vrot.lane.b32.xlu1 %v8752_v29, %s8139_s23 }
0x13c5   :  { %4868 = vrot.lane.b32.xlu1 %v8786_v42, %s8139_s23 }
0x13c9   :  { %5046 = vrot.lane.b32.xlu1 %v8752_v29, %s8140_s24 }
0x13cd   :  { %5044 = vrot.lane.b32.xlu1 %v8782_v25, %s8141_s25 }
0x13d1   :  { %4662 = vrot.lane.b32.xlu1 %v8818_v35, %s8137_s21 }
0x13d5   :  { %4660 = vrot.lane.b32.xlu1 %v8857_v58, %s8138_s22 }
0x1429   :  { %v4754_v3 = vpop.xlane.xlu1 %4753 }
0x142a   :  { %v4756_v8 = vsub.f32 %v4566_v9, %v4754_v3 }
0x142b   :  { %v4751_v37 = vpop.xlane.xlu0 %4750 }
0x142c   :  { %v4759_v57 = vmul.f32 1.442695, %v4756_v8  ;;  %v4755_v32 = vsub.f32 %v4565_v46, %v4751_v37 }
0x142d   :  { %v4390_v14 = vpop.permute.xlu1 %4389 }
0x142e   :  { %8054 = vpow2.f32 %v4759_v57  ;;  %v4757_v34 = vmul.f32 1.442695, %v4755_v32  ;;  %7789 = vmatprep.subr.mxu0 %v4390_v14 }
0x142f   :  { %v4388_v41 = vpop.permute.xlu0 %4387  ;;  %7790 = vmatpush3.msra.mxu0 %v4390_v14 }
0x1430   :  { %8056 = vpow2.f32 %v4757_v34  ;;  %7791 = vmatprep.subr.mxu0 %v4388_v41 }
0x1431   :  { %v4574_v31 = vpop.permute.xlu1 %4573  ;;  %7792 = vmatpush3.msra.mxu0 %v4388_v41 }
0x1432   :  { %7794 = vmatmul.mubr.msk.f32.vlgmr.msra.gmra.mxu0 %vm80_vm0, %v4210_v33  ;;  %7803 = vmatprep.subr.msk.mxu0 %vm883_vm4, %v4574_v31 }
0x1433   :  { %v4568_v11 = vpop.permute.xlu0 %4567  ;;  %7804 = vmatpush3.xpose.msk.msra.mxu0 %vm883_vm4, %v4574_v31 }
0x1434   :  { %7807 = vmatprep.mubr.msk.f32.mxu0 %vm883_vm4, %v4568_v11 }
0x1435   :  { %v4572_v47 = vpop.permute.xlu1 %4571 }
0x1436   :  { %7805 = vmatprep.subr.msk.mxu0 %vm883_vm4, %v4572_v47 }
0x1437   :  { %7806 = vmatpush3.xpose.msk.msra.mxu0 %vm883_vm4, %v4572_v47  ;;  %v4570_v63 = vpop.permute.xlu0 %4569 }
0x1439   :  { %v4782_v15 = vpop.permute.xlu1 %4781 }
0x143a   :  { %7808 = vmatmul.mubr.msk.f32.vlgmr.msra.gmra.mxu0 %vm883_vm4, %v4570_v63  ;;  %7817 = vmatprep.subr.mxu0 %v4782_v15 }
0x143b   :  { %v8055_v2 = vpop.eup %8054  ;;  %7818 = vmatpush3.msra.mxu0 %v4782_v15 }
0x143c   :  { %v4764_v60 = vsel %vm80_vm0, %v8055_v2, 0.0 }
0x143d   :  { %v8057_v18 = vpop.eup %8056  ;;  %4765 = vadd.xlane.f32.xlu0 %v4764_v60  ;;  %v4780_v5 = vpop.permute.xlu1 %4779 }
0x143e   :  { %7819 = vmatprep.subr.mxu0 %v4780_v5  ;;  %v4761_v62 = vsel %vm80_vm0, %v8057_v18, 0.0 }
0x143f   :  { %7820 = vmatpush3.msra.mxu0 %v4780_v5 }
0x1441   :  { %4762 = vadd.xlane.f32.xlu0 %v4761_v62  ;;  %v4869_v51 = vpop.permute.xlu1 %4868 }
0x1445   :  { %v5047_v30 = vpop.permute.xlu1 %5046 }
0x1449   :  { %v5045_v44 = vpop.permute.xlu1 %5044 }
0x144d   :  { %v4663_v9 = vpop.permute.xlu1 %4662 }
0x1451   :  { %v4661_v46 = vpop.permute.xlu1 %4660 }
0x1457   :  { %4870 = vrot.lane.b32.xlu0 %v8799_v49, %s8139_s23 }
0x145b   :  { %5048 = vrot.lane.b32.xlu0 %v8748_v59, %s8140_s24 }
0x145f   :  { %5042 = vrot.lane.b32.xlu0 %v8757_v27, %s8141_s25 }
0x1463   :  { %4664 = vrot.lane.b32.xlu0 %v8843_v36, %s8137_s21 }
0x1467   :  { %4658 = vrot.lane.b32.xlu0 %v8789_v20, %s8138_s22 }
0x14c6   :  { %v4766_v1 = vpop.xlane.xlu0 %4765 }
0x14c7   :  { %8058 = vrcp.f32 %v4766_v1 }
0x14ca   :  { %v4763_v26 = vpop.xlane.xlu0 %4762 }
0x14cb   :  { %8060 = vrcp.f32 %v4763_v26 }
0x14ce   :  { %v4871_v28 = vpop.permute.xlu0 %4870 }
0x14cf   :  { %7824 = vmatprep.subr.mxu0 %v4871_v28 }
0x14d2   :  { %v5049_v38 = vpop.permute.xlu0 %5048 }
0x14d4   :  { %v8059_v40 = vpop.eup %8058 }
0x14d5   :  { %v4770_v56 = vmul.f32 %v8059_v40, %v8055_v2 }
0x14d6   :  { %v5043_v13 = vpop.permute.xlu0 %5042 }
0x14d7   :  { %v4867_v61 = vmul.f32 %v4770_v56, %v4770_v56  ;;  %v4772_v32 = vsub.f32 1.0, %v4770_v56 }
0x14d8   :  { %v8061_v33 = vpop.eup %8060 }
0x14d9   :  { %v4768_v48 = vmul.f32 %v8061_v33, %v8057_v18  ;;  %v4774_v41 = vmul.f32 %v4772_v32, %v4770_v56 }
0x14da   :  { %v4665_v21 = vpop.permute.xlu0 %4664 }
0x14db   :  { %7810 = vmatprep.subr.msk.mxu1 %vm883_vm4, %v4665_v21  ;;  %7821 = vmatprep.mubr.msk.f32.mxu0 %vm80_vm0, %v4768_v48  ;;  %v4866_v54 = vmul.f32 %v4768_v48, %v4768_v48  ;;  %v4771_v14 = vsub.f32 1.0, %v4768_v48  ;;  %v4776_v15 = vmul.f32 %v4774_v41, %v4774_v41 }
0x14dc   :  { %7811 = vmatpush3.xpose.msk.msra.mxu1 %vm883_vm4, %v4665_v21  ;;  %7822 = vmatmul.mubr.msk.f32.vlgmr.msra.gmra.mxu0 %vm80_vm0, %v4770_v56 }
0x14dd   :  { %7825 = vmatpush3.msra.mxu0 %v4871_v28  ;;  %7812 = vmatprep.subr.msk.mxu1 %vm883_vm4, %v4663_v9  ;;  %v4773_v31 = vmul.f32 %v4771_v14, %v4768_v48 }
0x14de   :  { %7826 = vmatprep.subr.mxu0 %v4869_v51  ;;  %7828 = vmatprep.mubr.msk.f32.mxu0 %vm80_vm0, %v4866_v54  ;;  %v4659_v55 = vpop.permute.xlu0 %4658 }
0x14df   :  { %7827 = vmatpush3.msra.mxu0 %v4869_v51  ;;  %7814 = vmatprep.mubr.msk.f32.mxu1 %vm883_vm4, %v4659_v55  ;;  %v4775_v5 = vmul.f32 %v4773_v31, %v4773_v31 }
0x14e0   :  { %7838 = vmatprep.subr.msk.mxu0 %vm883_vm4, %v5049_v38  ;;  %7813 = vmatpush3.xpose.msk.msra.mxu1 %vm883_vm4, %v4663_v9 }
0x14e1   :  { %7829 = vmatmul.mubr.msk.f32.vlgmr.msra.gmra.mxu0 %vm80_vm0, %v4867_v61 }
0x14e2   :  { %7839 = vmatpush3.xpose.msk.msra.mxu0 %vm883_vm4, %v5049_v38  ;;  %7842 = vmatprep.mubr.msk.f32.mxu0 %vm883_vm4, %v5043_v13 }
0x14e3   :  { %7840 = vmatprep.subr.msk.mxu0 %vm883_vm4, %v5047_v30  ;;  %7815 = vmatmul.mubr.msk.f32.vlgmr.msra.gmra.mxu1 %vm883_vm4, %v4661_v46 }
0x14e6   :  { %7841 = vmatpush3.xpose.msk.msra.mxu0 %vm883_vm4, %v5047_v30 }
0x14e9   :  { %7843 = vmatmul.mubr.msk.f32.vlgmr.msra.gmra.mxu0 %vm883_vm4, %v5045_v44 }
0x14f2   :  { %v8942_v10 = vpop.f32.mrf.mxu0 }
0x14f4   :  { %v8944_v3 = vpop.f32.mrf.mxu0 }
0x14fa   :  { %v7809_v8 = vpop.f32.mrf.mxu0 }
0x14fc   :  { %v4649_v37 = vpop.f32.mrf.mxu0 }
0x159c   :  { %v8946_v57 = vpop.f32.mrf.mxu0 }
0x159e   :  { %v8948_v34 = vpop.f32.mrf.mxu0 }
0x15a1   :  { %v8950_v11 = vpop.f32.mrf.mxu0 }
0x15a3   :  { %v7816_v47 = vpop.f32.mrf.mxu1  ;;  %v8952_v62 = vpop.f32.mrf.mxu0 }
0x15a4   :  { %v4746_v63 = vadd.f32 %v7816_v47, %v7809_v8 }
0x15a5   :  { %v4740_v2 = vpop.f32.mrf.mxu1 }
0x15a6   :  { %v4778_v60 = vmul.f32 %v4776_v15, %v4746_v63  ;;  %v4741_v18 = vadd.f32 %v4740_v2, %v4649_v37 }
0x15a8   :  { %v4777_v1 = vmul.f32 %v4775_v5, %v4741_v18 }
0x15a9   :  { %v7844_v51 = vpop.f32.mrf.mxu0 }
0x15aa   :  { %v5134_v26 = vsel %vm8250_vm8, %v7844_v51, -1e+30  ;;  %7835 = vmatprep.mubr.msk.f32.mxu1 %vm80_vm0, %v4777_v1 }
0x15ab   :  { %v5320_v28 = vsel %vm80_vm0, %v5134_v26, -inf  ;;  %v5124_v30 = vpop.f32.mrf.mxu0 }
0x15ac   :  { %v5133_v38 = vsel %vm53_vm7, %v5124_v30, -1e+30  ;;  %5321 = vmax.xlane.f32.xlu1 %v5320_v28 }
0x15ad   :  { %v5317_v44 = vsel %vm80_vm0, %v5133_v38, -inf }
0x15ae   :  { %5318 = vmax.xlane.f32.xlu0 %v5317_v44 }
0x15bd   :  { %4957 = vrot.lane.b32.xlu1 %v8843_v36, %s8139_s23 }
0x15c1   :  { %5141 = vrot.lane.b32.xlu1 %v8799_v49, %s8140_s24 }
0x15c4   :  { %4955 = vrot.lane.b32.xlu0 %v8818_v35, %s8139_s23 }
0x15c5   :  { %5139 = vrot.lane.b32.xlu1 %v8786_v42, %s8140_s24 }
0x15c8   :  { %5135 = vrot.lane.b32.xlu0 %v8771_v16, %s8141_s25 }
0x15c9   :  { %5349 = vrot.lane.b32.xlu1 %v8748_v59, %s8142_s26 }
0x15cc   :  { %5137 = vrot.lane.b32.xlu0 %v8828_v6, %s8141_s25 }
0x15cd   :  { %5347 = vrot.lane.b32.xlu1 %v8752_v29, %s8142_s26 }
0x15d1   :  { %5436 = vrot.lane.b32.xlu1 %v8786_v42, %s8142_s26 }
0x15d5   :  { %5614 = vrot.lane.b32.xlu1 %v8752_v29, %s8143_s27 }
0x15d9   :  { %5612 = vrot.lane.b32.xlu1 %v8782_v25, %s8144_s28 }
0x15dd   :  { %5230 = vrot.lane.b32.xlu1 %v8818_v35, %s8140_s24 }
0x15e1   :  { %5228 = vrot.lane.b32.xlu1 %v8857_v58, %s8141_s25 }
0x1635   :  { %v5322_v13 = vpop.xlane.xlu1 %5321 }
0x1636   :  { %v5324_v40 = vsub.f32 %v5134_v26, %v5322_v13 }
0x1637   :  { %v5319_v33 = vpop.xlane.xlu0 %5318 }
0x1638   :  { %v5327_v48 = vmul.f32 1.442695, %v5324_v40  ;;  %v5323_v21 = vsub.f32 %v5133_v38, %v5319_v33 }
0x1639   :  { %v4958_v56 = vpop.permute.xlu1 %4957 }
0x163a   :  { %8062 = vpow2.f32 %v5327_v48  ;;  %v5325_v54 = vmul.f32 1.442695, %v5323_v21  ;;  %7831 = vmatprep.subr.mxu1 %v4958_v56 }
0x163b   :  { %7832 = vmatpush3.msra.mxu1 %v4958_v56  ;;  %v4956_v9 = vpop.permute.xlu0 %4955 }
0x163c   :  { %8064 = vpow2.f32 %v5325_v54  ;;  %7833 = vmatprep.subr.mxu1 %v4956_v9 }
0x163d   :  { %v5142_v25 = vpop.permute.xlu1 %5141  ;;  %7834 = vmatpush3.msra.mxu1 %v4956_v9 }
0x163e   :  { %7836 = vmatmul.mubr.msk.f32.vlgmr.msra.gmra.mxu1 %vm80_vm0, %v4778_v60  ;;  %7845 = vmatprep.subr.msk.mxu1 %vm883_vm4, %v5142_v25 }
0x163f   :  { %v5136_v55 = vpop.permute.xlu0 %5135  ;;  %7846 = vmatpush3.xpose.msk.msra.mxu1 %vm883_vm4, %v5142_v25 }
0x1640   :  { %7849 = vmatprep.mubr.msk.f32.mxu1 %vm883_vm4, %v5136_v55 }
0x1641   :  { %v5140_v61 = vpop.permute.xlu1 %5139 }
0x1642   :  { %7847 = vmatprep.subr.msk.mxu1 %vm883_vm4, %v5140_v61 }
0x1643   :  { %7848 = vmatpush3.xpose.msk.msra.mxu1 %vm883_vm4, %v5140_v61  ;;  %v5138_v46 = vpop.permute.xlu0 %5137 }
0x1645   :  { %v5350_v8 = vpop.permute.xlu1 %5349 }
0x1646   :  { %7850 = vmatmul.mubr.msk.f32.vlgmr.msra.gmra.mxu1 %vm883_vm4, %v5138_v46  ;;  %7859 = vmatprep.subr.mxu1 %v5350_v8 }
0x1647   :  { %v8063_v37 = vpop.eup %8062  ;;  %7860 = vmatpush3.msra.mxu1 %v5350_v8 }
0x1648   :  { %v5332_v32 = vsel %vm80_vm0, %v8063_v37, 0.0 }
0x1649   :  { %v8065_v14 = vpop.eup %8064  ;;  %v5348_v41 = vpop.permute.xlu1 %5347  ;;  %5333 = vadd.xlane.f32.xlu0 %v5332_v32 }
0x164a   :  { %7861 = vmatprep.subr.mxu1 %v5348_v41  ;;  %v5329_v31 = vsel %vm80_vm0, %v8065_v14, 0.0 }
0x164b   :  { %7862 = vmatpush3.msra.mxu1 %v5348_v41 }
0x164d   :  { %5330 = vadd.xlane.f32.xlu0 %v5329_v31  ;;  %v5437_v63 = vpop.permute.xlu1 %5436 }
0x1651   :  { %v5615_v60 = vpop.permute.xlu1 %5614 }
0x1655   :  { %v5613_v5 = vpop.permute.xlu1 %5612 }
0x1659   :  { %v5231_v44 = vpop.permute.xlu1 %5230 }
0x165d   :  { %v5229_v33 = vpop.permute.xlu1 %5228 }
0x1663   :  { %5438 = vrot.lane.b32.xlu0 %v8799_v49, %s8142_s26 }
0x1667   :  { %5616 = vrot.lane.b32.xlu0 %v8748_v59, %s8143_s27 }
0x166b   :  { %5610 = vrot.lane.b32.xlu0 %v8757_v27, %s8144_s28 }
0x166f   :  { %5232 = vrot.lane.b32.xlu0 %v8843_v36, %s8140_s24 }
0x1673   :  { %5226 = vrot.lane.b32.xlu0 %v8789_v20, %s8141_s25 }
0x16d2   :  { %v5334_v47 = vpop.xlane.xlu0 %5333 }
0x16d3   :  { %8066 = vrcp.f32 %v5334_v47 }
0x16d6   :  { %v5331_v15 = vpop.xlane.xlu0 %5330 }
0x16d7   :  { %8068 = vrcp.f32 %v5331_v15 }
0x16da   :  { %v5439_v2 = vpop.permute.xlu0 %5438 }
0x16db   :  { %7866 = vmatprep.subr.mxu1 %v5439_v2 }
0x16de   :  { %v5617_v18 = vpop.permute.xlu0 %5616 }
0x16e0   :  { %v8067_v51 = vpop.eup %8066 }
0x16e1   :  { %v5338_v30 = vmul.f32 %v8067_v51, %v8063_v37 }
0x16e2   :  { %v5611_v1 = vpop.permute.xlu0 %5610 }
0x16e3   :  { %v5435_v40 = vmul.f32 %v5338_v30, %v5338_v30  ;;  %v5340_v25 = vsub.f32 1.0, %v5338_v30 }
0x16e4   :  { %v8069_v26 = vpop.eup %8068 }
0x16e5   :  { %v5336_v27 = vmul.f32 %v8069_v26, %v8065_v14  ;;  %v5342_v46 = vmul.f32 %v5340_v25, %v5338_v30 }
0x16e6   :  { %v5233_v28 = vpop.permute.xlu0 %5232 }
0x16e7   :  { %7852 = vmatprep.subr.msk.mxu0 %vm883_vm4, %v5233_v28  ;;  %7863 = vmatprep.mubr.msk.f32.mxu1 %vm80_vm0, %v5336_v27  ;;  %v5434_v38 = vmul.f32 %v5336_v27, %v5336_v27  ;;  %v5339_v55 = vsub.f32 1.0, %v5336_v27  ;;  %v5344_v41 = vmul.f32 %v5342_v46, %v5342_v46 }
0x16e8   :  { %7853 = vmatpush3.xpose.msk.msra.mxu0 %vm883_vm4, %v5233_v28  ;;  %7864 = vmatmul.mubr.msk.f32.vlgmr.msra.gmra.mxu1 %vm80_vm0, %v5338_v30 }
0x16e9   :  { %7867 = vmatpush3.msra.mxu1 %v5439_v2  ;;  %7854 = vmatprep.subr.msk.mxu0 %vm883_vm4, %v5231_v44  ;;  %v5341_v8 = vmul.f32 %v5339_v55, %v5336_v27 }
0x16ea   :  { %7868 = vmatprep.subr.mxu1 %v5437_v63  ;;  %7870 = vmatprep.mubr.msk.f32.mxu1 %vm80_vm0, %v5434_v38  ;;  %v5227_v13 = vpop.permute.xlu0 %5226 }
0x16eb   :  { %7869 = vmatpush3.msra.mxu1 %v5437_v63  ;;  %7856 = vmatprep.mubr.msk.f32.mxu0 %vm883_vm4, %v5227_v13  ;;  %v5343_v15 = vmul.f32 %v5341_v8, %v5341_v8 }
0x16ec   :  { %7880 = vmatprep.subr.msk.mxu1 %vm883_vm4, %v5617_v18  ;;  %7855 = vmatpush3.xpose.msk.msra.mxu0 %vm883_vm4, %v5231_v44 }
0x16ed   :  { %7871 = vmatmul.mubr.msk.f32.vlgmr.msra.gmra.mxu1 %vm80_vm0, %v5435_v40 }
0x16ee   :  { %7881 = vmatpush3.xpose.msk.msra.mxu1 %vm883_vm4, %v5617_v18  ;;  %7884 = vmatprep.mubr.msk.f32.mxu1 %vm883_vm4, %v5611_v1 }
0x16ef   :  { %7882 = vmatprep.subr.msk.mxu1 %vm883_vm4, %v5615_v60  ;;  %7857 = vmatmul.mubr.msk.f32.vlgmr.msra.gmra.mxu0 %vm883_vm4, %v5229_v33 }
0x16f2   :  { %7883 = vmatpush3.xpose.msk.msra.mxu1 %vm883_vm4, %v5615_v60 }
0x16f5   :  { %7885 = vmatmul.mubr.msk.f32.vlgmr.msra.gmra.mxu1 %vm883_vm4, %v5613_v5 }
0x16fe   :  { %v9022_v48 = vpop.f32.mrf.mxu1 }
0x1700   :  { %v9024_v21 = vpop.f32.mrf.mxu1 }
0x1706   :  { %v7851_v56 = vpop.f32.mrf.mxu1 }
0x1708   :  { %v5217_v54 = vpop.f32.mrf.mxu1 }
0x17a8   :  { %v7865_v9 = vpop.f32.mrf.mxu1 }
0x17aa   :  { %v9026_v61 = vpop.f32.mrf.mxu1 }
0x17ad   :  { %v9028_v37 = vpop.f32.mrf.mxu1 }
0x17af   :  { %v7858_v32 = vpop.f32.mrf.mxu0  ;;  %v9030_v2 = vpop.f32.mrf.mxu1 }
0x17b0   :  { %v5314_v14 = vadd.f32 %v7858_v32, %v7851_v56 }
0x17b1   :  { %v5308_v31 = vpop.f32.mrf.mxu0 }
0x17b2   :  { %v5346_v47 = vmul.f32 %v5344_v41, %v5314_v14  ;;  %v5309_v63 = vadd.f32 %v5308_v31, %v5217_v54 }
0x17b4   :  { %v5345_v60 = vmul.f32 %v5343_v15, %v5309_v63 }
0x17b5   :  { %v7886_v18 = vpop.f32.mrf.mxu1 }
0x17b6   :  { %v5702_v5 = vsel %vm8250_vm8, %v7886_v18, -1e+30  ;;  %7877 = vmatprep.mubr.msk.f32.mxu0 %vm80_vm0, %v5345_v60 }
0x17b7   :  { %v5888_v1 = vsel %vm80_vm0, %v5702_v5, -inf  ;;  %v5692_v51 = vpop.f32.mrf.mxu1 }
0x17b8   :  { %v5701_v26 = vsel %vm53_vm7, %v5692_v51, -1e+30  ;;  %5889 = vmax.xlane.f32.xlu1 %v5888_v1 }
0x17b9   :  { %v5885_v27 = vsel %vm80_vm0, %v5701_v26, -inf }
0x17ba   :  { %5886 = vmax.xlane.f32.xlu0 %v5885_v27 }
0x17c9   :  { %5525 = vrot.lane.b32.xlu1 %v8843_v36, %s8142_s26 }
0x17cd   :  { %5709 = vrot.lane.b32.xlu1 %v8799_v49, %s8143_s27 }
0x17d0   :  { %5523 = vrot.lane.b32.xlu0 %v8818_v35, %s8142_s26 }
0x17d1   :  { %5707 = vrot.lane.b32.xlu1 %v8786_v42, %s8143_s27 }
0x17d4   :  { %5703 = vrot.lane.b32.xlu0 %v8771_v16, %s8144_s28 }
0x17d5   :  { %5705 = vrot.lane.b32.xlu1 %v8828_v6, %s8144_s28 }
0x17d9   :  { %5915 = vrot.lane.b32.xlu1 %v8752_v29, %s8145_s29 }
0x17dd   :  { %5798 = vrot.lane.b32.xlu1 %v8818_v35, %s8143_s27 }
0x17e1   :  { %5796 = vrot.lane.b32.xlu1 %v8857_v58, %s8144_s28 }
0x17e5   :  { %6182 = vrot.lane.b32.xlu1 %v8946_v57, %s8132_s13 }
0x17e9   :  { %6190 = vrot.lane.b32.xlu1 %v7865_v9, %s8146_s30 }
0x1841   :  { %v5890_v22 = vpop.xlane.xlu1 %5889 }
0x1842   :  { %v5892_v24 = vsub.f32 %v5702_v5, %v5890_v22 }
0x1843   :  { %v5887_v16 = vpop.xlane.xlu0 %5886 }
0x1844   :  { %v5895_v28 = vmul.f32 1.442695, %v5892_v24  ;;  %v5891_v30 = vsub.f32 %v5701_v26, %v5887_v16 }
0x1845   :  { %v5526_v6 = vpop.permute.xlu1 %5525 }
0x1846   :  { %8070 = vpow2.f32 %v5895_v28  ;;  %v5893_v38 = vmul.f32 1.442695, %v5891_v30  ;;  %7873 = vmatprep.subr.mxu0 %v5526_v6 }
0x1847   :  { %7874 = vmatpush3.msra.mxu0 %v5526_v6  ;;  %v5524_v29 = vpop.permute.xlu0 %5523 }
0x1848   :  { %8072 = vpow2.f32 %v5893_v38  ;;  %7875 = vmatprep.subr.mxu0 %v5524_v29 }
0x1849   :  { %v5710_v44 = vpop.permute.xlu1 %5709  ;;  %7876 = vmatpush3.msra.mxu0 %v5524_v29 }
0x184a   :  { %7878 = vmatmul.mubr.msk.f32.vlgmr.msra.gmra.mxu0 %vm80_vm0, %v5346_v47  ;;  %7887 = vmatprep.subr.msk.mxu0 %vm883_vm4, %v5710_v44 }
0x184b   :  { %v5704_v58 = vpop.permute.xlu0 %5703  ;;  %7888 = vmatpush3.xpose.msk.msra.mxu0 %vm883_vm4, %v5710_v44 }
0x184c   :  { %7891 = vmatprep.mubr.msk.f32.mxu0 %vm883_vm4, %v5704_v58 }
0x184d   :  { %v5708_v57 = vpop.permute.xlu1 %5707 }
0x184e   :  { %7889 = vmatprep.subr.msk.mxu0 %vm883_vm4, %v5708_v57 }
0x184f   :  { %7890 = vmatpush3.xpose.msk.msra.mxu0 %vm883_vm4, %v5708_v57 }
0x1851   :  { %v5706_v13 = vpop.permute.xlu1 %5705 }
0x1852   :  { %7892 = vmatmul.mubr.msk.f32.vlgmr.msra.gmra.mxu0 %vm883_vm4, %v5706_v13 }
0x1853   :  { %v8071_v40 = vpop.eup %8070 }
0x1854   :  { %v5900_v33 = vsel %vm80_vm0, %v8071_v40, 0.0 }
0x1855   :  { %v8073_v56 = vpop.eup %8072  ;;  %5901 = vadd.xlane.f32.xlu0 %v5900_v33  ;;  %v5916_v55 = vpop.permute.xlu1 %5915 }
0x1856   :  { %v5897_v54 = vsel %vm80_vm0, %v8073_v56, 0.0 }
0x1859   :  { %5898 = vadd.xlane.f32.xlu0 %v5897_v54 }
0x186f   :  { %5917 = vrot.lane.b32.xlu0 %v8748_v59, %s8145_s29 }
0x1873   :  { %5800 = vrot.lane.b32.xlu0 %v8843_v36, %s8143_s27 }
0x1877   :  { %5794 = vrot.lane.b32.xlu0 %v8789_v20, %s8144_s28  ;;  %v5799_v20 = vpop.permute.xlu1 %5798 }
0x187b   :  { %6180 = vrot.lane.b32.xlu0 %v8948_v34, %s8132_s13  ;;  %v5797_v14 = vpop.permute.xlu1 %5796 }
0x187f   :  { %6188 = vrot.lane.b32.xlu0 %v9026_v61, %s8146_s30  ;;  %v6183_v44 = vpop.permute.xlu1 %6182 }
0x1883   :  { %v6191_v57 = vpop.permute.xlu1 %6190 }
0x18de   :  { %v5902_v9 = vpop.xlane.xlu0 %5901 }
0x18df   :  { %8074 = vrcp.f32 %v5902_v9 }
0x18e2   :  { %v5899_v25 = vpop.xlane.xlu0 %5898 }
0x18e3   :  { %8076 = vrcp.f32 %v5899_v25 }
0x18e6   :  { %v5918_v46 = vpop.permute.xlu0 %5917 }
0x18e7   :  { %7901 = vmatprep.subr.mxu0 %v5918_v46 }
0x18e8   :  { %7902 = vmatpush3.msra.mxu0 %v5918_v46 }
0x18e9   :  { %7903 = vmatprep.subr.mxu0 %v5916_v55 }
0x18ea   :  { %v5801_v59 = vpop.permute.xlu0 %5800  ;;  %7904 = vmatpush3.msra.mxu0 %v5916_v55 }
0x18eb   :  { %7894 = vmatprep.subr.msk.mxu1 %vm883_vm4, %v5801_v59 }
0x18ec   :  { %7895 = vmatpush3.xpose.msk.msra.mxu1 %vm883_vm4, %v5801_v59  ;;  %v8075_v61 = vpop.eup %8074 }
0x18ed   :  { %7896 = vmatprep.subr.msk.mxu1 %vm883_vm4, %v5799_v20  ;;  %v9084_v41 = vmul.f32 %v8075_v61, %v8071_v40  ;;  %v6203_v40 = vsel %vm883_vm4, %v8866_v17, %v6183_v44 }
0x18ee   :  { %v5795_v34 = vpop.permute.xlu0 %5794  ;;  %v6205_v33 = vsel %vm80_vm0, %v6203_v40, %v6191_v57 }
0x18ef   :  { %7898 = vmatprep.mubr.msk.f32.mxu1 %vm883_vm4, %v5795_v34  ;;  %v5908_v15 = vsub.f32 1.0, %v9084_v41 }
0x18f0   :  { %v8077_v8 = vpop.eup %8076  ;;  %7897 = vmatpush3.xpose.msk.msra.mxu1 %vm883_vm4, %v5799_v20 }
0x18f1   :  { %v5904_v32 = vmul.f32 %v8077_v8, %v8073_v56  ;;  %v5910_v5 = vmul.f32 %v5908_v15, %v9084_v41 }
0x18f2   :  { %v6181_v58 = vpop.permute.xlu0 %6180 }
0x18f3   :  { %7899 = vmatmul.mubr.msk.f32.vlgmr.msra.gmra.mxu1 %vm883_vm4, %v5797_v14  ;;  %7905 = vmatprep.mubr.msk.f32.mxu0 %vm80_vm0, %v5904_v32  ;;  %v6002_v31 = vmul.f32 %v5904_v32, %v5904_v32  ;;  %v5907_v18 = vsub.f32 1.0, %v5904_v32  ;;  %v5912_v22 = vmul.f32 %v5910_v5, %v5910_v5  ;;  %v6202_v54 = vsel %vm883_vm4, %v8868_v19, %v6181_v58 }
0x18f4   :  { %7906 = vmatmul.mubr.msk.f32.vlgmr.msra.gmra.mxu0 %vm80_vm0, %v9084_v41  ;;  %v5039_v5 = vadd.f32 %v9022_v48, %v8950_v11  ;;  %v6322_v11 = vld [vmem:[#allocation4 + $0x220] sm:$0xff]  ;;  %v6321_v48 = vld [vmem:[#allocation4 + $0x218] sm:$0xff] }
0x18f5   :  { %7912 = vmatprep.mubr.msk.f32.mxu0 %vm80_vm0, %v6002_v31  ;;  %v5909_v51 = vmul.f32 %v5907_v18, %v5904_v32 }
0x18f6   :  { %v6189_v13 = vpop.permute.xlu0 %6188 }
0x18f7   :  { %v5911_v6 = vmul.f32 %v5909_v51, %v5909_v51  ;;  %v6204_v9 = vsel %vm80_vm0, %v6202_v54, %v6189_v13  ;;  %v6313_v54 = vld [vmem:[#allocation4 + $0x1d8] sm:$0xff] }
0x190a   :  { %v9091_v47 = vpop.f32.mrf.mxu0 }
0x190c   :  { %v9093_v63 = vpop.f32.mrf.mxu0 }
0x190d   :  { %v5602_v51 = vadd.f32 %v9093_v63, %v9030_v2 }
0x1912   :  { %v7893_v60 = vpop.f32.mrf.mxu0 }
0x1914   :  { %v5785_v1 = vpop.f32.mrf.mxu0 }
0x19b3   :  { %v7900_v26 = vpop.f32.mrf.mxu1 }
0x19b4   :  { %v5882_v27 = vadd.f32 %v7900_v26, %v7893_v60  ;;  %v7907_v24 = vpop.f32.mrf.mxu0  ;;  %v6323_v26 = vld [vmem:[#allocation4 + $0x228] sm:$0xff] }
0x19b5   :  { %v5876_v16 = vpop.f32.mrf.mxu1  ;;  %6198 = vrot.lane.b32.xlu1 %v7907_v24, %s8147_s3  ;;  %v9138_v24 = vld [vmem:[#allocation4 + $0x1c8] sm:$0xf] }
0x19b6   :  { %v5914_v28 = vmul.f32 %v5912_v22, %v5882_v27  ;;  %v5877_v30 = vadd.f32 %v5876_v16, %v5785_v1  ;;  %v5993_v38 = vpop.f32.mrf.mxu0  ;;  %v5607_v1 = vadd.f32 %v9091_v47, %v9028_v37  ;;  %v6320_v37 = vld [vmem:[#allocation4 + $0x210] sm:$0xff]  ;;  %v6272_v16 = vrot.slane %v9138_v24, %v8601_v50 }
0x19b7   :  { %6196 = vrot.lane.b32.xlu0 %v5993_v38, %s8147_s3  ;;  %v6278_v38 = vrot.slane %v9138_v24, %v8606_v53 }
0x19b8   :  { %v5913_v29 = vmul.f32 %v5911_v6, %v5877_v30 }
0x19b9   :  { %6093 = vrot.lane.b32.xlu1 %v8843_v36, %s8145_s29 }
0x19ba   :  { %7919 = vmatprep.mubr.msk.f32.mxu1 %vm80_vm0, %v5913_v29 }
0x19bb   :  { %6006 = vrot.lane.b32.xlu0 %v8799_v49, %s8145_s29 }
0x1a27   :  { %v6199_v56 = vpop.permute.xlu1 %6198 }
0x1a28   :  { %v6207_v36 = vsel %vm3178_vm9, %v6205_v33, %v6199_v56  ;;  %v6314_v56 = vld [vmem:[#allocation4 + $0x1e0] sm:$0xff] }
0x1a29   :  { %v6239_v25 = vadd.f32 %v6207_v36, %v8724_v45  ;;  %v6197_v49 = vpop.permute.xlu0 %6196  ;;  %v6312_v36 = vld [vmem:[#allocation4 + $0x1d0] sm:$0xff] }
0x1a2a   :  { %v6206_v55 = vsel %vm3178_vm9, %v6204_v9, %v6197_v49  ;;  %v6319_v9 = vld [vmem:[#allocation4 + $0x208] sm:$0xff]  ;;  %v6318_v49 = vld [vmem:[#allocation4 + $0x200] sm:$0xff] }
0x1a2b   :  { %v6238_v46 = vadd.f32 %v6206_v55, %v8726_v7  ;;  %v6094_v59 = vpop.permute.xlu1 %6093  ;;  %v6246_v17 = vsel %vm621_vm3, %v6239_v25, 0.0  ;;  %v6317_v55 = vld [vmem:[#allocation4 + $0x1f8] sm:$0xff] }
0x1a2c   :  { %6247 = vadd.xlane.f32.xlu1 %v6246_v17  ;;  %7915 = vmatprep.subr.mxu1 %v6094_v59 }
0x1a2d   :  { %7916 = vmatpush3.msra.mxu1 %v6094_v59  ;;  %v6007_v20 = vpop.permute.xlu0 %6006  ;;  %v6243_v19 = vsel %vm621_vm3, %v6238_v46, 0.0  ;;  %v6316_v59 = vld [vmem:[#allocation4 + $0x1f0] sm:$0xff] }
0x1a2e   :  { %6244 = vadd.xlane.f32.xlu0 %v6243_v19  ;;  %7908 = vmatprep.subr.mxu0 %v6007_v20 }
0x1a2f   :  { %7909 = vmatpush3.msra.mxu0 %v6007_v20 }
0x1a3d   :  { %6091 = vrot.lane.b32.xlu1 %v8818_v35, %s8145_s29  ;;  %v6003_v35 = vmul.f32 %v9084_v41, %v9084_v41  ;;  %v5034_v41 = vadd.f32 %v9024_v21, %v8952_v62  ;;  %v6315_v62 = vld [vmem:[#allocation4 + $0x1e8] sm:$0xff] }
0x1a44   :  { %6004 = vrot.lane.b32.xlu0 %v8786_v42, %s8145_s29 }
0x1ab5   :  { %v6248_v45 = vpop.xlane.xlu1 %6247 }
0x1ab6   :  { %v6250_v7 = vmul.f32 0.03125, %v6248_v45 }
0x1ab7   :  { %v6245_v34 = vpop.xlane.xlu0 %6244 }
0x1ab8   :  { %v6252_v61 = vsub.f32 %v6239_v25, %v6250_v7  ;;  %v6249_v8 = vmul.f32 0.03125, %v6245_v34 }
0x1ab9   :  { %v6092_v32 = vpop.permute.xlu1 %6091 }
0x1aba   :  { %v6251_v14 = vsub.f32 %v6238_v46, %v6249_v8  ;;  %7917 = vmatprep.subr.mxu1 %v6092_v32  ;;  %v6254_v31 = vmul.f32 %v6252_v61, %v6252_v61  ;;  %v6287_v8 = vrot.slane %v9138_v24, 1 }
0x1abb   :  { %7918 = vmatpush3.msra.mxu1 %v6092_v32  ;;  %v6005_v15 = vpop.permute.xlu0 %6004 }
0x1abc   :  { %7910 = vmatprep.subr.mxu0 %v6005_v15  ;;  %7920 = vmatmul.mubr.msk.f32.vlgmr.msra.gmra.mxu1 %vm80_vm0, %v5914_v28  ;;  %v6258_v60 = vsel %vm621_vm3, %v6254_v31, 0.0  ;;  %v6253_v42 = vmul.f32 %v6251_v14, %v6251_v14 }
0x1abd   :  { %6259 = vadd.xlane.f32.xlu1 %v6258_v60  ;;  %7911 = vmatpush3.msra.mxu0 %v6005_v15  ;;  %v4466_v60 = vadd.f32 %v8944_v3, %v8872_v52 }
0x1abe   :  { %7913 = vmatmul.mubr.msk.f32.vlgmr.msra.gmra.mxu0 %vm80_vm0, %v6003_v35  ;;  %v6255_v18 = vsel %vm621_vm3, %v6253_v42, 0.0  ;;  %7922 = vmatprep.subr.mxu0 %v6323_v26 }
0x1abf   :  { %6256 = vadd.xlane.f32.xlu0 %v6255_v18  ;;  %7923 = vmatpush3.msra.mxu0 %v6323_v26 }
0x1ac0   :  { %7924 = vmatprep.subr.mxu0 %v6322_v11  ;;  %7933 = vmatprep.subr.mxu1 %v6319_v9 }
0x1ac1   :  { %7925 = vmatpush3.msra.mxu0 %v6322_v11  ;;  %7934 = vmatpush3.msra.mxu1 %v6319_v9 }
0x1ac2   :  { %7926 = vmatprep.subr.mxu0 %v6321_v48  ;;  %7935 = vmatprep.subr.mxu1 %v6318_v49 }
0x1ac3   :  { %7927 = vmatpush3.msra.mxu0 %v6321_v48  ;;  %7936 = vmatpush3.msra.mxu1 %v6318_v49 }
0x1ac4   :  { %7928 = vmatprep.subr.mxu0 %v6320_v37  ;;  %7937 = vmatprep.subr.mxu1 %v6317_v55 }
0x1ac5   :  { %7929 = vmatpush3.msra.mxu0 %v6320_v37  ;;  %7938 = vmatpush3.msra.mxu1 %v6317_v55 }
0x1ac6   :  { %7944 = vmatprep.subr.mxu0 %v6315_v62  ;;  %7939 = vmatprep.subr.mxu1 %v6316_v59 }
0x1ac7   :  { %7940 = vmatpush3.msra.mxu1 %v6316_v59 }
0x1ace   :  { %6212 = vrot.lane.b32.xlu1 %v5039_v5, %s8132_s13 }
0x1ad2   :  { %6220 = vrot.lane.b32.xlu1 %v5607_v1, %s8146_s30 }
0x1ad5   :  { %6210 = vrot.lane.b32.xlu0 %v5034_v41, %s8132_s13  ;;  %v6301_v41 = vrot.slane %v9138_v24, %v8683_v23 }
0x1ad9   :  { %6218 = vrot.lane.b32.xlu0 %v5602_v51, %s8146_s30 }
0x1b46   :  { %v6260_v21 = vpop.xlane.xlu1 %6259 }
0x1b47   :  { %v6262_v47 = vmul.f32 0.03125, %v6260_v21 }
0x1b48   :  { %v6257_v27 = vpop.xlane.xlu0 %6256 }
0x1b49   :  { %v6264_v2 = vadd.f32 1e-05, %v6262_v47  ;;  %v6261_v63 = vmul.f32 0.03125, %v6257_v27 }
0x1b4a   :  { %v6213_v7 = vpop.permute.xlu1 %6212 }
0x1b4b   :  { %8078 = vrsqrt.f32 %v6264_v2  ;;  %v6263_v22 = vadd.f32 1e-05, %v6261_v63 }
0x1b4c   :  { %v6211_v34 = vpop.permute.xlu0 %6210 }
0x1b4d   :  { %8080 = vrsqrt.f32 %v6263_v22  ;;  %v6232_v5 = vsel %vm883_vm4, %v4466_v60, %v6211_v34  ;;  %v6668_v34 = vld [vmem:[#allocation4 + $0x260] sm:$0xff] }
0x1b4e   :  { %v6221_v32 = vpop.permute.xlu1 %6220  ;;  %7955 = vmatprep.subr.mxu1 %v6668_v34  ;;  %v6672_v60 = vld [vmem:[#allocation4 + $0x280] sm:$0xff] }
0x1b50   :  { %v6219_v15 = vpop.permute.xlu0 %6218 }
0x1b58   :  { %v9142_v28 = vpop.eup %8078 }
0x1b59   :  { %v6268_v30 = vmul.f32 %v9142_v28, %v6252_v61  ;;  %v6285_v61 = vmul.f32 %v9138_v24, %v9138_v24 }
0x1b5a   :  { %v9145_v6 = vpop.eup %8080 }
0x1b5b   :  { %v9150_v29 = vmul.f32 %v9145_v6, %v6251_v14  ;;  %v6274_v44 = vmul.f32 %v6272_v16, %v6268_v30  ;;  %v4471_v14 = vadd.f32 %v8942_v10, %v8870_v12  ;;  %v6289_v31 = vadd.f32 %v6287_v8, %v6285_v61  ;;  %v6667_v61 = vld [vmem:[#allocation4 + $0x258] sm:$0xff]  ;;  %v6676_v8 = vld [vmem:[#allocation4 + $0x2a0] sm:$0xff] }
0x1b5c   :  { %v6234_v12 = vsel %vm80_vm0, %v6232_v5, %v6219_v15  ;;  %v6282_v10 = vmul.f32 %v9142_v28, %v9142_v28  ;;  %v6297_v52 = vmul.f32 %v6268_v30, %v6268_v30  ;;  %v6281_v37 = vmul.f32 %v9145_v6, %v9145_v6  ;;  %v6674_v15 = vld [vmem:[#allocation4 + $0x290] sm:$0xff] }
0x1b5d   :  { %v6273_v58 = vmul.f32 %v6272_v16, %v9150_v29  ;;  %v9153_v57 = vadd.f32 %v6278_v38, %v6274_v44  ;;  %v6233_v35 = vsel %vm883_vm4, %v4471_v14, %v6213_v7  ;;  %v6293_v1 = vrot.slane %v6289_v31, %v8601_v50  ;;  %v6675_v14 = vld [vmem:[#allocation4 + $0x298] sm:$0xff]  ;;  %v6665_v31 = vld [vmem:[#allocation4 + $0x248] sm:$0xff] }
0x1b5e   :  { %v6235_v42 = vsel %vm80_vm0, %v6233_v35, %v6221_v32  ;;  %v6303_v47 = vmul.f32 %v6301_v41, %v6297_v52  ;;  %v6666_v32 = vld [vmem:[#allocation4 + $0x250] sm:$0xff]  ;;  %v6673_v35 = vld [vmem:[#allocation4 + $0x288] sm:$0xff] }
0x1b5f   :  { %v9155_v13 = vadd.f32 %v6278_v38, %v6273_v58  ;;  %v6325_v33 = vmul.f32 %v9153_v57, %v9153_v57 }
0x1b61   :  { %v6324_v40 = vmul.f32 %v9155_v13, %v9155_v13 }
0x1b63   :  { %7930 = vmatprep.mubr.msk.f32.mxu0 %vm621_vm3, %v6324_v40 }
0x1b64   :  { %7931 = vmatmul.mubr.msk.f32.vlgmr.msra.gmra.mxu0 %vm621_vm3, %v6325_v33 }
0x1b65   :  { %7945 = vmatpush3.msra.mxu0 %v6315_v62  ;;  %7952 = vmatprep.mubr.msk.f32.mxu0 %vm621_vm3, %v9155_v13  ;;  %v6296_v62 = vmul.f32 %v9150_v29, %v9150_v29  ;;  %v7127_v29 = vld [vmem:[#allocation4 + $0x230] ss:$0 sm:$0xff] }
0x1b66   :  { %7946 = vmatprep.subr.mxu0 %v6314_v56 }
0x1b67   :  { %7947 = vmatpush3.msra.mxu0 %v6314_v56  ;;  %v6302_v22 = vmul.f32 %v6301_v41, %v6296_v62 }
0x1b68   :  { %7948 = vmatprep.subr.mxu0 %v6313_v54 }
0x1b69   :  { %7949 = vmatpush3.msra.mxu0 %v6313_v54 }
0x1b6a   :  { %7950 = vmatprep.subr.mxu0 %v6312_v36 }
0x1b6b   :  { %7951 = vmatpush3.msra.mxu0 %v6312_v36 }
0x1b6c   :  { %7953 = vmatmul.mubr.msk.f32.vlgmr.msra.gmra.mxu0 %vm621_vm3, %v9153_v57  ;;  %7966 = vmatprep.subr.mxu0 %v6676_v8 }
0x1b6d   :  { %7967 = vmatpush3.msra.mxu0 %v6676_v8 }
0x1b6e   :  { %7968 = vmatprep.subr.mxu0 %v6675_v14 }
0x1b6f   :  { %7969 = vmatpush3.msra.mxu0 %v6675_v14 }
0x1b70   :  { %7970 = vmatprep.subr.mxu0 %v6674_v15 }
0x1b71   :  { %7971 = vmatpush3.msra.mxu0 %v6674_v15 }
0x1b72   :  { %7972 = vmatprep.subr.mxu0 %v6673_v35 }
0x1b73   :  { %7973 = vmatpush3.msra.mxu0 %v6673_v35 }
0x1b7c   :  { %v7921_v25 = vpop.f32.mrf.mxu1 }
0x1b7e   :  { %v7914_v46 = vpop.f32.mrf.mxu0  ;;  %v6169_v20 = vpop.f32.mrf.mxu1 }
0x1b7f   :  { %v6175_v17 = vadd.f32 %v7921_v25, %v7914_v46 }
0x1b80   :  { %v6082_v19 = vpop.f32.mrf.mxu0 }
0x1b81   :  { %v6170_v45 = vadd.f32 %v6169_v20, %v6082_v19  ;;  %6228 = vrot.lane.b32.xlu1 %v6175_v17, %s8147_s3 }
0x1b83   :  { %6226 = vrot.lane.b32.xlu0 %v6170_v45, %s8147_s3 }
0x1bf3   :  { %v6229_v18 = vpop.permute.xlu1 %6228 }
0x1bf4   :  { %v6237_v51 = vsel %vm3178_vm9, %v6235_v42, %v6229_v18 }
0x1bf5   :  { %v6241_v3 = vadd.f32 %v6237_v51, %v8765_v43  ;;  %v6227_v26 = vpop.permute.xlu0 %6226  ;;  %v6309_v43 = vrot.slane %v9138_v24, %v8710_v39 }
0x1bf6   :  { %v6236_v11 = vsel %vm3178_vm9, %v6234_v12, %v6227_v26  ;;  %v7130_v26 = vld [vmem:[#allocation4 + $0x238] ss:$0 sm:$0xff] }
0x1bf7   :  { %v6284_v48 = vmul.f32 %v6282_v10, %v6241_v3  ;;  %v6240_v21 = vadd.f32 %v6236_v11, %v8763_v4  ;;  %v6595_v3 = vld [vmem:[#allocation4 + $0x240] sm:$0xf] }
0x1bf8   :  { %v6640_v62 = vrot.slane %v6595_v3, 1 }
0x1bf9   :  { %v6295_v27 = vmul.f32 %v6293_v1, %v6284_v48  ;;  %v6283_v2 = vmul.f32 %v6281_v37, %v6240_v21  ;;  %v6638_v37 = vmul.f32 %v6595_v3, %v6595_v3 }
0x1bfb   :  { %v6305_v63 = vadd.f32 %v6303_v47, %v6295_v27  ;;  %v6294_v16 = vmul.f32 %v6293_v1, %v6283_v2  ;;  %v6642_v27 = vadd.f32 %v6640_v62, %v6638_v37  ;;  %v6625_v2 = vrot.slane %v6595_v3, %v8601_v50 }
0x1bfd   :  { %v6304_v28 = vadd.f32 %v6302_v22, %v6294_v16  ;;  %v9197_v38 = vadd.f32 %v6309_v43, %v6305_v63 }
0x1bff   :  { %v9195_v30 = vadd.f32 %v6309_v43, %v6304_v28  ;;  %v6631_v28 = vrot.slane %v6595_v3, %v8606_v53 }
0x1c01   :  { %7941 = vmatprep.mubr.msk.f32.mxu1 %vm621_vm3, %v9195_v30 }
0x1c02   :  { %7942 = vmatmul.mubr.msk.f32.vlgmr.msra.gmra.mxu1 %vm621_vm3, %v9197_v38 }
0x1c03   :  { %7956 = vmatpush3.msra.mxu1 %v6668_v34 }
0x1c04   :  { %7957 = vmatprep.subr.mxu1 %v6667_v61 }
0x1c05   :  { %7958 = vmatpush3.msra.mxu1 %v6667_v61 }
0x1c06   :  { %7959 = vmatprep.subr.mxu1 %v6666_v32 }
0x1c07   :  { %7960 = vmatpush3.msra.mxu1 %v6666_v32 }
0x1c08   :  { %7961 = vmatprep.subr.mxu1 %v6665_v31 }
0x1c09   :  { %7962 = vmatpush3.msra.mxu1 %v6665_v31 }
0x1c0a   :  { %7977 = vmatprep.subr.mxu1 %v6672_v60 }
0x1c24   :  { %v9203_v4 = vpop.f32.mrf.mxu0 }
0x1c26   :  { %v9205_v6 = vpop.f32.mrf.mxu0 }
0x1c2c   :  { %v7954_v44 = vpop.f32.mrf.mxu0 }
0x1c2d   :  { %v6571_v58 = vadd.f32 %v7954_v44, %v7127_v29 }
0x1c2e   :  { %v6565_v40 = vpop.f32.mrf.mxu0 }
0x1c2f   :  { %vm6582_vm12 = vcmp.gt.f32.partialorder %v6571_v58, 0.0  ;;  %v6566_v24 = vadd.f32 %v7127_v29, %v6565_v40  ;;  %v6654_v29 = vrot.slane %v6595_v3, %v8683_v23 }
0x1c30   :  { %v9208_v33 = vsel %vm6582_vm12, 1.0, %v8134_v0 }
0x1c31   :  { %v6588_v56 = vmul.f32 %v9208_v33, %v6571_v58  ;;  %vm6581_vm13 = vcmp.gt.f32.partialorder %v6566_v24, 0.0 }
0x1c32   :  { %v9212_v54 = vsel %vm6581_vm13, 1.0, %v8134_v0 }
0x1c33   :  { %v6587_v36 = vmul.f32 %v9212_v54, %v6566_v24  ;;  %v6592_v9 = vadd.f32 %v6588_v56, %v9153_v57 }
0x1c35   :  { %v6599_v25 = vsel %vm621_vm3, %v6592_v9, 0.0  ;;  %v6591_v49 = vadd.f32 %v6587_v36, %v9155_v13 }
0x1c36   :  { %6600 = vadd.xlane.f32.xlu1 %v6599_v25  ;;  %v6662_v25 = vrot.slane %v6595_v3, %v8710_v39  ;;  %v6670_v39 = vld [vmem:[#allocation4 + $0x270] sm:$0xff] }
0x1c37   :  { %v6596_v55 = vsel %vm621_vm3, %v6591_v49, 0.0 }
0x1c38   :  { %6597 = vadd.xlane.f32.xlu0 %v6596_v55 }
0x1cbf   :  { %v6601_v46 = vpop.xlane.xlu1 %6600 }
0x1cc0   :  { %v6603_v59 = vmul.f32 0.03125, %v6601_v46 }
0x1cc1   :  { %v6598_v17 = vpop.xlane.xlu0 %6597 }
0x1cc2   :  { %v6602_v20 = vmul.f32 0.03125, %v6598_v17  ;;  %v9219_v19 = vsub.f32 %v6592_v9, %v6603_v59  ;;  %v7943_v42 = vpop.f32.mrf.mxu1  ;;  %v6671_v17 = vld [vmem:[#allocation4 + $0x278] sm:$0xff] }
0x1cc3   :  { %v6485_v11 = vadd.f32 %v7943_v42, %v9203_v4  ;;  %v6646_v4 = vrot.slane %v6642_v27, %v8601_v50 }
0x1cc4   :  { %v6604_v0 = vsub.f32 %v6591_v49, %v6602_v20  ;;  %v6607_v57 = vmul.f32 %v9219_v19, %v9219_v19  ;;  %v6479_v1 = vpop.f32.mrf.mxu1 }
0x1cc5   :  { %v6480_v10 = vadd.f32 %v6479_v1, %v9205_v6  ;;  %v6580_v21 = vadd.f32 %v7130_v26, %v6485_v11 }
0x1cc6   :  { %v6606_v45 = vmul.f32 %v6604_v0, %v6604_v0  ;;  %v6611_v13 = vsel %vm621_vm3, %v6607_v57, 0.0 }
0x1cc7   :  { %v6579_v48 = vadd.f32 %v7130_v26, %v6480_v10  ;;  %v6590_v22 = vmul.f32 %v9208_v33, %v6580_v21 }
0x1cc8   :  { %v6608_v7 = vsel %vm621_vm3, %v6606_v45, 0.0  ;;  %v6669_v45 = vld [vmem:[#allocation4 + $0x268] sm:$0xff] }
0x1cc9   :  { %6609 = vadd.xlane.f32.xlu0 %v6608_v7  ;;  %v6589_v47 = vmul.f32 %v9212_v54, %v6579_v48  ;;  %v6594_v56 = vadd.f32 %v6590_v22, %v9197_v38 }
0x1ccb   :  { %v6593_v16 = vadd.f32 %v6589_v47, %v9195_v30 }
0x1ccd   :  { %6612 = vadd.xlane.f32.xlu0 %v6611_v13 }
0x1d52   :  { %v6610_v18 = vpop.xlane.xlu0 %6609 }
0x1d53   :  { %v6614_v5 = vmul.f32 0.03125, %v6610_v18 }
0x1d55   :  { %v6616_v41 = vadd.f32 1e-05, %v6614_v5 }
0x1d56   :  { %v6613_v51 = vpop.xlane.xlu0 %6612 }
0x1d57   :  { %8082 = vrsqrt.f32 %v6616_v41  ;;  %v6615_v12 = vmul.f32 0.03125, %v6613_v51 }
0x1d59   :  { %v6617_v52 = vadd.f32 1e-05, %v6615_v12 }
0x1d5b   :  { %8084 = vrsqrt.f32 %v6617_v52 }
0x1d64   :  { %v8083_v63 = vpop.eup %8082 }
0x1d65   :  { %v6620_v43 = vmul.f32 %v8083_v63, %v6604_v0  ;;  %v6634_v6 = vmul.f32 %v8083_v63, %v8083_v63 }
0x1d67   :  { %v6626_v44 = vmul.f32 %v6625_v2, %v6620_v43  ;;  %v6636_v58 = vmul.f32 %v6634_v6, %v6593_v16  ;;  %v6649_v40 = vmul.f32 %v6620_v43, %v6620_v43 }
0x1d68   :  { %v8085_v24 = vpop.eup %8084 }
0x1d69   :  { %v6635_v54 = vmul.f32 %v8085_v24, %v8085_v24  ;;  %v6621_v36 = vmul.f32 %v8085_v24, %v9219_v19  ;;  %v6632_v33 = vadd.f32 %v6631_v28, %v6626_v44  ;;  %v6647_v9 = vmul.f32 %v6646_v4, %v6636_v58 }
0x1d6a   :  { %v6655_v30 = vmul.f32 %v6654_v29, %v6649_v40 }
0x1d6b   :  { %v6627_v53 = vmul.f32 %v6625_v2, %v6621_v36  ;;  %7963 = vmatprep.mubr.msk.f32.mxu1 %vm621_vm3, %v6632_v33  ;;  %v6758_v50 = vmul.f32 %v6632_v33, %v6632_v33  ;;  %v6637_v49 = vmul.f32 %v6635_v54, %v6594_v56  ;;  %v6650_v23 = vmul.f32 %v6621_v36, %v6621_v36 }
0x1d6c   :  { %v6657_v55 = vadd.f32 %v6655_v30, %v6647_v9 }
0x1d6d   :  { %v6633_v46 = vadd.f32 %v6631_v28, %v6627_v53  ;;  %7974 = vmatprep.mubr.msk.f32.mxu0 %vm621_vm3, %v6758_v50  ;;  %v6648_v59 = vmul.f32 %v6646_v4, %v6637_v49  ;;  %v6656_v38 = vmul.f32 %v6654_v29, %v6650_v23 }
0x1d6e   :  { %v6663_v20 = vadd.f32 %v6662_v25, %v6657_v55 }
0x1d6f   :  { %7964 = vmatmul.mubr.msk.f32.vlgmr.msra.gmra.mxu1 %vm621_vm3, %v6633_v46  ;;  %v6759_v19 = vmul.f32 %v6633_v46, %v6633_v46  ;;  %v6658_v0 = vadd.f32 %v6656_v38, %v6648_v59 }
0x1d70   :  { %7978 = vmatpush3.msra.mxu1 %v6672_v60  ;;  %7985 = vmatprep.mubr.msk.f32.mxu1 %vm621_vm3, %v6663_v20 }
0x1d71   :  { %7979 = vmatprep.subr.mxu1 %v6671_v17  ;;  %7975 = vmatmul.mubr.msk.f32.vlgmr.msra.gmra.mxu0 %vm621_vm3, %v6759_v19  ;;  %v6664_v7 = vadd.f32 %v6662_v25, %v6658_v0 }
0x1d72   :  { %7980 = vmatpush3.msra.mxu1 %v6671_v17 }
0x1d73   :  { %7981 = vmatprep.subr.mxu1 %v6670_v39 }
0x1d74   :  { %7982 = vmatpush3.msra.mxu1 %v6670_v39 }
0x1d75   :  { %7983 = vmatprep.subr.mxu1 %v6669_v45 }
0x1d76   :  { %7984 = vmatpush3.msra.mxu1 %v6669_v45 }
0x1d77   :  { %7986 = vmatmul.mubr.msk.f32.vlgmr.msra.gmra.mxu1 %vm621_vm3, %v6664_v7 }
0x1e2f   :  { %v7965_v57 = vpop.f32.mrf.mxu1 }
0x1e31   :  { %v6749_v13 = vpop.f32.mrf.mxu1  ;;  %v7976_v34 = vpop.f32.mrf.mxu0 }
0x1e33   :  { %v6832_v32 = vpop.f32.mrf.mxu0 }
0x1e37   :  { %v7987_v61 = vpop.f32.mrf.mxu1 }
0x1e38   :  { %v6919_v8 = vadd.f32 %v7987_v61, %v7976_v34 }
0x1e39   :  { %v6913_v14 = vpop.f32.mrf.mxu1 }
0x1e3a   :  { %v6914_v31 = vadd.f32 %v6913_v14, %v6832_v32  ;;  %6926 = vrot.lane.b32.xlu0 %v6919_v8, %s8136_s1 }
0x1e3c   :  { %6924 = vrot.lane.b32.xlu1 %v6914_v31, %s8136_s1 }
0x1eac   :  { %v6927_v15 = vpop.permute.xlu0 %6926 }
0x1ead   :  { %v6932_v60 = vsel %vm6930_vm14, %v7965_v57, %v6927_v15 }
0x1eae   :  { %6934 = vst [vmem:[%s9253_s2 + $0x8] sm:$0xff] %v6932_v60  ;;  %v6925_v35 = vpop.permute.xlu1 %6924 }
0x1eaf   :  { %v6931_v42 = vsel %vm6930_vm14, %v6749_v13, %v6925_v35 }
0x1eb0   :  { %6933 = vst [vmem:[%s9253_s2] sm:$0xff] %v6931_v42 }
0x1eb1   :  { %6939 = vsyncpa [#allocation3], 1 }
0x1eb2   :  { %6940 = vsyncpa [#allocation5], 1 }

</bundles_post_ra>
